<compile_context>
chip_gen: v5e
topology: v5e:2x2
jax: 0.10.0
libtpu: 0.0.40
codegen_flags: <defaults>
</compile_context>

<pallas_src>
import functools

import numpy as np
import jax
import jax.numpy as jnp
from jax import lax
from jax.experimental import pallas as pl
from jax.experimental.pallas import tpu as pltpu

# name, cout, cin, kernel, stride, padding   (forward order, PyTorch semantics)
SPEC = (
    ("a1", 16, 12, 3, 1, 1),
    ("a2", 16, 16, 3, 1, 1),
    ("a3", 32, 16, 3, 2, 0),
    ("b1", 32, 32, 3, 1, 1),
    ("b2", 32, 32, 3, 1, 1),
    ("b3", 64, 32, 3, 2, 0),
    ("c1", 64, 64, 2, 1, 1),
    ("c2", 64, 64, 2, 1, 1),
    ("c3", 128, 64, 2, 2, 0),
    ("d1", 128, 128, 1, 1, 0),
    ("d2", 128, 128, 1, 1, 0),
    ("d3", 128, 128, 1, 1, 0),
)


def _rup(n, m):
    return (n + m - 1) // m * m


# ----------------------------------------------------------------------------
# Parameter init (deterministic, PyTorch-default-style uniform fan-in bounds).
# ----------------------------------------------------------------------------
def _init_conv(key, cout, cin, kh, kw):
    k1, k2 = jax.random.split(key)
    bound = 1.0 / (cin * kh * kw) ** 0.5
    w = jax.random.uniform(k1, (cout, cin, kh, kw), jnp.float32, -bound, bound)
    b = jax.random.uniform(k2, (cout,), jnp.float32, -bound, bound)
    return w, b


def _init_linear(key, out_f, in_f):
    k1, k2 = jax.random.split(key)
    bound = 1.0 / in_f ** 0.5
    w = jax.random.uniform(k1, (out_f, in_f), jnp.float32, -bound, bound)
    b = jax.random.uniform(k2, (out_f,), jnp.float32, -bound, bound)
    return w, b


def init_params(key):
    keys = jax.random.split(key, len(SPEC) + 1)
    params = {}
    for k, (name, cout, cin, ksz, _, _) in zip(keys[:-1], SPEC):
        params[name] = _init_conv(k, cout, cin, ksz, ksz)
    params["last"] = _init_linear(keys[-1], 1, 128)
    return params


# ----------------------------------------------------------------------------
# One-time packing: per-layer im2col weight slabs at the true (taps*cin, cout)
# extent, tiny 0/1 selection matrices for stride-2 / size-changing convs, a
# per-tap border-mask stack for the roll-based stride-1 convs, and biases.
# ----------------------------------------------------------------------------
def pack_model(params):
    w_list, s_list, b_rows, meta = [], [], [], []
    mask_cols = []                       # one (64,) 0/1 column per roll-tap
    h = w = 8
    for name, cout, cin, k, stride, pad in SPEC:
        w_oihw = np.asarray(params[name][0], np.float32)     # (cout,cin,k,k)
        bias = np.asarray(params[name][1], np.float32)       # (cout,)
        oh = (h + 2 * pad - k) // stride + 1
        ow = (w + 2 * pad - k) // stride + 1
        m_in, m_out = h * w, oh * ow
        m_in_p, m_out_p = max(8, _rup(m_in, 8)), max(8, _rup(m_out, 8))
        cin_p, cout_p = _rup(cin, 16), _rup(cout, 16)
        ntaps = k * k
        if k == 1:
            mode = "dense"
        elif stride == 1 and (oh, ow) == (h, w):
            mode = "roll"                # tap == static sublane shift + mask
        else:
            mode = "gather"              # stride-2 or size-changing conv
        kdim = cin_p if mode == "dense" else ntaps * cin_p

        # im2col weight: tap-major rows, (cin, cout) block per tap.
        wcat = np.zeros((kdim, cout_p), np.float32)
        for kh in range(k):
            for kw in range(k):
                t = kh * k + kw
                wcat[t * cin_p:t * cin_p + cin, :cout] = w_oihw[:, :, kh, kw].T

        lyr = dict(mode=mode, k=k, w_in=w, pad=pad,
                   m_in=m_in, m_in_p=m_in_p, m_out=m_out, m_out_p=m_out_p,
                   cin_p=cin_p, cout_p=cout_p, kdim=kdim,
                   w_idx=len(w_list), b_row=len(b_rows), act="relu")

        if mode == "gather":
            s = np.zeros((ntaps, m_out_p, m_in_p), np.float32)
            for kh in range(k):
                for kw in range(k):
                    t = kh * k + kw
                    for r in range(oh):
                        for c in range(ow):
                            ih = r * stride - pad + kh
                            iw = c * stride - pad + kw
                            if 0 <= ih < h and 0 <= iw < w:   # zero-padding
                                s[t, r * ow + c, ih * w + iw] = 1.0
            lyr["s_idx"] = len(s_list)
            s_list.append(jnp.asarray(s, jnp.bfloat16))
        elif mode == "roll":
            lyr["mcol"] = len(mask_cols)
            for kh in range(k):
                for kw in range(k):
                    dh, dw = kh - pad, kw - pad
                    col = np.zeros((64,), np.float32)
                    for p in range(m_out):
                        r, c = divmod(p, ow)
                        if 0 <= r + dh < oh and 0 <= c + dw < ow:
                            col[p] = 1.0
                    mask_cols.append(col)

        w_list.append(jnp.asarray(wcat, jnp.bfloat16))
        brow = np.zeros((128,), np.float32)
        brow[:cout] = bias
        b_rows.append(brow)
        meta.append(lyr)
        h, w = oh, ow

    # final Linear(128 -> 1) + tanh; value lands in output column 0.
    w_last = np.asarray(params["last"][0], np.float32)       # (1, 128)
    b_last = np.asarray(params["last"][1], np.float32)       # (1,)
    wcat = np.zeros((128, 128), np.float32)
    wcat[:, 0] = w_last[0]
    meta.append(dict(mode="dense", k=1, w_in=1, pad=0,
                     m_in=1, m_in_p=8, m_out=1, m_out_p=8,
                     cin_p=128, cout_p=128, kdim=128,
                     w_idx=len(w_list), b_row=len(b_rows), act="tanh"))
    w_list.append(jnp.asarray(wcat, jnp.bfloat16))
    brow = np.zeros((128,), np.float32)
    brow[0] = b_last[0]
    b_rows.append(brow)

    b_stack = np.zeros((_rup(len(b_rows), 8), 128), np.float32)
    b_stack[:len(b_rows)] = np.stack(b_rows)
    m_stack = np.zeros((64, 128), np.float32)
    if mask_cols:
        m_stack[:, :len(mask_cols)] = np.stack(mask_cols, axis=1)

    packed = dict(w=tuple(w_list), s=tuple(s_list),
                  b=jnp.asarray(b_stack), m=jnp.asarray(m_stack))
    return packed, tuple(meta)


# ----------------------------------------------------------------------------
# Fused Pallas kernel: whole Model2 forward for one batch element, all in VMEM.
# ----------------------------------------------------------------------------
def _fused_forward_kernel(*refs, layers):
    n_w = len(layers)
    n_s = sum(1 for l in layers if l["mode"] == "gather")
    x_ref = refs[0]                      # (64, 16)  f32 input slab (row=h*8+w)
    w_refs = refs[1:1 + n_w]             # per-layer (kdim, cout_p) bf16
    s_refs = refs[1 + n_w:1 + n_w + n_s]  # per gather-layer (taps, mo_p, mi_p)
    b_ref = refs[1 + n_w + n_s]          # (16, 128) f32 biases (row per layer)
    m_ref = refs[2 + n_w + n_s]          # (64, 128) f32 roll border masks
    o_ref = refs[3 + n_w + n_s]          # (8, 128)  f32 output; value at [0,0]
    g_ref = refs[4 + n_w + n_s]          # (64, 384) f32 im2col scratch

    xf = x_ref[...]                      # activation, f32, shape (m_p, c_p)
    for lyr in layers:                   # static Python unroll (13 layers)
        mo, mop = lyr["m_out"], lyr["m_out_p"]
        cip, cop = lyr["cin_p"], lyr["cout_p"]
        kdim = lyr["kdim"]
        w = w_refs[lyr["w_idx"]][...]

        if lyr["mode"] == "dense":       # 1x1 conv / final linear
            acc = jnp.dot(xf.astype(jnp.bfloat16), w,
                          preferred_element_type=jnp.float32)
        else:
            kk = lyr["k"]
            if lyr["mode"] == "roll":
                # stride-1, shape-preserving conv: each tap is a static
                # sublane shift + precomputed 0/1 border mask (no MXU work).
                w_sp, pad = lyr["w_in"], lyr["pad"]
                for kh in range(kk):
                    for kw in range(kk):
                        t = kh * kk + kw
                        off = (kh - pad) * w_sp + (kw - pad)
                        shifted = xf if off == 0 else jnp.roll(xf, -off, axis=0)
                        col = lyr["mcol"] + t
                        msk = m_ref[0:mop, col:col + 1]          # (mop, 1)
                        g_ref[0:mop, t * cip:(t + 1) * cip] = shifted * msk
            else:
                # stride-2 / size-changing conv: tiny exact 0/1 selection
                # matmuls build the im2col strips.
                xb = xf.astype(jnp.bfloat16)
                s_ref = s_refs[lyr["s_idx"]]
                for t in range(kk * kk):
                    g_ref[0:mop, t * cip:(t + 1) * cip] = jnp.dot(
                        s_ref[t], xb, preferred_element_type=jnp.float32)
            # single MXU matmul per layer over the merged taps.
            g = g_ref[0:mop, 0:kdim].astype(jnp.bfloat16)
            acc = jnp.dot(g, w, preferred_element_type=jnp.float32)

        y = acc + b_ref[lyr["b_row"]:lyr["b_row"] + 1, 0:cop]    # f32 bias
        if lyr["act"] == "relu":
            y = jnp.maximum(y, 0.0)
            if mop > mo:                 # keep padded spatial rows exactly 0
                ridx = lax.broadcasted_iota(jnp.int32, (mop, 1), 0)
                y = jnp.where(ridx < mo, y, 0.0)
        else:
            y = jnp.tanh(y)              # only on the final (8, 128) slab
        xf = y
    o_ref[...] = xf


def make_forward(packed, meta, *, batch):
    w_arrs, s_arrs = packed["w"], packed["s"]
    b_stack, m_stack = packed["b"], packed["m"]
    kernel = functools.partial(_fused_forward_kernel, layers=meta)

    x_rows, x_cols = meta[0]["m_in_p"], meta[0]["cin_p"]      # (64, 16)
    o_rows, o_cols = meta[-1]["m_out_p"], meta[-1]["cout_p"]  # (8, 128)
    g_rows = max(l["m_out_p"] for l in meta)                  # 64
    g_cols = _rup(max(l["kdim"] for l in meta), 128)          # 384

    in_specs = [pl.BlockSpec((None, x_rows, x_cols), lambda b: (b, 0, 0))]
    in_specs += [pl.BlockSpec(a.shape, lambda b: (0, 0)) for a in w_arrs]
    in_specs += [pl.BlockSpec(a.shape, lambda b: (0, 0, 0)) for a in s_arrs]
    in_specs += [pl.BlockSpec(b_stack.shape, lambda b: (0, 0)),
                 pl.BlockSpec(m_stack.shape, lambda b: (0, 0))]

    flops = 0
    for lyr in meta:
        flops += 2 * lyr["m_out_p"] * lyr["kdim"] * lyr["cout_p"]
        if lyr["mode"] == "gather":
            flops += 2 * (lyr["k"] ** 2) * lyr["m_out_p"] * lyr["m_in_p"] * lyr["cin_p"]
    flops *= batch
    bytes_accessed = int(
        batch * (x_rows * x_cols * 4 + o_rows * o_cols * 4)
        + sum(int(np.prod(a.shape)) * 2 for a in w_arrs)
        + sum(int(np.prod(a.shape)) * 2 for a in s_arrs)
        + int(np.prod(b_stack.shape)) * 4 + int(np.prod(m_stack.shape)) * 4)

    call = pl.pallas_call(
        kernel,
        out_shape=jax.ShapeDtypeStruct((batch, o_rows, o_cols), jnp.float32),
        grid=(batch,),
        in_specs=in_specs,
        out_specs=pl.BlockSpec((None, o_rows, o_cols), lambda b: (b, 0, 0)),
        scratch_shapes=[pltpu.VMEM((g_rows, g_cols), jnp.float32)],
        compiler_params=pltpu.CompilerParams(
            dimension_semantics=("parallel",),       # split batch across TCs
            vmem_limit_bytes=32 * 1024 * 1024),
        cost_estimate=pl.CostEstimate(
            flops=flops,
            transcendentals=batch * o_rows * o_cols,
            bytes_accessed=bytes_accessed),
    )

    def forward(x_nchw, w_arrs, s_arrs, b_stack, m_stack):
        bsz, cin, hh, ww = x_nchw.shape
        # NCHW -> per-sample (spatial, channel) slab, zero-padded to (64, 16).
        x = jnp.transpose(x_nchw, (0, 2, 3, 1)).reshape(bsz, hh * ww, cin)
        x = jnp.pad(x, ((0, 0), (0, x_rows - hh * ww), (0, x_cols - cin)))
        out = call(x.astype(jnp.float32), *w_arrs, *s_arrs, b_stack, m_stack)
        return out[:, 0, 0].reshape(bsz, 1)

    return jax.jit(forward)


# ----------------------------------------------------------------------------
# Pure-XLA f32 reference (numerical cross-check of the fused kernel).
# ----------------------------------------------------------------------------
def reference_forward(params, x_nchw):
    x = x_nchw
    for name, _cout, _cin, _k, stride, pad in SPEC:
        w, b = params[name]
        x = jax.lax.conv_general_dilated(
            x, w, window_strides=(stride, stride),
            padding=((pad, pad), (pad, pad)),
            dimension_numbers=("NCHW", "OIHW", "NCHW"))
        x = jax.nn.relu(x + b.reshape(1, -1, 1, 1))
    w_last, b_last = params["last"]
    x = x.reshape(x.shape[0], 128)
    return jnp.tanh(x @ w_last.T + b_last)


if __name__ == "__main__":
    key = jax.random.PRNGKey(0)
    kx, kp = jax.random.split(key)

    # Chess board input: batch=2, 12 piece planes, 8x8 board (NCHW).
    x_nchw = jax.random.normal(kx, (2, 12, 8, 8), dtype=jnp.float32)
    params = init_params(kp)

    packed, meta = pack_model(params)
    forward = make_forward(packed, meta, batch=x_nchw.shape[0])

    out = forward(x_nchw, packed["w"], packed["s"], packed["b"], packed["m"])
    out = jax.block_until_ready(out)

    assert out.shape == (2, 1)
    assert bool(jnp.all(jnp.isfinite(out)))
    assert bool(jnp.all(jnp.abs(out) <= 1.0))

    # Cross-check against the f32 XLA reference (kernel uses bf16 matmuls).
    ref = jax.jit(reference_forward)(params, x_nchw)
    assert float(jnp.max(jnp.abs(out - ref))) < 5e-2

    print("KERNEL_OK")
</pallas_src>

<mosaic_0001>
module attributes {stable_mosaic.version = 11 : i64} {
  func.func @_fused_forward_kernel(%arg0: i32, %arg1: memref<1x64x16xf32, #tpu.memory_space<vmem>>, %arg2: memref<144x16xbf16, #tpu.memory_space<vmem>>, %arg3: memref<144x16xbf16, #tpu.memory_space<vmem>>, %arg4: memref<144x32xbf16, #tpu.memory_space<vmem>>, %arg5: memref<288x32xbf16, #tpu.memory_space<vmem>>, %arg6: memref<288x32xbf16, #tpu.memory_space<vmem>>, %arg7: memref<288x64xbf16, #tpu.memory_space<vmem>>, %arg8: memref<256x64xbf16, #tpu.memory_space<vmem>>, %arg9: memref<256x64xbf16, #tpu.memory_space<vmem>>, %arg10: memref<256x128xbf16, #tpu.memory_space<vmem>>, %arg11: memref<128x128xbf16, #tpu.memory_space<vmem>>, %arg12: memref<128x128xbf16, #tpu.memory_space<vmem>>, %arg13: memref<128x128xbf16, #tpu.memory_space<vmem>>, %arg14: memref<128x128xbf16, #tpu.memory_space<vmem>>, %arg15: memref<9x16x64xbf16, #tpu.memory_space<vmem>>, %arg16: memref<9x8x16xbf16, #tpu.memory_space<vmem>>, %arg17: memref<4x8x8xbf16, #tpu.memory_space<vmem>>, %arg18: memref<4x16x8xbf16, #tpu.memory_space<vmem>>, %arg19: memref<4x8x16xbf16, #tpu.memory_space<vmem>>, %arg20: memref<16x128xf32, #tpu.memory_space<vmem>>, %arg21: memref<64x128xf32, #tpu.memory_space<vmem>>, %arg22: memref<1x8x128xf32, #tpu.memory_space<vmem>>, %arg23: memref<64x384xf32, #tpu.memory_space<vmem>>) attributes {dimension_semantics = [#tpu.dimension_semantics<parallel>], iteration_bounds = array<i64: 2>, scalar_prefetch = 0 : i64, scratch_operands = 1 : i64, tpu.core_type = #tpu.core_type<tc>, window_params = [{transform_indices = @transform_0, window_bounds = array<i64: 1, 64, 16>}, {pipeline_mode = #tpu.pipeline_mode<synchronous>, transform_indices = @transform_1, window_bounds = array<i64: 144, 16>}, {pipeline_mode = #tpu.pipeline_mode<synchronous>, transform_indices = @transform_2, window_bounds = array<i64: 144, 16>}, {pipeline_mode = #tpu.pipeline_mode<synchronous>, transform_indices = @transform_3, window_bounds = array<i64: 144, 32>}, {pipeline_mode = #tpu.pipeline_mode<synchronous>, transform_indices = @transform_4, window_bounds = array<i64: 288, 32>}, {pipeline_mode = #tpu.pipeline_mode<synchronous>, transform_indices = @transform_5, window_bounds = array<i64: 288, 32>}, {pipeline_mode = #tpu.pipeline_mode<synchronous>, transform_indices = @transform_6, window_bounds = array<i64: 288, 64>}, {pipeline_mode = #tpu.pipeline_mode<synchronous>, transform_indices = @transform_7, window_bounds = array<i64: 256, 64>}, {pipeline_mode = #tpu.pipeline_mode<synchronous>, transform_indices = @transform_8, window_bounds = array<i64: 256, 64>}, {pipeline_mode = #tpu.pipeline_mode<synchronous>, transform_indices = @transform_9, window_bounds = array<i64: 256, 128>}, {pipeline_mode = #tpu.pipeline_mode<synchronous>, transform_indices = @transform_10, window_bounds = array<i64: 128, 128>}, {pipeline_mode = #tpu.pipeline_mode<synchronous>, transform_indices = @transform_11, window_bounds = array<i64: 128, 128>}, {pipeline_mode = #tpu.pipeline_mode<synchronous>, transform_indices = @transform_12, window_bounds = array<i64: 128, 128>}, {pipeline_mode = #tpu.pipeline_mode<synchronous>, transform_indices = @transform_13, window_bounds = array<i64: 128, 128>}, {pipeline_mode = #tpu.pipeline_mode<synchronous>, transform_indices = @transform_14, window_bounds = array<i64: 9, 16, 64>}, {pipeline_mode = #tpu.pipeline_mode<synchronous>, transform_indices = @transform_15, window_bounds = array<i64: 9, 8, 16>}, {pipeline_mode = #tpu.pipeline_mode<synchronous>, transform_indices = @transform_16, window_bounds = array<i64: 4, 8, 8>}, {pipeline_mode = #tpu.pipeline_mode<synchronous>, transform_indices = @transform_17, window_bounds = array<i64: 4, 16, 8>}, {pipeline_mode = #tpu.pipeline_mode<synchronous>, transform_indices = @transform_18, window_bounds = array<i64: 4, 8, 16>}, {pipeline_mode = #tpu.pipeline_mode<synchronous>, transform_indices = @transform_19, window_bounds = array<i64: 16, 128>}, {pipeline_mode = #tpu.pipeline_mode<synchronous>, transform_indices = @transform_20, window_bounds = array<i64: 64, 128>}, {transform_indices = @transform_21, window_bounds = array<i64: 1, 8, 128>}]} {
    %c0 = arith.constant 0 : index
    %c0_0 = arith.constant 0 : index
    %c0_1 = arith.constant 0 : index
    %0 = vector.load %arg1[%c0, %c0_0, %c0_1] : memref<1x64x16xf32, #tpu.memory_space<vmem>>, vector<1x64x16xf32>
    %1 = vector.shape_cast %0 : vector<1x64x16xf32> to vector<64x16xf32>
    %c0_2 = arith.constant 0 : index
    %c0_3 = arith.constant 0 : index
    %2 = vector.load %arg2[%c0_2, %c0_3] : memref<144x16xbf16, #tpu.memory_space<vmem>>, vector<144x16xbf16>
    %3 = vector.extract_strided_slice %1 {offsets = [55, 0], sizes = [9, 16], strides = [1, 1]} : vector<64x16xf32> to vector<9x16xf32>
    %4 = vector.extract_strided_slice %1 {offsets = [0, 0], sizes = [55, 16], strides = [1, 1]} : vector<64x16xf32> to vector<55x16xf32>
    %5 = tpu.concatenate %3, %4 in 0 : vector<9x16xf32>, vector<55x16xf32> -> vector<64x16xf32>
    %c0_4 = arith.constant 0 : index
    %c0_5 = arith.constant 0 : index
    %6 = vector.load %arg21[%c0_4, %c0_5] : memref<64x128xf32, #tpu.memory_space<vmem>>, vector<64x1xf32>
    %7 = vector.broadcast %6 : vector<64x1xf32> to vector<64x16xf32>
    %8 = arith.mulf %5, %7 : vector<64x16xf32>
    %c0_6 = arith.constant 0 : index
    %c0_7 = arith.constant 0 : index
    %9 = vector.load %arg23[%c0_6, %c0_7] : memref<64x384xf32, #tpu.memory_space<vmem>>, vector<64x16xf32>
    tpu.vector_store %arg23[%c0_6, %c0_7], %8 {strides = array<i32>} : memref<64x384xf32, #tpu.memory_space<vmem>>, vector<64x16xf32>,
    %10 = vector.extract_strided_slice %1 {offsets = [56, 0], sizes = [8, 16], strides = [1, 1]} : vector<64x16xf32> to vector<8x16xf32>
    %11 = vector.extract_strided_slice %1 {offsets = [0, 0], sizes = [56, 16], strides = [1, 1]} : vector<64x16xf32> to vector<56x16xf32>
    %12 = tpu.concatenate %10, %11 in 0 : vector<8x16xf32>, vector<56x16xf32> -> vector<64x16xf32>
    %c0_8 = arith.constant 0 : index
    %c1 = arith.constant 1 : index
    %13 = vector.load %arg21[%c0_8, %c1] : memref<64x128xf32, #tpu.memory_space<vmem>>, vector<64x1xf32>
    %14 = vector.broadcast %13 : vector<64x1xf32> to vector<64x16xf32>
    %15 = arith.mulf %12, %14 : vector<64x16xf32>
    %c0_9 = arith.constant 0 : index
    %c16 = arith.constant 16 : index
    %16 = vector.load %arg23[%c0_9, %c16] : memref<64x384xf32, #tpu.memory_space<vmem>>, vector<64x16xf32>
    tpu.vector_store %arg23[%c0_9, %c16], %15 {strides = array<i32>} : memref<64x384xf32, #tpu.memory_space<vmem>>, vector<64x16xf32>,
    %17 = vector.extract_strided_slice %1 {offsets = [57, 0], sizes = [7, 16], strides = [1, 1]} : vector<64x16xf32> to vector<7x16xf32>
    %18 = vector.extract_strided_slice %1 {offsets = [0, 0], sizes = [57, 16], strides = [1, 1]} : vector<64x16xf32> to vector<57x16xf32>
    %19 = tpu.concatenate %17, %18 in 0 : vector<7x16xf32>, vector<57x16xf32> -> vector<64x16xf32>
    %c0_10 = arith.constant 0 : index
    %c2 = arith.constant 2 : index
    %20 = vector.load %arg21[%c0_10, %c2] : memref<64x128xf32, #tpu.memory_space<vmem>>, vector<64x1xf32>
    %21 = vector.broadcast %20 : vector<64x1xf32> to vector<64x16xf32>
    %22 = arith.mulf %19, %21 : vector<64x16xf32>
    %c0_11 = arith.constant 0 : index
    %c32 = arith.constant 32 : index
    %23 = vector.load %arg23[%c0_11, %c32] : memref<64x384xf32, #tpu.memory_space<vmem>>, vector<64x16xf32>
    tpu.vector_store %arg23[%c0_11, %c32], %22 {strides = array<i32>} : memref<64x384xf32, #tpu.memory_space<vmem>>, vector<64x16xf32>,
    %24 = vector.extract_strided_slice %1 {offsets = [63, 0], sizes = [1, 16], strides = [1, 1]} : vector<64x16xf32> to vector<1x16xf32>
    %25 = vector.extract_strided_slice %1 {offsets = [0, 0], sizes = [63, 16], strides = [1, 1]} : vector<64x16xf32> to vector<63x16xf32>
    %26 = tpu.concatenate %24, %25 in 0 : vector<1x16xf32>, vector<63x16xf32> -> vector<64x16xf32>
    %c0_12 = arith.constant 0 : index
    %c3 = arith.constant 3 : index
    %27 = vector.load %arg21[%c0_12, %c3] : memref<64x128xf32, #tpu.memory_space<vmem>>, vector<64x1xf32>
    %28 = vector.broadcast %27 : vector<64x1xf32> to vector<64x16xf32>
    %29 = arith.mulf %26, %28 : vector<64x16xf32>
    %c0_13 = arith.constant 0 : index
    %c48 = arith.constant 48 : index
    %30 = vector.load %arg23[%c0_13, %c48] : memref<64x384xf32, #tpu.memory_space<vmem>>, vector<64x16xf32>
    tpu.vector_store %arg23[%c0_13, %c48], %29 {strides = array<i32>} : memref<64x384xf32, #tpu.memory_space<vmem>>, vector<64x16xf32>,
    %c0_14 = arith.constant 0 : index
    %c4 = arith.constant 4 : index
    %31 = vector.load %arg21[%c0_14, %c4] : memref<64x128xf32, #tpu.memory_space<vmem>>, vector<64x1xf32>
    %32 = vector.broadcast %31 : vector<64x1xf32> to vector<64x16xf32>
    %33 = arith.mulf %1, %32 : vector<64x16xf32>
    %c0_15 = arith.constant 0 : index
    %c64 = arith.constant 64 : index
    %34 = vector.load %arg23[%c0_15, %c64] : memref<64x384xf32, #tpu.memory_space<vmem>>, vector<64x16xf32>
    tpu.vector_store %arg23[%c0_15, %c64], %33 {strides = array<i32>} : memref<64x384xf32, #tpu.memory_space<vmem>>, vector<64x16xf32>,
    %35 = vector.extract_strided_slice %1 {offsets = [1, 0], sizes = [63, 16], strides = [1, 1]} : vector<64x16xf32> to vector<63x16xf32>
    %36 = vector.extract_strided_slice %1 {offsets = [0, 0], sizes = [1, 16], strides = [1, 1]} : vector<64x16xf32> to vector<1x16xf32>
    %37 = tpu.concatenate %35, %36 in 0 : vector<63x16xf32>, vector<1x16xf32> -> vector<64x16xf32>
    %c0_16 = arith.constant 0 : index
    %c5 = arith.constant 5 : index
    %38 = vector.load %arg21[%c0_16, %c5] : memref<64x128xf32, #tpu.memory_space<vmem>>, vector<64x1xf32>
    %39 = vector.broadcast %38 : vector<64x1xf32> to vector<64x16xf32>
    %40 = arith.mulf %37, %39 : vector<64x16xf32>
    %c0_17 = arith.constant 0 : index
    %c80 = arith.constant 80 : index
    %41 = vector.load %arg23[%c0_17, %c80] : memref<64x384xf32, #tpu.memory_space<vmem>>, vector<64x16xf32>
    tpu.vector_store %arg23[%c0_17, %c80], %40 {strides = array<i32>} : memref<64x384xf32, #tpu.memory_space<vmem>>, vector<64x16xf32>,
    %42 = vector.extract_strided_slice %1 {offsets = [7, 0], sizes = [57, 16], strides = [1, 1]} : vector<64x16xf32> to vector<57x16xf32>
    %43 = vector.extract_strided_slice %1 {offsets = [0, 0], sizes = [7, 16], strides = [1, 1]} : vector<64x16xf32> to vector<7x16xf32>
    %44 = tpu.concatenate %42, %43 in 0 : vector<57x16xf32>, vector<7x16xf32> -> vector<64x16xf32>
    %c0_18 = arith.constant 0 : index
    %c6 = arith.constant 6 : index
    %45 = vector.load %arg21[%c0_18, %c6] : memref<64x128xf32, #tpu.memory_space<vmem>>, vector<64x1xf32>
    %46 = vector.broadcast %45 : vector<64x1xf32> to vector<64x16xf32>
    %47 = arith.mulf %44, %46 : vector<64x16xf32>
    %c0_19 = arith.constant 0 : index
    %c96 = arith.constant 96 : index
    %48 = vector.load %arg23[%c0_19, %c96] : memref<64x384xf32, #tpu.memory_space<vmem>>, vector<64x16xf32>
    tpu.vector_store %arg23[%c0_19, %c96], %47 {strides = array<i32>} : memref<64x384xf32, #tpu.memory_space<vmem>>, vector<64x16xf32>,
    %49 = vector.extract_strided_slice %1 {offsets = [8, 0], sizes = [56, 16], strides = [1, 1]} : vector<64x16xf32> to vector<56x16xf32>
    %50 = vector.extract_strided_slice %1 {offsets = [0, 0], sizes = [8, 16], strides = [1, 1]} : vector<64x16xf32> to vector<8x16xf32>
    %51 = tpu.concatenate %49, %50 in 0 : vector<56x16xf32>, vector<8x16xf32> -> vector<64x16xf32>
    %c0_20 = arith.constant 0 : index
    %c7 = arith.constant 7 : index
    %52 = vector.load %arg21[%c0_20, %c7] : memref<64x128xf32, #tpu.memory_space<vmem>>, vector<64x1xf32>
    %53 = vector.broadcast %52 : vector<64x1xf32> to vector<64x16xf32>
    %54 = arith.mulf %51, %53 : vector<64x16xf32>
    %c0_21 = arith.constant 0 : index
    %c112 = arith.constant 112 : index
    %55 = vector.load %arg23[%c0_21, %c112] : memref<64x384xf32, #tpu.memory_space<vmem>>, vector<64x16xf32>
    tpu.vector_store %arg23[%c0_21, %c112], %54 {strides = array<i32>} : memref<64x384xf32, #tpu.memory_space<vmem>>, vector<64x16xf32>,
    %56 = vector.extract_strided_slice %1 {offsets = [9, 0], sizes = [55, 16], strides = [1, 1]} : vector<64x16xf32> to vector<55x16xf32>
    %57 = vector.extract_strided_slice %1 {offsets = [0, 0], sizes = [9, 16], strides = [1, 1]} : vector<64x16xf32> to vector<9x16xf32>
    %58 = tpu.concatenate %56, %57 in 0 : vector<55x16xf32>, vector<9x16xf32> -> vector<64x16xf32>
    %c0_22 = arith.constant 0 : index
    %c8 = arith.constant 8 : index
    %59 = vector.load %arg21[%c0_22, %c8] : memref<64x128xf32, #tpu.memory_space<vmem>>, vector<64x1xf32>
    %60 = vector.broadcast %59 : vector<64x1xf32> to vector<64x16xf32>
    %61 = arith.mulf %58, %60 : vector<64x16xf32>
    %c0_23 = arith.constant 0 : index
    %c128 = arith.constant 128 : index
    %62 = vector.load %arg23[%c0_23, %c128] : memref<64x384xf32, #tpu.memory_space<vmem>>, vector<64x16xf32>
    tpu.vector_store %arg23[%c0_23, %c128], %61 {strides = array<i32>} : memref<64x384xf32, #tpu.memory_space<vmem>>, vector<64x16xf32>,
    %c0_24 = arith.constant 0 : index
    %c0_25 = arith.constant 0 : index
    %63 = vector.load %arg23[%c0_24, %c0_25] : memref<64x384xf32, #tpu.memory_space<vmem>>, vector<64x144xf32>
    %64 = arith.truncf %63 : vector<64x144xf32> to vector<64x144xbf16>
    %cst = arith.constant dense<0.000000e+00> : vector<64x16xf32>
    %65 = tpu.matmul %64, %2, %cst {dimension_numbers = #tpu.dot_dimension_numbers<[1], [0], [0], [1], [0, 0, 1, 1], [], []>} : vector<64x144xbf16>, vector<144x16xbf16>, vector<64x16xf32> -> vector<64x16xf32>
    %c0_26 = arith.constant 0 : index
    %c0_27 = arith.constant 0 : index
    %66 = vector.load %arg20[%c0_26, %c0_27] : memref<16x128xf32, #tpu.memory_space<vmem>>, vector<1x16xf32>
    %67 = vector.broadcast %66 : vector<1x16xf32> to vector<64x16xf32>
    %68 = arith.addf %65, %67 : vector<64x16xf32>
    %cst_28 = arith.constant 0.000000e+00 : f32
    %69 = vector.broadcast %cst_28 : f32 to vector<64x16xf32>
    %70 = arith.maximumf %68, %69 : vector<64x16xf32>
    %c0_29 = arith.constant 0 : index
    %c0_30 = arith.constant 0 : index
    %71 = vector.load %arg3[%c0_29, %c0_30] : memref<144x16xbf16, #tpu.memory_space<vmem>>, vector<144x16xbf16>
    %72 = vector.extract_strided_slice %70 {offsets = [55, 0], sizes = [9, 16], strides = [1, 1]} : vector<64x16xf32> to vector<9x16xf32>
    %73 = vector.extract_strided_slice %70 {offsets = [0, 0], sizes = [55, 16], strides = [1, 1]} : vector<64x16xf32> to vector<55x16xf32>
    %74 = tpu.concatenate %72, %73 in 0 : vector<9x16xf32>, vector<55x16xf32> -> vector<64x16xf32>
    %c0_31 = arith.constant 0 : index
    %c9 = arith.constant 9 : index
    %75 = vector.load %arg21[%c0_31, %c9] : memref<64x128xf32, #tpu.memory_space<vmem>>, vector<64x1xf32>
    %76 = vector.broadcast %75 : vector<64x1xf32> to vector<64x16xf32>
    %77 = arith.mulf %74, %76 : vector<64x16xf32>
    %c0_32 = arith.constant 0 : index
    %c0_33 = arith.constant 0 : index
    %78 = vector.load %arg23[%c0_32, %c0_33] : memref<64x384xf32, #tpu.memory_space<vmem>>, vector<64x16xf32>
    tpu.vector_store %arg23[%c0_32, %c0_33], %77 {strides = array<i32>} : memref<64x384xf32, #tpu.memory_space<vmem>>, vector<64x16xf32>,
    %79 = vector.extract_strided_slice %70 {offsets = [56, 0], sizes = [8, 16], strides = [1, 1]} : vector<64x16xf32> to vector<8x16xf32>
    %80 = vector.extract_strided_slice %70 {offsets = [0, 0], sizes = [56, 16], strides = [1, 1]} : vector<64x16xf32> to vector<56x16xf32>
    %81 = tpu.concatenate %79, %80 in 0 : vector<8x16xf32>, vector<56x16xf32> -> vector<64x16xf32>
    %c0_34 = arith.constant 0 : index
    %c10 = arith.constant 10 : index
    %82 = vector.load %arg21[%c0_34, %c10] : memref<64x128xf32, #tpu.memory_space<vmem>>, vector<64x1xf32>
    %83 = vector.broadcast %82 : vector<64x1xf32> to vector<64x16xf32>
    %84 = arith.mulf %81, %83 : vector<64x16xf32>
    %c0_35 = arith.constant 0 : index
    %c16_36 = arith.constant 16 : index
    %85 = vector.load %arg23[%c0_35, %c16_36] : memref<64x384xf32, #tpu.memory_space<vmem>>, vector<64x16xf32>
    tpu.vector_store %arg23[%c0_35, %c16_36], %84 {strides = array<i32>} : memref<64x384xf32, #tpu.memory_space<vmem>>, vector<64x16xf32>,
    %86 = vector.extract_strided_slice %70 {offsets = [57, 0], sizes = [7, 16], strides = [1, 1]} : vector<64x16xf32> to vector<7x16xf32>
    %87 = vector.extract_strided_slice %70 {offsets = [0, 0], sizes = [57, 16], strides = [1, 1]} : vector<64x16xf32> to vector<57x16xf32>
    %88 = tpu.concatenate %86, %87 in 0 : vector<7x16xf32>, vector<57x16xf32> -> vector<64x16xf32>
    %c0_37 = arith.constant 0 : index
    %c11 = arith.constant 11 : index
    %89 = vector.load %arg21[%c0_37, %c11] : memref<64x128xf32, #tpu.memory_space<vmem>>, vector<64x1xf32>
    %90 = vector.broadcast %89 : vector<64x1xf32> to vector<64x16xf32>
    %91 = arith.mulf %88, %90 : vector<64x16xf32>
    %c0_38 = arith.constant 0 : index
    %c32_39 = arith.constant 32 : index
    %92 = vector.load %arg23[%c0_38, %c32_39] : memref<64x384xf32, #tpu.memory_space<vmem>>, vector<64x16xf32>
    tpu.vector_store %arg23[%c0_38, %c32_39], %91 {strides = array<i32>} : memref<64x384xf32, #tpu.memory_space<vmem>>, vector<64x16xf32>,
    %93 = vector.extract_strided_slice %70 {offsets = [63, 0], sizes = [1, 16], strides = [1, 1]} : vector<64x16xf32> to vector<1x16xf32>
    %94 = vector.extract_strided_slice %70 {offsets = [0, 0], sizes = [63, 16], strides = [1, 1]} : vector<64x16xf32> to vector<63x16xf32>
    %95 = tpu.concatenate %93, %94 in 0 : vector<1x16xf32>, vector<63x16xf32> -> vector<64x16xf32>
    %c0_40 = arith.constant 0 : index
    %c12 = arith.constant 12 : index
    %96 = vector.load %arg21[%c0_40, %c12] : memref<64x128xf32, #tpu.memory_space<vmem>>, vector<64x1xf32>
    %97 = vector.broadcast %96 : vector<64x1xf32> to vector<64x16xf32>
    %98 = arith.mulf %95, %97 : vector<64x16xf32>
    %c0_41 = arith.constant 0 : index
    %c48_42 = arith.constant 48 : index
    %99 = vector.load %arg23[%c0_41, %c48_42] : memref<64x384xf32, #tpu.memory_space<vmem>>, vector<64x16xf32>
    tpu.vector_store %arg23[%c0_41, %c48_42], %98 {strides = array<i32>} : memref<64x384xf32, #tpu.memory_space<vmem>>, vector<64x16xf32>,
    %c0_43 = arith.constant 0 : index
    %c13 = arith.constant 13 : index
    %100 = vector.load %arg21[%c0_43, %c13] : memref<64x128xf32, #tpu.memory_space<vmem>>, vector<64x1xf32>
    %101 = vector.broadcast %100 : vector<64x1xf32> to vector<64x16xf32>
    %102 = arith.mulf %70, %101 : vector<64x16xf32>
    %c0_44 = arith.constant 0 : index
    %c64_45 = arith.constant 64 : index
    %103 = vector.load %arg23[%c0_44, %c64_45] : memref<64x384xf32, #tpu.memory_space<vmem>>, vector<64x16xf32>
    tpu.vector_store %arg23[%c0_44, %c64_45], %102 {strides = array<i32>} : memref<64x384xf32, #tpu.memory_space<vmem>>, vector<64x16xf32>,
    %104 = vector.extract_strided_slice %70 {offsets = [1, 0], sizes = [63, 16], strides = [1, 1]} : vector<64x16xf32> to vector<63x16xf32>
    %105 = vector.extract_strided_slice %70 {offsets = [0, 0], sizes = [1, 16], strides = [1, 1]} : vector<64x16xf32> to vector<1x16xf32>
    %106 = tpu.concatenate %104, %105 in 0 : vector<63x16xf32>, vector<1x16xf32> -> vector<64x16xf32>
    %c0_46 = arith.constant 0 : index
    %c14 = arith.constant 14 : index
    %107 = vector.load %arg21[%c0_46, %c14] : memref<64x128xf32, #tpu.memory_space<vmem>>, vector<64x1xf32>
    %108 = vector.broadcast %107 : vector<64x1xf32> to vector<64x16xf32>
    %109 = arith.mulf %106, %108 : vector<64x16xf32>
    %c0_47 = arith.constant 0 : index
    %c80_48 = arith.constant 80 : index
    %110 = vector.load %arg23[%c0_47, %c80_48] : memref<64x384xf32, #tpu.memory_space<vmem>>, vector<64x16xf32>
    tpu.vector_store %arg23[%c0_47, %c80_48], %109 {strides = array<i32>} : memref<64x384xf32, #tpu.memory_space<vmem>>, vector<64x16xf32>,
    %111 = vector.extract_strided_slice %70 {offsets = [7, 0], sizes = [57, 16], strides = [1, 1]} : vector<64x16xf32> to vector<57x16xf32>
    %112 = vector.extract_strided_slice %70 {offsets = [0, 0], sizes = [7, 16], strides = [1, 1]} : vector<64x16xf32> to vector<7x16xf32>
    %113 = tpu.concatenate %111, %112 in 0 : vector<57x16xf32>, vector<7x16xf32> -> vector<64x16xf32>
    %c0_49 = arith.constant 0 : index
    %c15 = arith.constant 15 : index
    %114 = vector.load %arg21[%c0_49, %c15] : memref<64x128xf32, #tpu.memory_space<vmem>>, vector<64x1xf32>
    %115 = vector.broadcast %114 : vector<64x1xf32> to vector<64x16xf32>
    %116 = arith.mulf %113, %115 : vector<64x16xf32>
    %c0_50 = arith.constant 0 : index
    %c96_51 = arith.constant 96 : index
    %117 = vector.load %arg23[%c0_50, %c96_51] : memref<64x384xf32, #tpu.memory_space<vmem>>, vector<64x16xf32>
    tpu.vector_store %arg23[%c0_50, %c96_51], %116 {strides = array<i32>} : memref<64x384xf32, #tpu.memory_space<vmem>>, vector<64x16xf32>,
    %118 = vector.extract_strided_slice %70 {offsets = [8, 0], sizes = [56, 16], strides = [1, 1]} : vector<64x16xf32> to vector<56x16xf32>
    %119 = vector.extract_strided_slice %70 {offsets = [0, 0], sizes = [8, 16], strides = [1, 1]} : vector<64x16xf32> to vector<8x16xf32>
    %120 = tpu.concatenate %118, %119 in 0 : vector<56x16xf32>, vector<8x16xf32> -> vector<64x16xf32>
    %c0_52 = arith.constant 0 : index
    %c16_53 = arith.constant 16 : index
    %121 = vector.load %arg21[%c0_52, %c16_53] : memref<64x128xf32, #tpu.memory_space<vmem>>, vector<64x1xf32>
    %122 = vector.broadcast %121 : vector<64x1xf32> to vector<64x16xf32>
    %123 = arith.mulf %120, %122 : vector<64x16xf32>
    %c0_54 = arith.constant 0 : index
    %c112_55 = arith.constant 112 : index
    %124 = vector.load %arg23[%c0_54, %c112_55] : memref<64x384xf32, #tpu.memory_space<vmem>>, vector<64x16xf32>
    tpu.vector_store %arg23[%c0_54, %c112_55], %123 {strides = array<i32>} : memref<64x384xf32, #tpu.memory_space<vmem>>, vector<64x16xf32>,
    %125 = vector.extract_strided_slice %70 {offsets = [9, 0], sizes = [55, 16], strides = [1, 1]} : vector<64x16xf32> to vector<55x16xf32>
    %126 = vector.extract_strided_slice %70 {offsets = [0, 0], sizes = [9, 16], strides = [1, 1]} : vector<64x16xf32> to vector<9x16xf32>
    %127 = tpu.concatenate %125, %126 in 0 : vector<55x16xf32>, vector<9x16xf32> -> vector<64x16xf32>
    %c0_56 = arith.constant 0 : index
    %c17 = arith.constant 17 : index
    %128 = vector.load %arg21[%c0_56, %c17] : memref<64x128xf32, #tpu.memory_space<vmem>>, vector<64x1xf32>
    %129 = vector.broadcast %128 : vector<64x1xf32> to vector<64x16xf32>
    %130 = arith.mulf %127, %129 : vector<64x16xf32>
    %c0_57 = arith.constant 0 : index
    %c128_58 = arith.constant 128 : index
    %131 = vector.load %arg23[%c0_57, %c128_58] : memref<64x384xf32, #tpu.memory_space<vmem>>, vector<64x16xf32>
    tpu.vector_store %arg23[%c0_57, %c128_58], %130 {strides = array<i32>} : memref<64x384xf32, #tpu.memory_space<vmem>>, vector<64x16xf32>,
    %c0_59 = arith.constant 0 : index
    %c0_60 = arith.constant 0 : index
    %132 = vector.load %arg23[%c0_59, %c0_60] : memref<64x384xf32, #tpu.memory_space<vmem>>, vector<64x144xf32>
    %133 = arith.truncf %132 : vector<64x144xf32> to vector<64x144xbf16>
    %cst_61 = arith.constant dense<0.000000e+00> : vector<64x16xf32>
    %134 = tpu.matmul %133, %71, %cst_61 {dimension_numbers = #tpu.dot_dimension_numbers<[1], [0], [0], [1], [0, 0, 1, 1], [], []>} : vector<64x144xbf16>, vector<144x16xbf16>, vector<64x16xf32> -> vector<64x16xf32>
    %c1_62 = arith.constant 1 : index
    %c0_63 = arith.constant 0 : index
    %135 = vector.load %arg20[%c1_62, %c0_63] : memref<16x128xf32, #tpu.memory_space<vmem>>, vector<1x16xf32>
    %136 = vector.broadcast %135 : vector<1x16xf32> to vector<64x16xf32>
    %137 = arith.addf %134, %136 : vector<64x16xf32>
    %cst_64 = arith.constant 0.000000e+00 : f32
    %138 = vector.broadcast %cst_64 : f32 to vector<64x16xf32>
    %139 = arith.maximumf %137, %138 : vector<64x16xf32>
    %c0_65 = arith.constant 0 : index
    %c0_66 = arith.constant 0 : index
    %140 = vector.load %arg4[%c0_65, %c0_66] : memref<144x32xbf16, #tpu.memory_space<vmem>>, vector<144x32xbf16>
    %141 = arith.truncf %139 : vector<64x16xf32> to vector<64x16xbf16>
    %c0_67 = arith.constant 0 : index
    %c0_68 = arith.constant 0 : index
    %c0_69 = arith.constant 0 : index
    %142 = vector.load %arg15[%c0_67, %c0_68, %c0_69] : memref<9x16x64xbf16, #tpu.memory_space<vmem>>, vector<1x16x64xbf16>
    %143 = vector.shape_cast %142 : vector<1x16x64xbf16> to vector<16x64xbf16>
    %cst_70 = arith.constant dense<0.000000e+00> : vector<16x16xf32>
    %144 = tpu.matmul %143, %141, %cst_70 {dimension_numbers = #tpu.dot_dimension_numbers<[1], [0], [0], [1], [0, 0, 1, 1], [], []>} : vector<16x64xbf16>, vector<64x16xbf16>, vector<16x16xf32> -> vector<16x16xf32>
    %c0_71 = arith.constant 0 : index
    %c0_72 = arith.constant 0 : index
    %145 = vector.load %arg23[%c0_71, %c0_72] : memref<64x384xf32, #tpu.memory_space<vmem>>, vector<16x16xf32>
    tpu.vector_store %arg23[%c0_71, %c0_72], %144 {strides = array<i32>} : memref<64x384xf32, #tpu.memory_space<vmem>>, vector<16x16xf32>,
    %c1_73 = arith.constant 1 : index
    %c0_74 = arith.constant 0 : index
    %c0_75 = arith.constant 0 : index
    %146 = vector.load %arg15[%c1_73, %c0_74, %c0_75] : memref<9x16x64xbf16, #tpu.memory_space<vmem>>, vector<1x16x64xbf16>
    %147 = vector.shape_cast %146 : vector<1x16x64xbf16> to vector<16x64xbf16>
    %cst_76 = arith.constant dense<0.000000e+00> : vector<16x16xf32>
    %148 = tpu.matmul %147, %141, %cst_76 {dimension_numbers = #tpu.dot_dimension_numbers<[1], [0], [0], [1], [0, 0, 1, 1], [], []>} : vector<16x64xbf16>, vector<64x16xbf16>, vector<16x16xf32> -> vector<16x16xf32>
    %c0_77 = arith.constant 0 : index
    %c16_78 = arith.constant 16 : index
    %149 = vector.load %arg23[%c0_77, %c16_78] : memref<64x384xf32, #tpu.memory_space<vmem>>, vector<16x16xf32>
    tpu.vector_store %arg23[%c0_77, %c16_78], %148 {strides = array<i32>} : memref<64x384xf32, #tpu.memory_space<vmem>>, vector<16x16xf32>,
    %c2_79 = arith.constant 2 : index
    %c0_80 = arith.constant 0 : index
    %c0_81 = arith.constant 0 : index
    %150 = vector.load %arg15[%c2_79, %c0_80, %c0_81] : memref<9x16x64xbf16, #tpu.memory_space<vmem>>, vector<1x16x64xbf16>
    %151 = vector.shape_cast %150 : vector<1x16x64xbf16> to vector<16x64xbf16>
    %cst_82 = arith.constant dense<0.000000e+00> : vector<16x16xf32>
    %152 = tpu.matmul %151, %141, %cst_82 {dimension_numbers = #tpu.dot_dimension_numbers<[1], [0], [0], [1], [0, 0, 1, 1], [], []>} : vector<16x64xbf16>, vector<64x16xbf16>, vector<16x16xf32> -> vector<16x16xf32>
    %c0_83 = arith.constant 0 : index
    %c32_84 = arith.constant 32 : index
    %153 = vector.load %arg23[%c0_83, %c32_84] : memref<64x384xf32, #tpu.memory_space<vmem>>, vector<16x16xf32>
    tpu.vector_store %arg23[%c0_83, %c32_84], %152 {strides = array<i32>} : memref<64x384xf32, #tpu.memory_space<vmem>>, vector<16x16xf32>,
    %c3_85 = arith.constant 3 : index
    %c0_86 = arith.constant 0 : index
    %c0_87 = arith.constant 0 : index
    %154 = vector.load %arg15[%c3_85, %c0_86, %c0_87] : memref<9x16x64xbf16, #tpu.memory_space<vmem>>, vector<1x16x64xbf16>
    %155 = vector.shape_cast %154 : vector<1x16x64xbf16> to vector<16x64xbf16>
    %cst_88 = arith.constant dense<0.000000e+00> : vector<16x16xf32>
    %156 = tpu.matmul %155, %141, %cst_88 {dimension_numbers = #tpu.dot_dimension_numbers<[1], [0], [0], [1], [0, 0, 1, 1], [], []>} : vector<16x64xbf16>, vector<64x16xbf16>, vector<16x16xf32> -> vector<16x16xf32>
    %c0_89 = arith.constant 0 : index
    %c48_90 = arith.constant 48 : index
    %157 = vector.load %arg23[%c0_89, %c48_90] : memref<64x384xf32, #tpu.memory_space<vmem>>, vector<16x16xf32>
    tpu.vector_store %arg23[%c0_89, %c48_90], %156 {strides = array<i32>} : memref<64x384xf32, #tpu.memory_space<vmem>>, vector<16x16xf32>,
    %c4_91 = arith.constant 4 : index
    %c0_92 = arith.constant 0 : index
    %c0_93 = arith.constant 0 : index
    %158 = vector.load %arg15[%c4_91, %c0_92, %c0_93] : memref<9x16x64xbf16, #tpu.memory_space<vmem>>, vector<1x16x64xbf16>
    %159 = vector.shape_cast %158 : vector<1x16x64xbf16> to vector<16x64xbf16>
    %cst_94 = arith.constant dense<0.000000e+00> : vector<16x16xf32>
    %160 = tpu.matmul %159, %141, %cst_94 {dimension_numbers = #tpu.dot_dimension_numbers<[1], [0], [0], [1], [0, 0, 1, 1], [], []>} : vector<16x64xbf16>, vector<64x16xbf16>, vector<16x16xf32> -> vector<16x16xf32>
    %c0_95 = arith.constant 0 : index
    %c64_96 = arith.constant 64 : index
    %161 = vector.load %arg23[%c0_95, %c64_96] : memref<64x384xf32, #tpu.memory_space<vmem>>, vector<16x16xf32>
    tpu.vector_store %arg23[%c0_95, %c64_96], %160 {strides = array<i32>} : memref<64x384xf32, #tpu.memory_space<vmem>>, vector<16x16xf32>,
    %c5_97 = arith.constant 5 : index
    %c0_98 = arith.constant 0 : index
    %c0_99 = arith.constant 0 : index
    %162 = vector.load %arg15[%c5_97, %c0_98, %c0_99] : memref<9x16x64xbf16, #tpu.memory_space<vmem>>, vector<1x16x64xbf16>
    %163 = vector.shape_cast %162 : vector<1x16x64xbf16> to vector<16x64xbf16>
    %cst_100 = arith.constant dense<0.000000e+00> : vector<16x16xf32>
    %164 = tpu.matmul %163, %141, %cst_100 {dimension_numbers = #tpu.dot_dimension_numbers<[1], [0], [0], [1], [0, 0, 1, 1], [], []>} : vector<16x64xbf16>, vector<64x16xbf16>, vector<16x16xf32> -> vector<16x16xf32>
    %c0_101 = arith.constant 0 : index
    %c80_102 = arith.constant 80 : index
    %165 = vector.load %arg23[%c0_101, %c80_102] : memref<64x384xf32, #tpu.memory_space<vmem>>, vector<16x16xf32>
    tpu.vector_store %arg23[%c0_101, %c80_102], %164 {strides = array<i32>} : memref<64x384xf32, #tpu.memory_space<vmem>>, vector<16x16xf32>,
    %c6_103 = arith.constant 6 : index
    %c0_104 = arith.constant 0 : index
    %c0_105 = arith.constant 0 : index
    %166 = vector.load %arg15[%c6_103, %c0_104, %c0_105] : memref<9x16x64xbf16, #tpu.memory_space<vmem>>, vector<1x16x64xbf16>
    %167 = vector.shape_cast %166 : vector<1x16x64xbf16> to vector<16x64xbf16>
    %cst_106 = arith.constant dense<0.000000e+00> : vector<16x16xf32>
    %168 = tpu.matmul %167, %141, %cst_106 {dimension_numbers = #tpu.dot_dimension_numbers<[1], [0], [0], [1], [0, 0, 1, 1], [], []>} : vector<16x64xbf16>, vector<64x16xbf16>, vector<16x16xf32> -> vector<16x16xf32>
    %c0_107 = arith.constant 0 : index
    %c96_108 = arith.constant 96 : index
    %169 = vector.load %arg23[%c0_107, %c96_108] : memref<64x384xf32, #tpu.memory_space<vmem>>, vector<16x16xf32>
    tpu.vector_store %arg23[%c0_107, %c96_108], %168 {strides = array<i32>} : memref<64x384xf32, #tpu.memory_space<vmem>>, vector<16x16xf32>,
    %c7_109 = arith.constant 7 : index
    %c0_110 = arith.constant 0 : index
    %c0_111 = arith.constant 0 : index
    %170 = vector.load %arg15[%c7_109, %c0_110, %c0_111] : memref<9x16x64xbf16, #tpu.memory_space<vmem>>, vector<1x16x64xbf16>
    %171 = vector.shape_cast %170 : vector<1x16x64xbf16> to vector<16x64xbf16>
    %cst_112 = arith.constant dense<0.000000e+00> : vector<16x16xf32>
    %172 = tpu.matmul %171, %141, %cst_112 {dimension_numbers = #tpu.dot_dimension_numbers<[1], [0], [0], [1], [0, 0, 1, 1], [], []>} : vector<16x64xbf16>, vector<64x16xbf16>, vector<16x16xf32> -> vector<16x16xf32>
    %c0_113 = arith.constant 0 : index
    %c112_114 = arith.constant 112 : index
    %173 = vector.load %arg23[%c0_113, %c112_114] : memref<64x384xf32, #tpu.memory_space<vmem>>, vector<16x16xf32>
    tpu.vector_store %arg23[%c0_113, %c112_114], %172 {strides = array<i32>} : memref<64x384xf32, #tpu.memory_space<vmem>>, vector<16x16xf32>,
    %c8_115 = arith.constant 8 : index
    %c0_116 = arith.constant 0 : index
    %c0_117 = arith.constant 0 : index
    %174 = vector.load %arg15[%c8_115, %c0_116, %c0_117] : memref<9x16x64xbf16, #tpu.memory_space<vmem>>, vector<1x16x64xbf16>
    %175 = vector.shape_cast %174 : vector<1x16x64xbf16> to vector<16x64xbf16>
    %cst_118 = arith.constant dense<0.000000e+00> : vector<16x16xf32>
    %176 = tpu.matmul %175, %141, %cst_118 {dimension_numbers = #tpu.dot_dimension_numbers<[1], [0], [0], [1], [0, 0, 1, 1], [], []>} : vector<16x64xbf16>, vector<64x16xbf16>, vector<16x16xf32> -> vector<16x16xf32>
    %c0_119 = arith.constant 0 : index
    %c128_120 = arith.constant 128 : index
    %177 = vector.load %arg23[%c0_119, %c128_120] : memref<64x384xf32, #tpu.memory_space<vmem>>, vector<16x16xf32>
    tpu.vector_store %arg23[%c0_119, %c128_120], %176 {strides = array<i32>} : memref<64x384xf32, #tpu.memory_space<vmem>>, vector<16x16xf32>,
    %c0_121 = arith.constant 0 : index
    %c0_122 = arith.constant 0 : index
    %178 = vector.load %arg23[%c0_121, %c0_122] : memref<64x384xf32, #tpu.memory_space<vmem>>, vector<16x144xf32>
    %179 = arith.truncf %178 : vector<16x144xf32> to vector<16x144xbf16>
    %cst_123 = arith.constant dense<0.000000e+00> : vector<16x32xf32>
    %180 = tpu.matmul %179, %140, %cst_123 {dimension_numbers = #tpu.dot_dimension_numbers<[1], [0], [0], [1], [0, 0, 1, 1], [], []>} : vector<16x144xbf16>, vector<144x32xbf16>, vector<16x32xf32> -> vector<16x32xf32>
    %c2_124 = arith.constant 2 : index
    %c0_125 = arith.constant 0 : index
    %181 = vector.load %arg20[%c2_124, %c0_125] : memref<16x128xf32, #tpu.memory_space<vmem>>, vector<1x32xf32>
    %182 = vector.broadcast %181 : vector<1x32xf32> to vector<16x32xf32>
    %183 = arith.addf %180, %182 : vector<16x32xf32>
    %cst_126 = arith.constant 0.000000e+00 : f32
    %184 = vector.broadcast %cst_126 : f32 to vector<16x32xf32>
    %185 = arith.maximumf %183, %184 : vector<16x32xf32>
    %186 = tpu.iota {dimensions = array<i32: 0>} : vector<16x1xi32>
    %c9_i32 = arith.constant 9 : i32
    %187 = vector.broadcast %c9_i32 : i32 to vector<16x1xi32>
    %188 = arith.cmpi slt, %186, %187 : vector<16x1xi32>
    %cst_127 = arith.constant 0.000000e+00 : f32
    %189 = vector.shape_cast %188 : vector<16x1xi1> to vector<16x1xi1>
    %190 = vector.broadcast %189 : vector<16x1xi1> to vector<16x32xi1>
    %191 = vector.broadcast %cst_127 : f32 to vector<16x32xf32>
    %192 = arith.select %190, %185, %191 : vector<16x32xi1>, vector<16x32xf32>
    %c0_128 = arith.constant 0 : index
    %c0_129 = arith.constant 0 : index
    %193 = vector.load %arg5[%c0_128, %c0_129] : memref<288x32xbf16, #tpu.memory_space<vmem>>, vector<288x32xbf16>
    %194 = vector.extract_strided_slice %192 {offsets = [12, 0], sizes = [4, 32], strides = [1, 1]} : vector<16x32xf32> to vector<4x32xf32>
    %195 = vector.extract_strided_slice %192 {offsets = [0, 0], sizes = [12, 32], strides = [1, 1]} : vector<16x32xf32> to vector<12x32xf32>
    %196 = tpu.concatenate %194, %195 in 0 : vector<4x32xf32>, vector<12x32xf32> -> vector<16x32xf32>
    %c0_130 = arith.constant 0 : index
    %c18 = arith.constant 18 : index
    %197 = vector.load %arg21[%c0_130, %c18] : memref<64x128xf32, #tpu.memory_space<vmem>>, vector<16x1xf32>
    %198 = vector.broadcast %197 : vector<16x1xf32> to vector<16x32xf32>
    %199 = arith.mulf %196, %198 : vector<16x32xf32>
    %c0_131 = arith.constant 0 : index
    %c0_132 = arith.constant 0 : index
    %200 = vector.load %arg23[%c0_131, %c0_132] : memref<64x384xf32, #tpu.memory_space<vmem>>, vector<16x32xf32>
    tpu.vector_store %arg23[%c0_131, %c0_132], %199 {strides = array<i32>} : memref<64x384xf32, #tpu.memory_space<vmem>>, vector<16x32xf32>,
    %201 = vector.extract_strided_slice %192 {offsets = [13, 0], sizes = [3, 32], strides = [1, 1]} : vector<16x32xf32> to vector<3x32xf32>
    %202 = vector.extract_strided_slice %192 {offsets = [0, 0], sizes = [13, 32], strides = [1, 1]} : vector<16x32xf32> to vector<13x32xf32>
    %203 = tpu.concatenate %201, %202 in 0 : vector<3x32xf32>, vector<13x32xf32> -> vector<16x32xf32>
    %c0_133 = arith.constant 0 : index
    %c19 = arith.constant 19 : index
    %204 = vector.load %arg21[%c0_133, %c19] : memref<64x128xf32, #tpu.memory_space<vmem>>, vector<16x1xf32>
    %205 = vector.broadcast %204 : vector<16x1xf32> to vector<16x32xf32>
    %206 = arith.mulf %203, %205 : vector<16x32xf32>
    %c0_134 = arith.constant 0 : index
    %c32_135 = arith.constant 32 : index
    %207 = vector.load %arg23[%c0_134, %c32_135] : memref<64x384xf32, #tpu.memory_space<vmem>>, vector<16x32xf32>
    tpu.vector_store %arg23[%c0_134, %c32_135], %206 {strides = array<i32>} : memref<64x384xf32, #tpu.memory_space<vmem>>, vector<16x32xf32>,
    %208 = vector.extract_strided_slice %192 {offsets = [14, 0], sizes = [2, 32], strides = [1, 1]} : vector<16x32xf32> to vector<2x32xf32>
    %209 = vector.extract_strided_slice %192 {offsets = [0, 0], sizes = [14, 32], strides = [1, 1]} : vector<16x32xf32> to vector<14x32xf32>
    %210 = tpu.concatenate %208, %209 in 0 : vector<2x32xf32>, vector<14x32xf32> -> vector<16x32xf32>
    %c0_136 = arith.constant 0 : index
    %c20 = arith.constant 20 : index
    %211 = vector.load %arg21[%c0_136, %c20] : memref<64x128xf32, #tpu.memory_space<vmem>>, vector<16x1xf32>
    %212 = vector.broadcast %211 : vector<16x1xf32> to vector<16x32xf32>
    %213 = arith.mulf %210, %212 : vector<16x32xf32>
    %c0_137 = arith.constant 0 : index
    %c64_138 = arith.constant 64 : index
    %214 = vector.load %arg23[%c0_137, %c64_138] : memref<64x384xf32, #tpu.memory_space<vmem>>, vector<16x32xf32>
    tpu.vector_store %arg23[%c0_137, %c64_138], %213 {strides = array<i32>} : memref<64x384xf32, #tpu.memory_space<vmem>>, vector<16x32xf32>,
    %215 = vector.extract_strided_slice %192 {offsets = [15, 0], sizes = [1, 32], strides = [1, 1]} : vector<16x32xf32> to vector<1x32xf32>
    %216 = vector.extract_strided_slice %192 {offsets = [0, 0], sizes = [15, 32], strides = [1, 1]} : vector<16x32xf32> to vector<15x32xf32>
    %217 = tpu.concatenate %215, %216 in 0 : vector<1x32xf32>, vector<15x32xf32> -> vector<16x32xf32>
    %c0_139 = arith.constant 0 : index
    %c21 = arith.constant 21 : index
    %218 = vector.load %arg21[%c0_139, %c21] : memref<64x128xf32, #tpu.memory_space<vmem>>, vector<16x1xf32>
    %219 = vector.broadcast %218 : vector<16x1xf32> to vector<16x32xf32>
    %220 = arith.mulf %217, %219 : vector<16x32xf32>
    %c0_140 = arith.constant 0 : index
    %c96_141 = arith.constant 96 : index
    %221 = vector.load %arg23[%c0_140, %c96_141] : memref<64x384xf32, #tpu.memory_space<vmem>>, vector<16x32xf32>
    tpu.vector_store %arg23[%c0_140, %c96_141], %220 {strides = array<i32>} : memref<64x384xf32, #tpu.memory_space<vmem>>, vector<16x32xf32>,
    %c0_142 = arith.constant 0 : index
    %c22 = arith.constant 22 : index
    %222 = vector.load %arg21[%c0_142, %c22] : memref<64x128xf32, #tpu.memory_space<vmem>>, vector<16x1xf32>
    %223 = vector.broadcast %222 : vector<16x1xf32> to vector<16x32xf32>
    %224 = arith.mulf %192, %223 : vector<16x32xf32>
    %c0_143 = arith.constant 0 : index
    %c128_144 = arith.constant 128 : index
    %225 = vector.load %arg23[%c0_143, %c128_144] : memref<64x384xf32, #tpu.memory_space<vmem>>, vector<16x32xf32>
    tpu.vector_store %arg23[%c0_143, %c128_144], %224 {strides = array<i32>} : memref<64x384xf32, #tpu.memory_space<vmem>>, vector<16x32xf32>,
    %226 = vector.extract_strided_slice %192 {offsets = [1, 0], sizes = [15, 32], strides = [1, 1]} : vector<16x32xf32> to vector<15x32xf32>
    %227 = vector.extract_strided_slice %192 {offsets = [0, 0], sizes = [1, 32], strides = [1, 1]} : vector<16x32xf32> to vector<1x32xf32>
    %228 = tpu.concatenate %226, %227 in 0 : vector<15x32xf32>, vector<1x32xf32> -> vector<16x32xf32>
    %c0_145 = arith.constant 0 : index
    %c23 = arith.constant 23 : index
    %229 = vector.load %arg21[%c0_145, %c23] : memref<64x128xf32, #tpu.memory_space<vmem>>, vector<16x1xf32>
    %230 = vector.broadcast %229 : vector<16x1xf32> to vector<16x32xf32>
    %231 = arith.mulf %228, %230 : vector<16x32xf32>
    %c0_146 = arith.constant 0 : index
    %c160 = arith.constant 160 : index
    %232 = vector.load %arg23[%c0_146, %c160] : memref<64x384xf32, #tpu.memory_space<vmem>>, vector<16x32xf32>
    tpu.vector_store %arg23[%c0_146, %c160], %231 {strides = array<i32>} : memref<64x384xf32, #tpu.memory_space<vmem>>, vector<16x32xf32>,
    %233 = vector.extract_strided_slice %192 {offsets = [2, 0], sizes = [14, 32], strides = [1, 1]} : vector<16x32xf32> to vector<14x32xf32>
    %234 = vector.extract_strided_slice %192 {offsets = [0, 0], sizes = [2, 32], strides = [1, 1]} : vector<16x32xf32> to vector<2x32xf32>
    %235 = tpu.concatenate %233, %234 in 0 : vector<14x32xf32>, vector<2x32xf32> -> vector<16x32xf32>
    %c0_147 = arith.constant 0 : index
    %c24 = arith.constant 24 : index
    %236 = vector.load %arg21[%c0_147, %c24] : memref<64x128xf32, #tpu.memory_space<vmem>>, vector<16x1xf32>
    %237 = vector.broadcast %236 : vector<16x1xf32> to vector<16x32xf32>
    %238 = arith.mulf %235, %237 : vector<16x32xf32>
    %c0_148 = arith.constant 0 : index
    %c192 = arith.constant 192 : index
    %239 = vector.load %arg23[%c0_148, %c192] : memref<64x384xf32, #tpu.memory_space<vmem>>, vector<16x32xf32>
    tpu.vector_store %arg23[%c0_148, %c192], %238 {strides = array<i32>} : memref<64x384xf32, #tpu.memory_space<vmem>>, vector<16x32xf32>,
    %240 = vector.extract_strided_slice %192 {offsets = [3, 0], sizes = [13, 32], strides = [1, 1]} : vector<16x32xf32> to vector<13x32xf32>
    %241 = vector.extract_strided_slice %192 {offsets = [0, 0], sizes = [3, 32], strides = [1, 1]} : vector<16x32xf32> to vector<3x32xf32>
    %242 = tpu.concatenate %240, %241 in 0 : vector<13x32xf32>, vector<3x32xf32> -> vector<16x32xf32>
    %c0_149 = arith.constant 0 : index
    %c25 = arith.constant 25 : index
    %243 = vector.load %arg21[%c0_149, %c25] : memref<64x128xf32, #tpu.memory_space<vmem>>, vector<16x1xf32>
    %244 = vector.broadcast %243 : vector<16x1xf32> to vector<16x32xf32>
    %245 = arith.mulf %242, %244 : vector<16x32xf32>
    %c0_150 = arith.constant 0 : index
    %c224 = arith.constant 224 : index
    %246 = vector.load %arg23[%c0_150, %c224] : memref<64x384xf32, #tpu.memory_space<vmem>>, vector<16x32xf32>
    tpu.vector_store %arg23[%c0_150, %c224], %245 {strides = array<i32>} : memref<64x384xf32, #tpu.memory_space<vmem>>, vector<16x32xf32>,
    %247 = vector.extract_strided_slice %192 {offsets = [4, 0], sizes = [12, 32], strides = [1, 1]} : vector<16x32xf32> to vector<12x32xf32>
    %248 = vector.extract_strided_slice %192 {offsets = [0, 0], sizes = [4, 32], strides = [1, 1]} : vector<16x32xf32> to vector<4x32xf32>
    %249 = tpu.concatenate %247, %248 in 0 : vector<12x32xf32>, vector<4x32xf32> -> vector<16x32xf32>
    %c0_151 = arith.constant 0 : index
    %c26 = arith.constant 26 : index
    %250 = vector.load %arg21[%c0_151, %c26] : memref<64x128xf32, #tpu.memory_space<vmem>>, vector<16x1xf32>
    %251 = vector.broadcast %250 : vector<16x1xf32> to vector<16x32xf32>
    %252 = arith.mulf %249, %251 : vector<16x32xf32>
    %c0_152 = arith.constant 0 : index
    %c256 = arith.constant 256 : index
    %253 = vector.load %arg23[%c0_152, %c256] : memref<64x384xf32, #tpu.memory_space<vmem>>, vector<16x32xf32>
    tpu.vector_store %arg23[%c0_152, %c256], %252 {strides = array<i32>} : memref<64x384xf32, #tpu.memory_space<vmem>>, vector<16x32xf32>,
    %c0_153 = arith.constant 0 : index
    %c0_154 = arith.constant 0 : index
    %254 = vector.load %arg23[%c0_153, %c0_154] : memref<64x384xf32, #tpu.memory_space<vmem>>, vector<16x288xf32>
    %255 = arith.truncf %254 : vector<16x288xf32> to vector<16x288xbf16>
    %cst_155 = arith.constant dense<0.000000e+00> : vector<16x32xf32>
    %256 = tpu.matmul %255, %193, %cst_155 {dimension_numbers = #tpu.dot_dimension_numbers<[1], [0], [0], [1], [0, 0, 1, 1], [], []>} : vector<16x288xbf16>, vector<288x32xbf16>, vector<16x32xf32> -> vector<16x32xf32>
    %c3_156 = arith.constant 3 : index
    %c0_157 = arith.constant 0 : index
    %257 = vector.load %arg20[%c3_156, %c0_157] : memref<16x128xf32, #tpu.memory_space<vmem>>, vector<1x32xf32>
    %258 = vector.broadcast %257 : vector<1x32xf32> to vector<16x32xf32>
    %259 = arith.addf %256, %258 : vector<16x32xf32>
    %cst_158 = arith.constant 0.000000e+00 : f32
    %260 = vector.broadcast %cst_158 : f32 to vector<16x32xf32>
    %261 = arith.maximumf %259, %260 : vector<16x32xf32>
    %262 = tpu.iota {dimensions = array<i32: 0>} : vector<16x1xi32>
    %c9_i32_159 = arith.constant 9 : i32
    %263 = vector.broadcast %c9_i32_159 : i32 to vector<16x1xi32>
    %264 = arith.cmpi slt, %262, %263 : vector<16x1xi32>
    %cst_160 = arith.constant 0.000000e+00 : f32
    %265 = vector.shape_cast %264 : vector<16x1xi1> to vector<16x1xi1>
    %266 = vector.broadcast %265 : vector<16x1xi1> to vector<16x32xi1>
    %267 = vector.broadcast %cst_160 : f32 to vector<16x32xf32>
    %268 = arith.select %266, %261, %267 : vector<16x32xi1>, vector<16x32xf32>
    %c0_161 = arith.constant 0 : index
    %c0_162 = arith.constant 0 : index
    %269 = vector.load %arg6[%c0_161, %c0_162] : memref<288x32xbf16, #tpu.memory_space<vmem>>, vector<288x32xbf16>
    %270 = vector.extract_strided_slice %268 {offsets = [12, 0], sizes = [4, 32], strides = [1, 1]} : vector<16x32xf32> to vector<4x32xf32>
    %271 = vector.extract_strided_slice %268 {offsets = [0, 0], sizes = [12, 32], strides = [1, 1]} : vector<16x32xf32> to vector<12x32xf32>
    %272 = tpu.concatenate %270, %271 in 0 : vector<4x32xf32>, vector<12x32xf32> -> vector<16x32xf32>
    %c0_163 = arith.constant 0 : index
    %c27 = arith.constant 27 : index
    %273 = vector.load %arg21[%c0_163, %c27] : memref<64x128xf32, #tpu.memory_space<vmem>>, vector<16x1xf32>
    %274 = vector.broadcast %273 : vector<16x1xf32> to vector<16x32xf32>
    %275 = arith.mulf %272, %274 : vector<16x32xf32>
    %c0_164 = arith.constant 0 : index
    %c0_165 = arith.constant 0 : index
    %276 = vector.load %arg23[%c0_164, %c0_165] : memref<64x384xf32, #tpu.memory_space<vmem>>, vector<16x32xf32>
    tpu.vector_store %arg23[%c0_164, %c0_165], %275 {strides = array<i32>} : memref<64x384xf32, #tpu.memory_space<vmem>>, vector<16x32xf32>,
    %277 = vector.extract_strided_slice %268 {offsets = [13, 0], sizes = [3, 32], strides = [1, 1]} : vector<16x32xf32> to vector<3x32xf32>
    %278 = vector.extract_strided_slice %268 {offsets = [0, 0], sizes = [13, 32], strides = [1, 1]} : vector<16x32xf32> to vector<13x32xf32>
    %279 = tpu.concatenate %277, %278 in 0 : vector<3x32xf32>, vector<13x32xf32> -> vector<16x32xf32>
    %c0_166 = arith.constant 0 : index
    %c28 = arith.constant 28 : index
    %280 = vector.load %arg21[%c0_166, %c28] : memref<64x128xf32, #tpu.memory_space<vmem>>, vector<16x1xf32>
    %281 = vector.broadcast %280 : vector<16x1xf32> to vector<16x32xf32>
    %282 = arith.mulf %279, %281 : vector<16x32xf32>
    %c0_167 = arith.constant 0 : index
    %c32_168 = arith.constant 32 : index
    %283 = vector.load %arg23[%c0_167, %c32_168] : memref<64x384xf32, #tpu.memory_space<vmem>>, vector<16x32xf32>
    tpu.vector_store %arg23[%c0_167, %c32_168], %282 {strides = array<i32>} : memref<64x384xf32, #tpu.memory_space<vmem>>, vector<16x32xf32>,
    %284 = vector.extract_strided_slice %268 {offsets = [14, 0], sizes = [2, 32], strides = [1, 1]} : vector<16x32xf32> to vector<2x32xf32>
    %285 = vector.extract_strided_slice %268 {offsets = [0, 0], sizes = [14, 32], strides = [1, 1]} : vector<16x32xf32> to vector<14x32xf32>
    %286 = tpu.concatenate %284, %285 in 0 : vector<2x32xf32>, vector<14x32xf32> -> vector<16x32xf32>
    %c0_169 = arith.constant 0 : index
    %c29 = arith.constant 29 : index
    %287 = vector.load %arg21[%c0_169, %c29] : memref<64x128xf32, #tpu.memory_space<vmem>>, vector<16x1xf32>
    %288 = vector.broadcast %287 : vector<16x1xf32> to vector<16x32xf32>
    %289 = arith.mulf %286, %288 : vector<16x32xf32>
    %c0_170 = arith.constant 0 : index
    %c64_171 = arith.constant 64 : index
    %290 = vector.load %arg23[%c0_170, %c64_171] : memref<64x384xf32, #tpu.memory_space<vmem>>, vector<16x32xf32>
    tpu.vector_store %arg23[%c0_170, %c64_171], %289 {strides = array<i32>} : memref<64x384xf32, #tpu.memory_space<vmem>>, vector<16x32xf32>,
    %291 = vector.extract_strided_slice %268 {offsets = [15, 0], sizes = [1, 32], strides = [1, 1]} : vector<16x32xf32> to vector<1x32xf32>
    %292 = vector.extract_strided_slice %268 {offsets = [0, 0], sizes = [15, 32], strides = [1, 1]} : vector<16x32xf32> to vector<15x32xf32>
    %293 = tpu.concatenate %291, %292 in 0 : vector<1x32xf32>, vector<15x32xf32> -> vector<16x32xf32>
    %c0_172 = arith.constant 0 : index
    %c30 = arith.constant 30 : index
    %294 = vector.load %arg21[%c0_172, %c30] : memref<64x128xf32, #tpu.memory_space<vmem>>, vector<16x1xf32>
    %295 = vector.broadcast %294 : vector<16x1xf32> to vector<16x32xf32>
    %296 = arith.mulf %293, %295 : vector<16x32xf32>
    %c0_173 = arith.constant 0 : index
    %c96_174 = arith.constant 96 : index
    %297 = vector.load %arg23[%c0_173, %c96_174] : memref<64x384xf32, #tpu.memory_space<vmem>>, vector<16x32xf32>
    tpu.vector_store %arg23[%c0_173, %c96_174], %296 {strides = array<i32>} : memref<64x384xf32, #tpu.memory_space<vmem>>, vector<16x32xf32>,
    %c0_175 = arith.constant 0 : index
    %c31 = arith.constant 31 : index
    %298 = vector.load %arg21[%c0_175, %c31] : memref<64x128xf32, #tpu.memory_space<vmem>>, vector<16x1xf32>
    %299 = vector.broadcast %298 : vector<16x1xf32> to vector<16x32xf32>
    %300 = arith.mulf %268, %299 : vector<16x32xf32>
    %c0_176 = arith.constant 0 : index
    %c128_177 = arith.constant 128 : index
    %301 = vector.load %arg23[%c0_176, %c128_177] : memref<64x384xf32, #tpu.memory_space<vmem>>, vector<16x32xf32>
    tpu.vector_store %arg23[%c0_176, %c128_177], %300 {strides = array<i32>} : memref<64x384xf32, #tpu.memory_space<vmem>>, vector<16x32xf32>,
    %302 = vector.extract_strided_slice %268 {offsets = [1, 0], sizes = [15, 32], strides = [1, 1]} : vector<16x32xf32> to vector<15x32xf32>
    %303 = vector.extract_strided_slice %268 {offsets = [0, 0], sizes = [1, 32], strides = [1, 1]} : vector<16x32xf32> to vector<1x32xf32>
    %304 = tpu.concatenate %302, %303 in 0 : vector<15x32xf32>, vector<1x32xf32> -> vector<16x32xf32>
    %c0_178 = arith.constant 0 : index
    %c32_179 = arith.constant 32 : index
    %305 = vector.load %arg21[%c0_178, %c32_179] : memref<64x128xf32, #tpu.memory_space<vmem>>, vector<16x1xf32>
    %306 = vector.broadcast %305 : vector<16x1xf32> to vector<16x32xf32>
    %307 = arith.mulf %304, %306 : vector<16x32xf32>
    %c0_180 = arith.constant 0 : index
    %c160_181 = arith.constant 160 : index
    %308 = vector.load %arg23[%c0_180, %c160_181] : memref<64x384xf32, #tpu.memory_space<vmem>>, vector<16x32xf32>
    tpu.vector_store %arg23[%c0_180, %c160_181], %307 {strides = array<i32>} : memref<64x384xf32, #tpu.memory_space<vmem>>, vector<16x32xf32>,
    %309 = vector.extract_strided_slice %268 {offsets = [2, 0], sizes = [14, 32], strides = [1, 1]} : vector<16x32xf32> to vector<14x32xf32>
    %310 = vector.extract_strided_slice %268 {offsets = [0, 0], sizes = [2, 32], strides = [1, 1]} : vector<16x32xf32> to vector<2x32xf32>
    %311 = tpu.concatenate %309, %310 in 0 : vector<14x32xf32>, vector<2x32xf32> -> vector<16x32xf32>
    %c0_182 = arith.constant 0 : index
    %c33 = arith.constant 33 : index
    %312 = vector.load %arg21[%c0_182, %c33] : memref<64x128xf32, #tpu.memory_space<vmem>>, vector<16x1xf32>
    %313 = vector.broadcast %312 : vector<16x1xf32> to vector<16x32xf32>
    %314 = arith.mulf %311, %313 : vector<16x32xf32>
    %c0_183 = arith.constant 0 : index
    %c192_184 = arith.constant 192 : index
    %315 = vector.load %arg23[%c0_183, %c192_184] : memref<64x384xf32, #tpu.memory_space<vmem>>, vector<16x32xf32>
    tpu.vector_store %arg23[%c0_183, %c192_184], %314 {strides = array<i32>} : memref<64x384xf32, #tpu.memory_space<vmem>>, vector<16x32xf32>,
    %316 = vector.extract_strided_slice %268 {offsets = [3, 0], sizes = [13, 32], strides = [1, 1]} : vector<16x32xf32> to vector<13x32xf32>
    %317 = vector.extract_strided_slice %268 {offsets = [0, 0], sizes = [3, 32], strides = [1, 1]} : vector<16x32xf32> to vector<3x32xf32>
    %318 = tpu.concatenate %316, %317 in 0 : vector<13x32xf32>, vector<3x32xf32> -> vector<16x32xf32>
    %c0_185 = arith.constant 0 : index
    %c34 = arith.constant 34 : index
    %319 = vector.load %arg21[%c0_185, %c34] : memref<64x128xf32, #tpu.memory_space<vmem>>, vector<16x1xf32>
    %320 = vector.broadcast %319 : vector<16x1xf32> to vector<16x32xf32>
    %321 = arith.mulf %318, %320 : vector<16x32xf32>
    %c0_186 = arith.constant 0 : index
    %c224_187 = arith.constant 224 : index
    %322 = vector.load %arg23[%c0_186, %c224_187] : memref<64x384xf32, #tpu.memory_space<vmem>>, vector<16x32xf32>
    tpu.vector_store %arg23[%c0_186, %c224_187], %321 {strides = array<i32>} : memref<64x384xf32, #tpu.memory_space<vmem>>, vector<16x32xf32>,
    %323 = vector.extract_strided_slice %268 {offsets = [4, 0], sizes = [12, 32], strides = [1, 1]} : vector<16x32xf32> to vector<12x32xf32>
    %324 = vector.extract_strided_slice %268 {offsets = [0, 0], sizes = [4, 32], strides = [1, 1]} : vector<16x32xf32> to vector<4x32xf32>
    %325 = tpu.concatenate %323, %324 in 0 : vector<12x32xf32>, vector<4x32xf32> -> vector<16x32xf32>
    %c0_188 = arith.constant 0 : index
    %c35 = arith.constant 35 : index
    %326 = vector.load %arg21[%c0_188, %c35] : memref<64x128xf32, #tpu.memory_space<vmem>>, vector<16x1xf32>
    %327 = vector.broadcast %326 : vector<16x1xf32> to vector<16x32xf32>
    %328 = arith.mulf %325, %327 : vector<16x32xf32>
    %c0_189 = arith.constant 0 : index
    %c256_190 = arith.constant 256 : index
    %329 = vector.load %arg23[%c0_189, %c256_190] : memref<64x384xf32, #tpu.memory_space<vmem>>, vector<16x32xf32>
    tpu.vector_store %arg23[%c0_189, %c256_190], %328 {strides = array<i32>} : memref<64x384xf32, #tpu.memory_space<vmem>>, vector<16x32xf32>,
    %c0_191 = arith.constant 0 : index
    %c0_192 = arith.constant 0 : index
    %330 = vector.load %arg23[%c0_191, %c0_192] : memref<64x384xf32, #tpu.memory_space<vmem>>, vector<16x288xf32>
    %331 = arith.truncf %330 : vector<16x288xf32> to vector<16x288xbf16>
    %cst_193 = arith.constant dense<0.000000e+00> : vector<16x32xf32>
    %332 = tpu.matmul %331, %269, %cst_193 {dimension_numbers = #tpu.dot_dimension_numbers<[1], [0], [0], [1], [0, 0, 1, 1], [], []>} : vector<16x288xbf16>, vector<288x32xbf16>, vector<16x32xf32> -> vector<16x32xf32>
    %c4_194 = arith.constant 4 : index
    %c0_195 = arith.constant 0 : index
    %333 = vector.load %arg20[%c4_194, %c0_195] : memref<16x128xf32, #tpu.memory_space<vmem>>, vector<1x32xf32>
    %334 = vector.broadcast %333 : vector<1x32xf32> to vector<16x32xf32>
    %335 = arith.addf %332, %334 : vector<16x32xf32>
    %cst_196 = arith.constant 0.000000e+00 : f32
    %336 = vector.broadcast %cst_196 : f32 to vector<16x32xf32>
    %337 = arith.maximumf %335, %336 : vector<16x32xf32>
    %338 = tpu.iota {dimensions = array<i32: 0>} : vector<16x1xi32>
    %c9_i32_197 = arith.constant 9 : i32
    %339 = vector.broadcast %c9_i32_197 : i32 to vector<16x1xi32>
    %340 = arith.cmpi slt, %338, %339 : vector<16x1xi32>
    %cst_198 = arith.constant 0.000000e+00 : f32
    %341 = vector.shape_cast %340 : vector<16x1xi1> to vector<16x1xi1>
    %342 = vector.broadcast %341 : vector<16x1xi1> to vector<16x32xi1>
    %343 = vector.broadcast %cst_198 : f32 to vector<16x32xf32>
    %344 = arith.select %342, %337, %343 : vector<16x32xi1>, vector<16x32xf32>
    %c0_199 = arith.constant 0 : index
    %c0_200 = arith.constant 0 : index
    %345 = vector.load %arg7[%c0_199, %c0_200] : memref<288x64xbf16, #tpu.memory_space<vmem>>, vector<288x64xbf16>
    %346 = arith.truncf %344 : vector<16x32xf32> to vector<16x32xbf16>
    %c0_201 = arith.constant 0 : index
    %c0_202 = arith.constant 0 : index
    %c0_203 = arith.constant 0 : index
    %347 = vector.load %arg16[%c0_201, %c0_202, %c0_203] : memref<9x8x16xbf16, #tpu.memory_space<vmem>>, vector<1x8x16xbf16>
    %348 = vector.shape_cast %347 : vector<1x8x16xbf16> to vector<8x16xbf16>
    %cst_204 = arith.constant dense<0.000000e+00> : vector<8x32xf32>
    %349 = tpu.matmul %348, %346, %cst_204 {dimension_numbers = #tpu.dot_dimension_numbers<[1], [0], [0], [1], [0, 0, 1, 1], [], []>} : vector<8x16xbf16>, vector<16x32xbf16>, vector<8x32xf32> -> vector<8x32xf32>
    %c0_205 = arith.constant 0 : index
    %c0_206 = arith.constant 0 : index
    %350 = vector.load %arg23[%c0_205, %c0_206] : memref<64x384xf32, #tpu.memory_space<vmem>>, vector<8x32xf32>
    tpu.vector_store %arg23[%c0_205, %c0_206], %349 {strides = array<i32>} : memref<64x384xf32, #tpu.memory_space<vmem>>, vector<8x32xf32>,
    %c1_207 = arith.constant 1 : index
    %c0_208 = arith.constant 0 : index
    %c0_209 = arith.constant 0 : index
    %351 = vector.load %arg16[%c1_207, %c0_208, %c0_209] : memref<9x8x16xbf16, #tpu.memory_space<vmem>>, vector<1x8x16xbf16>
    %352 = vector.shape_cast %351 : vector<1x8x16xbf16> to vector<8x16xbf16>
    %cst_210 = arith.constant dense<0.000000e+00> : vector<8x32xf32>
    %353 = tpu.matmul %352, %346, %cst_210 {dimension_numbers = #tpu.dot_dimension_numbers<[1], [0], [0], [1], [0, 0, 1, 1], [], []>} : vector<8x16xbf16>, vector<16x32xbf16>, vector<8x32xf32> -> vector<8x32xf32>
    %c0_211 = arith.constant 0 : index
    %c32_212 = arith.constant 32 : index
    %354 = vector.load %arg23[%c0_211, %c32_212] : memref<64x384xf32, #tpu.memory_space<vmem>>, vector<8x32xf32>
    tpu.vector_store %arg23[%c0_211, %c32_212], %353 {strides = array<i32>} : memref<64x384xf32, #tpu.memory_space<vmem>>, vector<8x32xf32>,
    %c2_213 = arith.constant 2 : index
    %c0_214 = arith.constant 0 : index
    %c0_215 = arith.constant 0 : index
    %355 = vector.load %arg16[%c2_213, %c0_214, %c0_215] : memref<9x8x16xbf16, #tpu.memory_space<vmem>>, vector<1x8x16xbf16>
    %356 = vector.shape_cast %355 : vector<1x8x16xbf16> to vector<8x16xbf16>
    %cst_216 = arith.constant dense<0.000000e+00> : vector<8x32xf32>
    %357 = tpu.matmul %356, %346, %cst_216 {dimension_numbers = #tpu.dot_dimension_numbers<[1], [0], [0], [1], [0, 0, 1, 1], [], []>} : vector<8x16xbf16>, vector<16x32xbf16>, vector<8x32xf32> -> vector<8x32xf32>
    %c0_217 = arith.constant 0 : index
    %c64_218 = arith.constant 64 : index
    %358 = vector.load %arg23[%c0_217, %c64_218] : memref<64x384xf32, #tpu.memory_space<vmem>>, vector<8x32xf32>
    tpu.vector_store %arg23[%c0_217, %c64_218], %357 {strides = array<i32>} : memref<64x384xf32, #tpu.memory_space<vmem>>, vector<8x32xf32>,
    %c3_219 = arith.constant 3 : index
    %c0_220 = arith.constant 0 : index
    %c0_221 = arith.constant 0 : index
    %359 = vector.load %arg16[%c3_219, %c0_220, %c0_221] : memref<9x8x16xbf16, #tpu.memory_space<vmem>>, vector<1x8x16xbf16>
    %360 = vector.shape_cast %359 : vector<1x8x16xbf16> to vector<8x16xbf16>
    %cst_222 = arith.constant dense<0.000000e+00> : vector<8x32xf32>
    %361 = tpu.matmul %360, %346, %cst_222 {dimension_numbers = #tpu.dot_dimension_numbers<[1], [0], [0], [1], [0, 0, 1, 1], [], []>} : vector<8x16xbf16>, vector<16x32xbf16>, vector<8x32xf32> -> vector<8x32xf32>
    %c0_223 = arith.constant 0 : index
    %c96_224 = arith.constant 96 : index
    %362 = vector.load %arg23[%c0_223, %c96_224] : memref<64x384xf32, #tpu.memory_space<vmem>>, vector<8x32xf32>
    tpu.vector_store %arg23[%c0_223, %c96_224], %361 {strides = array<i32>} : memref<64x384xf32, #tpu.memory_space<vmem>>, vector<8x32xf32>,
    %c4_225 = arith.constant 4 : index
    %c0_226 = arith.constant 0 : index
    %c0_227 = arith.constant 0 : index
    %363 = vector.load %arg16[%c4_225, %c0_226, %c0_227] : memref<9x8x16xbf16, #tpu.memory_space<vmem>>, vector<1x8x16xbf16>
    %364 = vector.shape_cast %363 : vector<1x8x16xbf16> to vector<8x16xbf16>
    %cst_228 = arith.constant dense<0.000000e+00> : vector<8x32xf32>
    %365 = tpu.matmul %364, %346, %cst_228 {dimension_numbers = #tpu.dot_dimension_numbers<[1], [0], [0], [1], [0, 0, 1, 1], [], []>} : vector<8x16xbf16>, vector<16x32xbf16>, vector<8x32xf32> -> vector<8x32xf32>
    %c0_229 = arith.constant 0 : index
    %c128_230 = arith.constant 128 : index
    %366 = vector.load %arg23[%c0_229, %c128_230] : memref<64x384xf32, #tpu.memory_space<vmem>>, vector<8x32xf32>
    tpu.vector_store %arg23[%c0_229, %c128_230], %365 {strides = array<i32>} : memref<64x384xf32, #tpu.memory_space<vmem>>, vector<8x32xf32>,
    %c5_231 = arith.constant 5 : index
    %c0_232 = arith.constant 0 : index
    %c0_233 = arith.constant 0 : index
    %367 = vector.load %arg16[%c5_231, %c0_232, %c0_233] : memref<9x8x16xbf16, #tpu.memory_space<vmem>>, vector<1x8x16xbf16>
    %368 = vector.shape_cast %367 : vector<1x8x16xbf16> to vector<8x16xbf16>
    %cst_234 = arith.constant dense<0.000000e+00> : vector<8x32xf32>
    %369 = tpu.matmul %368, %346, %cst_234 {dimension_numbers = #tpu.dot_dimension_numbers<[1], [0], [0], [1], [0, 0, 1, 1], [], []>} : vector<8x16xbf16>, vector<16x32xbf16>, vector<8x32xf32> -> vector<8x32xf32>
    %c0_235 = arith.constant 0 : index
    %c160_236 = arith.constant 160 : index
    %370 = vector.load %arg23[%c0_235, %c160_236] : memref<64x384xf32, #tpu.memory_space<vmem>>, vector<8x32xf32>
    tpu.vector_store %arg23[%c0_235, %c160_236], %369 {strides = array<i32>} : memref<64x384xf32, #tpu.memory_space<vmem>>, vector<8x32xf32>,
    %c6_237 = arith.constant 6 : index
    %c0_238 = arith.constant 0 : index
    %c0_239 = arith.constant 0 : index
    %371 = vector.load %arg16[%c6_237, %c0_238, %c0_239] : memref<9x8x16xbf16, #tpu.memory_space<vmem>>, vector<1x8x16xbf16>
    %372 = vector.shape_cast %371 : vector<1x8x16xbf16> to vector<8x16xbf16>
    %cst_240 = arith.constant dense<0.000000e+00> : vector<8x32xf32>
    %373 = tpu.matmul %372, %346, %cst_240 {dimension_numbers = #tpu.dot_dimension_numbers<[1], [0], [0], [1], [0, 0, 1, 1], [], []>} : vector<8x16xbf16>, vector<16x32xbf16>, vector<8x32xf32> -> vector<8x32xf32>
    %c0_241 = arith.constant 0 : index
    %c192_242 = arith.constant 192 : index
    %374 = vector.load %arg23[%c0_241, %c192_242] : memref<64x384xf32, #tpu.memory_space<vmem>>, vector<8x32xf32>
    tpu.vector_store %arg23[%c0_241, %c192_242], %373 {strides = array<i32>} : memref<64x384xf32, #tpu.memory_space<vmem>>, vector<8x32xf32>,
    %c7_243 = arith.constant 7 : index
    %c0_244 = arith.constant 0 : index
    %c0_245 = arith.constant 0 : index
    %375 = vector.load %arg16[%c7_243, %c0_244, %c0_245] : memref<9x8x16xbf16, #tpu.memory_space<vmem>>, vector<1x8x16xbf16>
    %376 = vector.shape_cast %375 : vector<1x8x16xbf16> to vector<8x16xbf16>
    %cst_246 = arith.constant dense<0.000000e+00> : vector<8x32xf32>
    %377 = tpu.matmul %376, %346, %cst_246 {dimension_numbers = #tpu.dot_dimension_numbers<[1], [0], [0], [1], [0, 0, 1, 1], [], []>} : vector<8x16xbf16>, vector<16x32xbf16>, vector<8x32xf32> -> vector<8x32xf32>
    %c0_247 = arith.constant 0 : index
    %c224_248 = arith.constant 224 : index
    %378 = vector.load %arg23[%c0_247, %c224_248] : memref<64x384xf32, #tpu.memory_space<vmem>>, vector<8x32xf32>
    tpu.vector_store %arg23[%c0_247, %c224_248], %377 {strides = array<i32>} : memref<64x384xf32, #tpu.memory_space<vmem>>, vector<8x32xf32>,
    %c8_249 = arith.constant 8 : index
    %c0_250 = arith.constant 0 : index
    %c0_251 = arith.constant 0 : index
    %379 = vector.load %arg16[%c8_249, %c0_250, %c0_251] : memref<9x8x16xbf16, #tpu.memory_space<vmem>>, vector<1x8x16xbf16>
    %380 = vector.shape_cast %379 : vector<1x8x16xbf16> to vector<8x16xbf16>
    %cst_252 = arith.constant dense<0.000000e+00> : vector<8x32xf32>
    %381 = tpu.matmul %380, %346, %cst_252 {dimension_numbers = #tpu.dot_dimension_numbers<[1], [0], [0], [1], [0, 0, 1, 1], [], []>} : vector<8x16xbf16>, vector<16x32xbf16>, vector<8x32xf32> -> vector<8x32xf32>
    %c0_253 = arith.constant 0 : index
    %c256_254 = arith.constant 256 : index
    %382 = vector.load %arg23[%c0_253, %c256_254] : memref<64x384xf32, #tpu.memory_space<vmem>>, vector<8x32xf32>
    tpu.vector_store %arg23[%c0_253, %c256_254], %381 {strides = array<i32>} : memref<64x384xf32, #tpu.memory_space<vmem>>, vector<8x32xf32>,
    %c0_255 = arith.constant 0 : index
    %c0_256 = arith.constant 0 : index
    %383 = vector.load %arg23[%c0_255, %c0_256] : memref<64x384xf32, #tpu.memory_space<vmem>>, vector<8x288xf32>
    %384 = arith.truncf %383 : vector<8x288xf32> to vector<8x288xbf16>
    %cst_257 = arith.constant dense<0.000000e+00> : vector<8x64xf32>
    %385 = tpu.matmul %384, %345, %cst_257 {dimension_numbers = #tpu.dot_dimension_numbers<[1], [0], [0], [1], [0, 0, 1, 1], [], []>} : vector<8x288xbf16>, vector<288x64xbf16>, vector<8x64xf32> -> vector<8x64xf32>
    %c5_258 = arith.constant 5 : index
    %c0_259 = arith.constant 0 : index
    %386 = vector.load %arg20[%c5_258, %c0_259] : memref<16x128xf32, #tpu.memory_space<vmem>>, vector<1x64xf32>
    %387 = vector.broadcast %386 : vector<1x64xf32> to vector<8x64xf32>
    %388 = arith.addf %385, %387 : vector<8x64xf32>
    %cst_260 = arith.constant 0.000000e+00 : f32
    %389 = vector.broadcast %cst_260 : f32 to vector<8x64xf32>
    %390 = arith.maximumf %388, %389 : vector<8x64xf32>
    %391 = tpu.iota {dimensions = array<i32: 0>} : vector<8x1xi32>
    %c1_i32 = arith.constant 1 : i32
    %392 = vector.broadcast %c1_i32 : i32 to vector<8x1xi32>
    %393 = arith.cmpi slt, %391, %392 : vector<8x1xi32>
    %cst_261 = arith.constant 0.000000e+00 : f32
    %394 = vector.shape_cast %393 : vector<8x1xi1> to vector<8x1xi1>
    %395 = vector.broadcast %394 : vector<8x1xi1> to vector<8x64xi1>
    %396 = vector.broadcast %cst_261 : f32 to vector<8x64xf32>
    %397 = arith.select %395, %390, %396 : vector<8x64xi1>, vector<8x64xf32>
    %c0_262 = arith.constant 0 : index
    %c0_263 = arith.constant 0 : index
    %398 = vector.load %arg8[%c0_262, %c0_263] : memref<256x64xbf16, #tpu.memory_space<vmem>>, vector<256x64xbf16>
    %399 = arith.truncf %397 : vector<8x64xf32> to vector<8x64xbf16>
    %c0_264 = arith.constant 0 : index
    %c0_265 = arith.constant 0 : index
    %c0_266 = arith.constant 0 : index
    %400 = vector.load %arg17[%c0_264, %c0_265, %c0_266] : memref<4x8x8xbf16, #tpu.memory_space<vmem>>, vector<1x8x8xbf16>
    %401 = vector.shape_cast %400 : vector<1x8x8xbf16> to vector<8x8xbf16>
    %cst_267 = arith.constant dense<0.000000e+00> : vector<8x64xf32>
    %402 = tpu.matmul %401, %399, %cst_267 {dimension_numbers = #tpu.dot_dimension_numbers<[1], [0], [0], [1], [0, 0, 1, 1], [], []>} : vector<8x8xbf16>, vector<8x64xbf16>, vector<8x64xf32> -> vector<8x64xf32>
    %c0_268 = arith.constant 0 : index
    %c0_269 = arith.constant 0 : index
    %403 = vector.load %arg23[%c0_268, %c0_269] : memref<64x384xf32, #tpu.memory_space<vmem>>, vector<8x64xf32>
    tpu.vector_store %arg23[%c0_268, %c0_269], %402 {strides = array<i32>} : memref<64x384xf32, #tpu.memory_space<vmem>>, vector<8x64xf32>,
    %c1_270 = arith.constant 1 : index
    %c0_271 = arith.constant 0 : index
    %c0_272 = arith.constant 0 : index
    %404 = vector.load %arg17[%c1_270, %c0_271, %c0_272] : memref<4x8x8xbf16, #tpu.memory_space<vmem>>, vector<1x8x8xbf16>
    %405 = vector.shape_cast %404 : vector<1x8x8xbf16> to vector<8x8xbf16>
    %cst_273 = arith.constant dense<0.000000e+00> : vector<8x64xf32>
    %406 = tpu.matmul %405, %399, %cst_273 {dimension_numbers = #tpu.dot_dimension_numbers<[1], [0], [0], [1], [0, 0, 1, 1], [], []>} : vector<8x8xbf16>, vector<8x64xbf16>, vector<8x64xf32> -> vector<8x64xf32>
    %c0_274 = arith.constant 0 : index
    %c64_275 = arith.constant 64 : index
    %407 = vector.load %arg23[%c0_274, %c64_275] : memref<64x384xf32, #tpu.memory_space<vmem>>, vector<8x64xf32>
    tpu.vector_store %arg23[%c0_274, %c64_275], %406 {strides = array<i32>} : memref<64x384xf32, #tpu.memory_space<vmem>>, vector<8x64xf32>,
    %c2_276 = arith.constant 2 : index
    %c0_277 = arith.constant 0 : index
    %c0_278 = arith.constant 0 : index
    %408 = vector.load %arg17[%c2_276, %c0_277, %c0_278] : memref<4x8x8xbf16, #tpu.memory_space<vmem>>, vector<1x8x8xbf16>
    %409 = vector.shape_cast %408 : vector<1x8x8xbf16> to vector<8x8xbf16>
    %cst_279 = arith.constant dense<0.000000e+00> : vector<8x64xf32>
    %410 = tpu.matmul %409, %399, %cst_279 {dimension_numbers = #tpu.dot_dimension_numbers<[1], [0], [0], [1], [0, 0, 1, 1], [], []>} : vector<8x8xbf16>, vector<8x64xbf16>, vector<8x64xf32> -> vector<8x64xf32>
    %c0_280 = arith.constant 0 : index
    %c128_281 = arith.constant 128 : index
    %411 = vector.load %arg23[%c0_280, %c128_281] : memref<64x384xf32, #tpu.memory_space<vmem>>, vector<8x64xf32>
    tpu.vector_store %arg23[%c0_280, %c128_281], %410 {strides = array<i32>} : memref<64x384xf32, #tpu.memory_space<vmem>>, vector<8x64xf32>,
    %c3_282 = arith.constant 3 : index
    %c0_283 = arith.constant 0 : index
    %c0_284 = arith.constant 0 : index
    %412 = vector.load %arg17[%c3_282, %c0_283, %c0_284] : memref<4x8x8xbf16, #tpu.memory_space<vmem>>, vector<1x8x8xbf16>
    %413 = vector.shape_cast %412 : vector<1x8x8xbf16> to vector<8x8xbf16>
    %cst_285 = arith.constant dense<0.000000e+00> : vector<8x64xf32>
    %414 = tpu.matmul %413, %399, %cst_285 {dimension_numbers = #tpu.dot_dimension_numbers<[1], [0], [0], [1], [0, 0, 1, 1], [], []>} : vector<8x8xbf16>, vector<8x64xbf16>, vector<8x64xf32> -> vector<8x64xf32>
    %c0_286 = arith.constant 0 : index
    %c192_287 = arith.constant 192 : index
    %415 = vector.load %arg23[%c0_286, %c192_287] : memref<64x384xf32, #tpu.memory_space<vmem>>, vector<8x64xf32>
    tpu.vector_store %arg23[%c0_286, %c192_287], %414 {strides = array<i32>} : memref<64x384xf32, #tpu.memory_space<vmem>>, vector<8x64xf32>,
    %c0_288 = arith.constant 0 : index
    %c0_289 = arith.constant 0 : index
    %416 = vector.load %arg23[%c0_288, %c0_289] : memref<64x384xf32, #tpu.memory_space<vmem>>, vector<8x256xf32>
    %417 = arith.truncf %416 : vector<8x256xf32> to vector<8x256xbf16>
    %cst_290 = arith.constant dense<0.000000e+00> : vector<8x64xf32>
    %418 = tpu.matmul %417, %398, %cst_290 {dimension_numbers = #tpu.dot_dimension_numbers<[1], [0], [0], [1], [0, 0, 1, 1], [], []>} : vector<8x256xbf16>, vector<256x64xbf16>, vector<8x64xf32> -> vector<8x64xf32>
    %c6_291 = arith.constant 6 : index
    %c0_292 = arith.constant 0 : index
    %419 = vector.load %arg20[%c6_291, %c0_292] : memref<16x128xf32, #tpu.memory_space<vmem>>, vector<1x64xf32>
    %420 = vector.broadcast %419 : vector<1x64xf32> to vector<8x64xf32>
    %421 = arith.addf %418, %420 : vector<8x64xf32>
    %cst_293 = arith.constant 0.000000e+00 : f32
    %422 = vector.broadcast %cst_293 : f32 to vector<8x64xf32>
    %423 = arith.maximumf %421, %422 : vector<8x64xf32>
    %424 = tpu.iota {dimensions = array<i32: 0>} : vector<8x1xi32>
    %c4_i32 = arith.constant 4 : i32
    %425 = vector.broadcast %c4_i32 : i32 to vector<8x1xi32>
    %426 = arith.cmpi slt, %424, %425 : vector<8x1xi32>
    %cst_294 = arith.constant 0.000000e+00 : f32
    %427 = vector.shape_cast %426 : vector<8x1xi1> to vector<8x1xi1>
    %428 = vector.broadcast %427 : vector<8x1xi1> to vector<8x64xi1>
    %429 = vector.broadcast %cst_294 : f32 to vector<8x64xf32>
    %430 = arith.select %428, %423, %429 : vector<8x64xi1>, vector<8x64xf32>
    %c0_295 = arith.constant 0 : index
    %c0_296 = arith.constant 0 : index
    %431 = vector.load %arg9[%c0_295, %c0_296] : memref<256x64xbf16, #tpu.memory_space<vmem>>, vector<256x64xbf16>
    %432 = arith.truncf %430 : vector<8x64xf32> to vector<8x64xbf16>
    %c0_297 = arith.constant 0 : index
    %c0_298 = arith.constant 0 : index
    %c0_299 = arith.constant 0 : index
    %433 = vector.load %arg18[%c0_297, %c0_298, %c0_299] : memref<4x16x8xbf16, #tpu.memory_space<vmem>>, vector<1x16x8xbf16>
    %434 = vector.shape_cast %433 : vector<1x16x8xbf16> to vector<16x8xbf16>
    %cst_300 = arith.constant dense<0.000000e+00> : vector<16x64xf32>
    %435 = tpu.matmul %434, %432, %cst_300 {dimension_numbers = #tpu.dot_dimension_numbers<[1], [0], [0], [1], [0, 0, 1, 1], [], []>} : vector<16x8xbf16>, vector<8x64xbf16>, vector<16x64xf32> -> vector<16x64xf32>
    %c0_301 = arith.constant 0 : index
    %c0_302 = arith.constant 0 : index
    %436 = vector.load %arg23[%c0_301, %c0_302] : memref<64x384xf32, #tpu.memory_space<vmem>>, vector<16x64xf32>
    tpu.vector_store %arg23[%c0_301, %c0_302], %435 {strides = array<i32>} : memref<64x384xf32, #tpu.memory_space<vmem>>, vector<16x64xf32>,
    %c1_303 = arith.constant 1 : index
    %c0_304 = arith.constant 0 : index
    %c0_305 = arith.constant 0 : index
    %437 = vector.load %arg18[%c1_303, %c0_304, %c0_305] : memref<4x16x8xbf16, #tpu.memory_space<vmem>>, vector<1x16x8xbf16>
    %438 = vector.shape_cast %437 : vector<1x16x8xbf16> to vector<16x8xbf16>
    %cst_306 = arith.constant dense<0.000000e+00> : vector<16x64xf32>
    %439 = tpu.matmul %438, %432, %cst_306 {dimension_numbers = #tpu.dot_dimension_numbers<[1], [0], [0], [1], [0, 0, 1, 1], [], []>} : vector<16x8xbf16>, vector<8x64xbf16>, vector<16x64xf32> -> vector<16x64xf32>
    %c0_307 = arith.constant 0 : index
    %c64_308 = arith.constant 64 : index
    %440 = vector.load %arg23[%c0_307, %c64_308] : memref<64x384xf32, #tpu.memory_space<vmem>>, vector<16x64xf32>
    tpu.vector_store %arg23[%c0_307, %c64_308], %439 {strides = array<i32>} : memref<64x384xf32, #tpu.memory_space<vmem>>, vector<16x64xf32>,
    %c2_309 = arith.constant 2 : index
    %c0_310 = arith.constant 0 : index
    %c0_311 = arith.constant 0 : index
    %441 = vector.load %arg18[%c2_309, %c0_310, %c0_311] : memref<4x16x8xbf16, #tpu.memory_space<vmem>>, vector<1x16x8xbf16>
    %442 = vector.shape_cast %441 : vector<1x16x8xbf16> to vector<16x8xbf16>
    %cst_312 = arith.constant dense<0.000000e+00> : vector<16x64xf32>
    %443 = tpu.matmul %442, %432, %cst_312 {dimension_numbers = #tpu.dot_dimension_numbers<[1], [0], [0], [1], [0, 0, 1, 1], [], []>} : vector<16x8xbf16>, vector<8x64xbf16>, vector<16x64xf32> -> vector<16x64xf32>
    %c0_313 = arith.constant 0 : index
    %c128_314 = arith.constant 128 : index
    %444 = vector.load %arg23[%c0_313, %c128_314] : memref<64x384xf32, #tpu.memory_space<vmem>>, vector<16x64xf32>
    tpu.vector_store %arg23[%c0_313, %c128_314], %443 {strides = array<i32>} : memref<64x384xf32, #tpu.memory_space<vmem>>, vector<16x64xf32>,
    %c3_315 = arith.constant 3 : index
    %c0_316 = arith.constant 0 : index
    %c0_317 = arith.constant 0 : index
    %445 = vector.load %arg18[%c3_315, %c0_316, %c0_317] : memref<4x16x8xbf16, #tpu.memory_space<vmem>>, vector<1x16x8xbf16>
    %446 = vector.shape_cast %445 : vector<1x16x8xbf16> to vector<16x8xbf16>
    %cst_318 = arith.constant dense<0.000000e+00> : vector<16x64xf32>
    %447 = tpu.matmul %446, %432, %cst_318 {dimension_numbers = #tpu.dot_dimension_numbers<[1], [0], [0], [1], [0, 0, 1, 1], [], []>} : vector<16x8xbf16>, vector<8x64xbf16>, vector<16x64xf32> -> vector<16x64xf32>
    %c0_319 = arith.constant 0 : index
    %c192_320 = arith.constant 192 : index
    %448 = vector.load %arg23[%c0_319, %c192_320] : memref<64x384xf32, #tpu.memory_space<vmem>>, vector<16x64xf32>
    tpu.vector_store %arg23[%c0_319, %c192_320], %447 {strides = array<i32>} : memref<64x384xf32, #tpu.memory_space<vmem>>, vector<16x64xf32>,
    %c0_321 = arith.constant 0 : index
    %c0_322 = arith.constant 0 : index
    %449 = vector.load %arg23[%c0_321, %c0_322] : memref<64x384xf32, #tpu.memory_space<vmem>>, vector<16x256xf32>
    %450 = arith.truncf %449 : vector<16x256xf32> to vector<16x256xbf16>
    %cst_323 = arith.constant dense<0.000000e+00> : vector<16x64xf32>
    %451 = tpu.matmul %450, %431, %cst_323 {dimension_numbers = #tpu.dot_dimension_numbers<[1], [0], [0], [1], [0, 0, 1, 1], [], []>} : vector<16x256xbf16>, vector<256x64xbf16>, vector<16x64xf32> -> vector<16x64xf32>
    %c7_324 = arith.constant 7 : index
    %c0_325 = arith.constant 0 : index
    %452 = vector.load %arg20[%c7_324, %c0_325] : memref<16x128xf32, #tpu.memory_space<vmem>>, vector<1x64xf32>
    %453 = vector.broadcast %452 : vector<1x64xf32> to vector<16x64xf32>
    %454 = arith.addf %451, %453 : vector<16x64xf32>
    %cst_326 = arith.constant 0.000000e+00 : f32
    %455 = vector.broadcast %cst_326 : f32 to vector<16x64xf32>
    %456 = arith.maximumf %454, %455 : vector<16x64xf32>
    %457 = tpu.iota {dimensions = array<i32: 0>} : vector<16x1xi32>
    %c9_i32_327 = arith.constant 9 : i32
    %458 = vector.broadcast %c9_i32_327 : i32 to vector<16x1xi32>
    %459 = arith.cmpi slt, %457, %458 : vector<16x1xi32>
    %cst_328 = arith.constant 0.000000e+00 : f32
    %460 = vector.shape_cast %459 : vector<16x1xi1> to vector<16x1xi1>
    %461 = vector.broadcast %460 : vector<16x1xi1> to vector<16x64xi1>
    %462 = vector.broadcast %cst_328 : f32 to vector<16x64xf32>
    %463 = arith.select %461, %456, %462 : vector<16x64xi1>, vector<16x64xf32>
    %c0_329 = arith.constant 0 : index
    %c0_330 = arith.constant 0 : index
    %464 = vector.load %arg10[%c0_329, %c0_330] : memref<256x128xbf16, #tpu.memory_space<vmem>>, vector<256x128xbf16>
    %465 = arith.truncf %463 : vector<16x64xf32> to vector<16x64xbf16>
    %c0_331 = arith.constant 0 : index
    %c0_332 = arith.constant 0 : index
    %c0_333 = arith.constant 0 : index
    %466 = vector.load %arg19[%c0_331, %c0_332, %c0_333] : memref<4x8x16xbf16, #tpu.memory_space<vmem>>, vector<1x8x16xbf16>
    %467 = vector.shape_cast %466 : vector<1x8x16xbf16> to vector<8x16xbf16>
    %cst_334 = arith.constant dense<0.000000e+00> : vector<8x64xf32>
    %468 = tpu.matmul %467, %465, %cst_334 {dimension_numbers = #tpu.dot_dimension_numbers<[1], [0], [0], [1], [0, 0, 1, 1], [], []>} : vector<8x16xbf16>, vector<16x64xbf16>, vector<8x64xf32> -> vector<8x64xf32>
    %c0_335 = arith.constant 0 : index
    %c0_336 = arith.constant 0 : index
    %469 = vector.load %arg23[%c0_335, %c0_336] : memref<64x384xf32, #tpu.memory_space<vmem>>, vector<8x64xf32>
    tpu.vector_store %arg23[%c0_335, %c0_336], %468 {strides = array<i32>} : memref<64x384xf32, #tpu.memory_space<vmem>>, vector<8x64xf32>,
    %c1_337 = arith.constant 1 : index
    %c0_338 = arith.constant 0 : index
    %c0_339 = arith.constant 0 : index
    %470 = vector.load %arg19[%c1_337, %c0_338, %c0_339] : memref<4x8x16xbf16, #tpu.memory_space<vmem>>, vector<1x8x16xbf16>
    %471 = vector.shape_cast %470 : vector<1x8x16xbf16> to vector<8x16xbf16>
    %cst_340 = arith.constant dense<0.000000e+00> : vector<8x64xf32>
    %472 = tpu.matmul %471, %465, %cst_340 {dimension_numbers = #tpu.dot_dimension_numbers<[1], [0], [0], [1], [0, 0, 1, 1], [], []>} : vector<8x16xbf16>, vector<16x64xbf16>, vector<8x64xf32> -> vector<8x64xf32>
    %c0_341 = arith.constant 0 : index
    %c64_342 = arith.constant 64 : index
    %473 = vector.load %arg23[%c0_341, %c64_342] : memref<64x384xf32, #tpu.memory_space<vmem>>, vector<8x64xf32>
    tpu.vector_store %arg23[%c0_341, %c64_342], %472 {strides = array<i32>} : memref<64x384xf32, #tpu.memory_space<vmem>>, vector<8x64xf32>,
    %c2_343 = arith.constant 2 : index
    %c0_344 = arith.constant 0 : index
    %c0_345 = arith.constant 0 : index
    %474 = vector.load %arg19[%c2_343, %c0_344, %c0_345] : memref<4x8x16xbf16, #tpu.memory_space<vmem>>, vector<1x8x16xbf16>
    %475 = vector.shape_cast %474 : vector<1x8x16xbf16> to vector<8x16xbf16>
    %cst_346 = arith.constant dense<0.000000e+00> : vector<8x64xf32>
    %476 = tpu.matmul %475, %465, %cst_346 {dimension_numbers = #tpu.dot_dimension_numbers<[1], [0], [0], [1], [0, 0, 1, 1], [], []>} : vector<8x16xbf16>, vector<16x64xbf16>, vector<8x64xf32> -> vector<8x64xf32>
    %c0_347 = arith.constant 0 : index
    %c128_348 = arith.constant 128 : index
    %477 = vector.load %arg23[%c0_347, %c128_348] : memref<64x384xf32, #tpu.memory_space<vmem>>, vector<8x64xf32>
    tpu.vector_store %arg23[%c0_347, %c128_348], %476 {strides = array<i32>} : memref<64x384xf32, #tpu.memory_space<vmem>>, vector<8x64xf32>,
    %c3_349 = arith.constant 3 : index
    %c0_350 = arith.constant 0 : index
    %c0_351 = arith.constant 0 : index
    %478 = vector.load %arg19[%c3_349, %c0_350, %c0_351] : memref<4x8x16xbf16, #tpu.memory_space<vmem>>, vector<1x8x16xbf16>
    %479 = vector.shape_cast %478 : vector<1x8x16xbf16> to vector<8x16xbf16>
    %cst_352 = arith.constant dense<0.000000e+00> : vector<8x64xf32>
    %480 = tpu.matmul %479, %465, %cst_352 {dimension_numbers = #tpu.dot_dimension_numbers<[1], [0], [0], [1], [0, 0, 1, 1], [], []>} : vector<8x16xbf16>, vector<16x64xbf16>, vector<8x64xf32> -> vector<8x64xf32>
    %c0_353 = arith.constant 0 : index
    %c192_354 = arith.constant 192 : index
    %481 = vector.load %arg23[%c0_353, %c192_354] : memref<64x384xf32, #tpu.memory_space<vmem>>, vector<8x64xf32>
    tpu.vector_store %arg23[%c0_353, %c192_354], %480 {strides = array<i32>} : memref<64x384xf32, #tpu.memory_space<vmem>>, vector<8x64xf32>,
    %c0_355 = arith.constant 0 : index
    %c0_356 = arith.constant 0 : index
    %482 = vector.load %arg23[%c0_355, %c0_356] : memref<64x384xf32, #tpu.memory_space<vmem>>, vector<8x256xf32>
    %483 = arith.truncf %482 : vector<8x256xf32> to vector<8x256xbf16>
    %cst_357 = arith.constant dense<0.000000e+00> : vector<8x128xf32>
    %484 = tpu.matmul %483, %464, %cst_357 {dimension_numbers = #tpu.dot_dimension_numbers<[1], [0], [0], [1], [0, 0, 1, 1], [], []>} : vector<8x256xbf16>, vector<256x128xbf16>, vector<8x128xf32> -> vector<8x128xf32>
    %c8_358 = arith.constant 8 : index
    %c0_359 = arith.constant 0 : index
    %485 = vector.load %arg20[%c8_358, %c0_359] : memref<16x128xf32, #tpu.memory_space<vmem>>, vector<1x128xf32>
    %486 = vector.broadcast %485 : vector<1x128xf32> to vector<8x128xf32>
    %487 = arith.addf %484, %486 : vector<8x128xf32>
    %cst_360 = arith.constant 0.000000e+00 : f32
    %488 = vector.broadcast %cst_360 : f32 to vector<8x128xf32>
    %489 = arith.maximumf %487, %488 : vector<8x128xf32>
    %490 = tpu.iota {dimensions = array<i32: 0>} : vector<8x1xi32>
    %c1_i32_361 = arith.constant 1 : i32
    %491 = vector.broadcast %c1_i32_361 : i32 to vector<8x1xi32>
    %492 = arith.cmpi slt, %490, %491 : vector<8x1xi32>
    %cst_362 = arith.constant 0.000000e+00 : f32
    %493 = vector.shape_cast %492 : vector<8x1xi1> to vector<8x1xi1>
    %494 = vector.broadcast %493 : vector<8x1xi1> to vector<8x128xi1>
    %495 = vector.broadcast %cst_362 : f32 to vector<8x128xf32>
    %496 = arith.select %494, %489, %495 : vector<8x128xi1>, vector<8x128xf32>
    %c0_363 = arith.constant 0 : index
    %c0_364 = arith.constant 0 : index
    %497 = vector.load %arg11[%c0_363, %c0_364] : memref<128x128xbf16, #tpu.memory_space<vmem>>, vector<128x128xbf16>
    %498 = arith.truncf %496 : vector<8x128xf32> to vector<8x128xbf16>
    %cst_365 = arith.constant dense<0.000000e+00> : vector<8x128xf32>
    %499 = tpu.matmul %498, %497, %cst_365 {dimension_numbers = #tpu.dot_dimension_numbers<[1], [0], [0], [1], [0, 0, 1, 1], [], []>} : vector<8x128xbf16>, vector<128x128xbf16>, vector<8x128xf32> -> vector<8x128xf32>
    %c9_366 = arith.constant 9 : index
    %c0_367 = arith.constant 0 : index
    %500 = vector.load %arg20[%c9_366, %c0_367] : memref<16x128xf32, #tpu.memory_space<vmem>>, vector<1x128xf32>
    %501 = vector.broadcast %500 : vector<1x128xf32> to vector<8x128xf32>
    %502 = arith.addf %499, %501 : vector<8x128xf32>
    %cst_368 = arith.constant 0.000000e+00 : f32
    %503 = vector.broadcast %cst_368 : f32 to vector<8x128xf32>
    %504 = arith.maximumf %502, %503 : vector<8x128xf32>
    %505 = tpu.iota {dimensions = array<i32: 0>} : vector<8x1xi32>
    %c1_i32_369 = arith.constant 1 : i32
    %506 = vector.broadcast %c1_i32_369 : i32 to vector<8x1xi32>
    %507 = arith.cmpi slt, %505, %506 : vector<8x1xi32>
    %cst_370 = arith.constant 0.000000e+00 : f32
    %508 = vector.shape_cast %507 : vector<8x1xi1> to vector<8x1xi1>
    %509 = vector.broadcast %508 : vector<8x1xi1> to vector<8x128xi1>
    %510 = vector.broadcast %cst_370 : f32 to vector<8x128xf32>
    %511 = arith.select %509, %504, %510 : vector<8x128xi1>, vector<8x128xf32>
    %c0_371 = arith.constant 0 : index
    %c0_372 = arith.constant 0 : index
    %512 = vector.load %arg12[%c0_371, %c0_372] : memref<128x128xbf16, #tpu.memory_space<vmem>>, vector<128x128xbf16>
    %513 = arith.truncf %511 : vector<8x128xf32> to vector<8x128xbf16>
    %cst_373 = arith.constant dense<0.000000e+00> : vector<8x128xf32>
    %514 = tpu.matmul %513, %512, %cst_373 {dimension_numbers = #tpu.dot_dimension_numbers<[1], [0], [0], [1], [0, 0, 1, 1], [], []>} : vector<8x128xbf16>, vector<128x128xbf16>, vector<8x128xf32> -> vector<8x128xf32>
    %c10_374 = arith.constant 10 : index
    %c0_375 = arith.constant 0 : index
    %515 = vector.load %arg20[%c10_374, %c0_375] : memref<16x128xf32, #tpu.memory_space<vmem>>, vector<1x128xf32>
    %516 = vector.broadcast %515 : vector<1x128xf32> to vector<8x128xf32>
    %517 = arith.addf %514, %516 : vector<8x128xf32>
    %cst_376 = arith.constant 0.000000e+00 : f32
    %518 = vector.broadcast %cst_376 : f32 to vector<8x128xf32>
    %519 = arith.maximumf %517, %518 : vector<8x128xf32>
    %520 = tpu.iota {dimensions = array<i32: 0>} : vector<8x1xi32>
    %c1_i32_377 = arith.constant 1 : i32
    %521 = vector.broadcast %c1_i32_377 : i32 to vector<8x1xi32>
    %522 = arith.cmpi slt, %520, %521 : vector<8x1xi32>
    %cst_378 = arith.constant 0.000000e+00 : f32
    %523 = vector.shape_cast %522 : vector<8x1xi1> to vector<8x1xi1>
    %524 = vector.broadcast %523 : vector<8x1xi1> to vector<8x128xi1>
    %525 = vector.broadcast %cst_378 : f32 to vector<8x128xf32>
    %526 = arith.select %524, %519, %525 : vector<8x128xi1>, vector<8x128xf32>
    %c0_379 = arith.constant 0 : index
    %c0_380 = arith.constant 0 : index
    %527 = vector.load %arg13[%c0_379, %c0_380] : memref<128x128xbf16, #tpu.memory_space<vmem>>, vector<128x128xbf16>
    %528 = arith.truncf %526 : vector<8x128xf32> to vector<8x128xbf16>
    %cst_381 = arith.constant dense<0.000000e+00> : vector<8x128xf32>
    %529 = tpu.matmul %528, %527, %cst_381 {dimension_numbers = #tpu.dot_dimension_numbers<[1], [0], [0], [1], [0, 0, 1, 1], [], []>} : vector<8x128xbf16>, vector<128x128xbf16>, vector<8x128xf32> -> vector<8x128xf32>
    %c11_382 = arith.constant 11 : index
    %c0_383 = arith.constant 0 : index
    %530 = vector.load %arg20[%c11_382, %c0_383] : memref<16x128xf32, #tpu.memory_space<vmem>>, vector<1x128xf32>
    %531 = vector.broadcast %530 : vector<1x128xf32> to vector<8x128xf32>
    %532 = arith.addf %529, %531 : vector<8x128xf32>
    %cst_384 = arith.constant 0.000000e+00 : f32
    %533 = vector.broadcast %cst_384 : f32 to vector<8x128xf32>
    %534 = arith.maximumf %532, %533 : vector<8x128xf32>
    %535 = tpu.iota {dimensions = array<i32: 0>} : vector<8x1xi32>
    %c1_i32_385 = arith.constant 1 : i32
    %536 = vector.broadcast %c1_i32_385 : i32 to vector<8x1xi32>
    %537 = arith.cmpi slt, %535, %536 : vector<8x1xi32>
    %cst_386 = arith.constant 0.000000e+00 : f32
    %538 = vector.shape_cast %537 : vector<8x1xi1> to vector<8x1xi1>
    %539 = vector.broadcast %538 : vector<8x1xi1> to vector<8x128xi1>
    %540 = vector.broadcast %cst_386 : f32 to vector<8x128xf32>
    %541 = arith.select %539, %534, %540 : vector<8x128xi1>, vector<8x128xf32>
    %c0_387 = arith.constant 0 : index
    %c0_388 = arith.constant 0 : index
    %542 = vector.load %arg14[%c0_387, %c0_388] : memref<128x128xbf16, #tpu.memory_space<vmem>>, vector<128x128xbf16>
    %543 = arith.truncf %541 : vector<8x128xf32> to vector<8x128xbf16>
    %cst_389 = arith.constant dense<0.000000e+00> : vector<8x128xf32>
    %544 = tpu.matmul %543, %542, %cst_389 {dimension_numbers = #tpu.dot_dimension_numbers<[1], [0], [0], [1], [0, 0, 1, 1], [], []>} : vector<8x128xbf16>, vector<128x128xbf16>, vector<8x128xf32> -> vector<8x128xf32>
    %c12_390 = arith.constant 12 : index
    %c0_391 = arith.constant 0 : index
    %545 = vector.load %arg20[%c12_390, %c0_391] : memref<16x128xf32, #tpu.memory_space<vmem>>, vector<1x128xf32>
    %546 = vector.broadcast %545 : vector<1x128xf32> to vector<8x128xf32>
    %547 = arith.addf %544, %546 : vector<8x128xf32>
    %548 = math.tanh %547 : vector<8x128xf32>
    %c0_392 = arith.constant 0 : index
    %c0_393 = arith.constant 0 : index
    %c0_394 = arith.constant 0 : index
    %549 = vector.load %arg22[%c0_392, %c0_393, %c0_394] : memref<1x8x128xf32, #tpu.memory_space<vmem>>, vector<1x8x128xf32>
    %550 = vector.shape_cast %549 : vector<1x8x128xf32> to vector<8x128xf32>
    %551 = vector.shape_cast %548 : vector<8x128xf32> to vector<1x8x128xf32>
    tpu.vector_store %arg22[%c0_392, %c0_393, %c0_394], %551 {strides = array<i32>} : memref<1x8x128xf32, #tpu.memory_space<vmem>>, vector<1x8x128xf32>,
    return
  }
  func.func @transform_0(%arg0: i32) -> (i32, i32, i32) {
    %c0_i32 = arith.constant 0 : i32
    %c0_i32_0 = arith.constant 0 : i32
    %c0_i32_1 = arith.constant 0 : i32
    return %arg0, %c0_i32, %c0_i32_0 : i32, i32, i32
  }
  func.func @transform_1(%arg0: i32) -> (i32, i32) {
    %c0_i32 = arith.constant 0 : i32
    %c0_i32_0 = arith.constant 0 : i32
    %c0_i32_1 = arith.constant 0 : i32
    return %c0_i32, %c0_i32_0 : i32, i32
  }
  func.func @transform_2(%arg0: i32) -> (i32, i32) {
    %c0_i32 = arith.constant 0 : i32
    %c0_i32_0 = arith.constant 0 : i32
    %c0_i32_1 = arith.constant 0 : i32
    return %c0_i32, %c0_i32_0 : i32, i32
  }
  func.func @transform_3(%arg0: i32) -> (i32, i32) {
    %c0_i32 = arith.constant 0 : i32
    %c0_i32_0 = arith.constant 0 : i32
    %c0_i32_1 = arith.constant 0 : i32
    return %c0_i32, %c0_i32_0 : i32, i32
  }
  func.func @transform_4(%arg0: i32) -> (i32, i32) {
    %c0_i32 = arith.constant 0 : i32
    %c0_i32_0 = arith.constant 0 : i32
    %c0_i32_1 = arith.constant 0 : i32
    return %c0_i32, %c0_i32_0 : i32, i32
  }
  func.func @transform_5(%arg0: i32) -> (i32, i32) {
    %c0_i32 = arith.constant 0 : i32
    %c0_i32_0 = arith.constant 0 : i32
    %c0_i32_1 = arith.constant 0 : i32
    return %c0_i32, %c0_i32_0 : i32, i32
  }
  func.func @transform_6(%arg0: i32) -> (i32, i32) {
    %c0_i32 = arith.constant 0 : i32
    %c0_i32_0 = arith.constant 0 : i32
    %c0_i32_1 = arith.constant 0 : i32
    return %c0_i32, %c0_i32_0 : i32, i32
  }
  func.func @transform_7(%arg0: i32) -> (i32, i32) {
    %c0_i32 = arith.constant 0 : i32
    %c0_i32_0 = arith.constant 0 : i32
    %c0_i32_1 = arith.constant 0 : i32
    return %c0_i32, %c0_i32_0 : i32, i32
  }
  func.func @transform_8(%arg0: i32) -> (i32, i32) {
    %c0_i32 = arith.constant 0 : i32
    %c0_i32_0 = arith.constant 0 : i32
    %c0_i32_1 = arith.constant 0 : i32
    return %c0_i32, %c0_i32_0 : i32, i32
  }
  func.func @transform_9(%arg0: i32) -> (i32, i32) {
    %c0_i32 = arith.constant 0 : i32
    %c0_i32_0 = arith.constant 0 : i32
    %c0_i32_1 = arith.constant 0 : i32
    return %c0_i32, %c0_i32_0 : i32, i32
  }
  func.func @transform_10(%arg0: i32) -> (i32, i32) {
    %c0_i32 = arith.constant 0 : i32
    %c0_i32_0 = arith.constant 0 : i32
    %c0_i32_1 = arith.constant 0 : i32
    return %c0_i32, %c0_i32_0 : i32, i32
  }
  func.func @transform_11(%arg0: i32) -> (i32, i32) {
    %c0_i32 = arith.constant 0 : i32
    %c0_i32_0 = arith.constant 0 : i32
    %c0_i32_1 = arith.constant 0 : i32
    return %c0_i32, %c0_i32_0 : i32, i32
  }
  func.func @transform_12(%arg0: i32) -> (i32, i32) {
    %c0_i32 = arith.constant 0 : i32
    %c0_i32_0 = arith.constant 0 : i32
    %c0_i32_1 = arith.constant 0 : i32
    return %c0_i32, %c0_i32_0 : i32, i32
  }
  func.func @transform_13(%arg0: i32) -> (i32, i32) {
    %c0_i32 = arith.constant 0 : i32
    %c0_i32_0 = arith.constant 0 : i32
    %c0_i32_1 = arith.constant 0 : i32
    return %c0_i32, %c0_i32_0 : i32, i32
  }
  func.func @transform_14(%arg0: i32) -> (i32, i32, i32) {
    %c0_i32 = arith.constant 0 : i32
    %c0_i32_0 = arith.constant 0 : i32
    %c0_i32_1 = arith.constant 0 : i32
    %c0_i32_2 = arith.constant 0 : i32
    return %c0_i32, %c0_i32_0, %c0_i32_1 : i32, i32, i32
  }
  func.func @transform_15(%arg0: i32) -> (i32, i32, i32) {
    %c0_i32 = arith.constant 0 : i32
    %c0_i32_0 = arith.constant 0 : i32
    %c0_i32_1 = arith.constant 0 : i32
    %c0_i32_2 = arith.constant 0 : i32
    return %c0_i32, %c0_i32_0, %c0_i32_1 : i32, i32, i32
  }
  func.func @transform_16(%arg0: i32) -> (i32, i32, i32) {
    %c0_i32 = arith.constant 0 : i32
    %c0_i32_0 = arith.constant 0 : i32
    %c0_i32_1 = arith.constant 0 : i32
    %c0_i32_2 = arith.constant 0 : i32
    return %c0_i32, %c0_i32_0, %c0_i32_1 : i32, i32, i32
  }
  func.func @transform_17(%arg0: i32) -> (i32, i32, i32) {
    %c0_i32 = arith.constant 0 : i32
    %c0_i32_0 = arith.constant 0 : i32
    %c0_i32_1 = arith.constant 0 : i32
    %c0_i32_2 = arith.constant 0 : i32
    return %c0_i32, %c0_i32_0, %c0_i32_1 : i32, i32, i32
  }
  func.func @transform_18(%arg0: i32) -> (i32, i32, i32) {
    %c0_i32 = arith.constant 0 : i32
    %c0_i32_0 = arith.constant 0 : i32
    %c0_i32_1 = arith.constant 0 : i32
    %c0_i32_2 = arith.constant 0 : i32
    return %c0_i32, %c0_i32_0, %c0_i32_1 : i32, i32, i32
  }
  func.func @transform_19(%arg0: i32) -> (i32, i32) {
    %c0_i32 = arith.constant 0 : i32
    %c0_i32_0 = arith.constant 0 : i32
    %c0_i32_1 = arith.constant 0 : i32
    return %c0_i32, %c0_i32_0 : i32, i32
  }
  func.func @transform_20(%arg0: i32) -> (i32, i32) {
    %c0_i32 = arith.constant 0 : i32
    %c0_i32_0 = arith.constant 0 : i32
    %c0_i32_1 = arith.constant 0 : i32
    return %c0_i32, %c0_i32_0 : i32, i32
  }
  func.func @transform_21(%arg0: i32) -> (i32, i32, i32) {
    %c0_i32 = arith.constant 0 : i32
    %c0_i32_0 = arith.constant 0 : i32
    %c0_i32_1 = arith.constant 0 : i32
    return %arg0, %c0_i32, %c0_i32_0 : i32, i32, i32
  }
}

</mosaic_0001>

<bundles_post_ra>
// kernel: forward.1
= control target key start
LH: loop header
LB: loop body
LE: loop exit
PB: predicated region body
PF: predicated region fallthrough
CT: control target
= control target key end

     0   :  { %s9360_s0 = inlined_call_operand.vmem [shape: f32[2,64,16], index: 0, kind: input, shape index: {}]   ;;  %s9361_s1 = inlined_call_operand.vmem [shape: bf16[144,16], index: 1, kind: input, shape index: {}]   ;;  %s9362_s2 = inlined_call_operand.vmem [shape: bf16[144,16], index: 2, kind: input, shape index: {}]   ;;  %s9363_s3 = inlined_call_operand.vmem [shape: bf16[144,32], index: 3, kind: input, shape index: {}]   ;;  %s9364_s4 = inlined_call_operand.vmem [shape: bf16[288,32], index: 4, kind: input, shape index: {}]   ;;  %s9365_s5 = inlined_call_operand.vmem [shape: bf16[288,32], index: 5, kind: input, shape index: {}]   ;;  %s9366_s6 = inlined_call_operand.vmem [shape: bf16[288,64], index: 6, kind: input, shape index: {}]   ;;  %s9367_s7 = inlined_call_operand.vmem [shape: bf16[256,64], index: 7, kind: input, shape index: {}]   ;;  %s9368_s8 = inlined_call_operand.vmem [shape: bf16[256,64], index: 8, kind: input, shape index: {}]   ;;  %s9369_s9 = inlined_call_operand.vmem [shape: bf16[256,128], index: 9, kind: input, shape index: {}]   ;;  %s9370_s10 = inlined_call_operand.vmem [shape: bf16[128,128], index: 10, kind: input, shape index: {}]   ;;  %s9371_s11 = inlined_call_operand.vmem [shape: bf16[128,128], index: 11, kind: input, shape index: {}]   ;;  %s9372_s12 = inlined_call_operand.vmem [shape: bf16[128,128], index: 12, kind: input, shape index: {}]   ;;  %s9373_s13 = inlined_call_operand.vmem [shape: bf16[128,128], index: 13, kind: input, shape index: {}]   ;;  %s9374_s14 = inlined_call_operand.vmem [shape: bf16[9,16,64], index: 14, kind: input, shape index: {}]   ;;  %s9375_s15 = inlined_call_operand.vmem [shape: bf16[9,8,16], index: 15, kind: input, shape index: {}]   ;;  %s9376_s16 = inlined_call_operand.vmem [shape: bf16[4,8,8], index: 16, kind: input, shape index: {}]   ;;  %s9377_s17 = inlined_call_operand.vmem [shape: bf16[4,16,8], index: 17, kind: input, shape index: {}]   ;;  %s9378_s18 = inlined_call_operand.vmem [shape: bf16[4,8,16], index: 18, kind: input, shape index: {}]   ;;  %s9379_s19 = inlined_call_operand.vmem [shape: f32[16,128], index: 19, kind: input, shape index: {}]   ;;  %s9380_s20 = inlined_call_operand.vmem [shape: f32[64,128], index: 20, kind: input, shape index: {}]   ;;  %s9381_s21 = inlined_call_operand.vmem [shape: f32[2,8,128], index: 21, kind: output, shape index: {}]  }
   0x1   :  { %9415 = sst [smem:[#allocation10_spill]] %s9360_s0 }
   0x2   :  { %9416 = sst [smem:[#allocation11_spill]] %s9361_s1 }
   0x3   :  { %9417 = sst [smem:[#allocation12_spill]] %s9362_s2  ;;  %s7041_s2 = smov 0  }
   0x4   :  { %9418 = sst [smem:[#allocation13_spill]] %s9363_s3 }
   0x5   :  { %9419 = sst [smem:[#allocation14_spill]] %s9364_s4 }
   0x6   :  { %9420 = sst [smem:[#allocation15_spill]] %s9365_s5 }
   0x7   :  { %9421 = sst [smem:[#allocation16_spill]] %s9374_s14 }
   0x8   :  { %9422 = sst [smem:[#allocation17_spill]] %s9380_s20 }
   0x9 LB: > { %s5642_s25 = sadd.s32 4294967295, %s6885_s2   ;;  %p5646_p0 = scmp.ge.s32.totalorder %s6885_s2, 1  ;;  %s6885_s2 = sphi %s7041_s2, %s31_s2  }
   0xa   : > { %p587_p1 = scmp.lt.s32.totalorder %s6885_s2, 3 }
   0xc   : > { %p588_p2 = pnand %p5646_p0, %p587_p1 }
   0xe   : > { %591 = sbr.rel (%p588_p2) target bundleno = 4494 (0x118e), region = 104 }
  0x13   : > { %s9423_s20 = sld [smem:[#allocation17_spill]]  ;;  %v6887_v1 = vmov 3   ;;  %v6888_v2 = vmov 2   ;;  %v6889_v3 = vmov 1   ;;  %v6890_v5 = vmov 5   ;;  %p646_p3 = scmp.lt.s32.totalorder %s5642_s25, 1 }
  0x14   : > { %6706 = vset.pattern.permute.xlu2 %v6887_v1  ;;  %6705 = vset.pattern.permute.xlu1 %v6888_v2  ;;  %v6891_v6 = vmov 4   ;;  %v6892_v7 = vmov 6   ;;  %v6893_v8 = vmov 7   ;;  %s9424_s3 = sld [smem:[#allocation10_spill]]  ;;  %vm880_vm0 = vcmask 1046528   ;;  %s9410_s29 = smov 32  }
  0x15   : > { %6704 = vset.pattern.permute.xlu0 %v6889_v3  ;;  %s9464_s25 = smov (!%p646_p3, %s5642_s25), 1  ;;  %vm684_vm1 = vcmask 1040384   ;;  %s6895_s0 = smov 48   ;;  %v6896_v39 = vmov 0   ;;  %v6900_v53 = vmov 8   ;;  %vm772_vm2 = vcmask 130048  }
  0x16   : > { %s6477_s24 = sshll.u32 %s9464_s25, 6  ;;  %s9406_s4 = smov 80   ;;  %vm869_vm3 = vcmask 261248   ;;  %vm992_vm4 = vcmask 392448   ;;  %vm1089_vm5 = vcmask 523648   ;;  %vm1186_vm6 = vcmask 654848  }
  0x17   : > { %s9404_s30 = smov 96   ;;  %s6899_s23 = smov 16   ;;  %vm1283_vm7 = vcmask 786048   ;;  %vm1380_vm8 = vcmask 917248   ;;  %vm1477_vm9 = vcmask 1048448   ;;  %vm2771_vm10 = vcmask 523264  }
  0x18   : > { %s9408_s26 = smov 64   ;;  %s9402_s27 = smov 112   ;;  %vm3229_vm11 = vcmask 261120   ;;  %vm3209_vm13 = vcmask 1043456   ;;  %vm3267_vm14 = vcmask 1041408   ;;  %vm3234_vm15 = vcmask 1042432  }
  0x19   : > { %v7052_v0 = vld [vmem:[%s9423_s20] sm:$0xff]  ;;  %v7063_v4 = vld [vmem:[%s9423_s20 + $0x8] sm:$0xff]  ;;  %v7087_v9 = vld [vmem:[%s9423_s20 + $0x18] sm:$0xff]  ;;  %s9425_s5 = sld [smem:[#allocation11_spill]] }
  0x1a   : > { %1011 = vperm.xlu2 %6706, %v7052_v0   ;;  %914 = vperm.xlu1 %6705, %v7052_v0   ;;  %v7093_v10 = vld [vmem:[%s9423_s20 + $0x10] sm:$0xff]  ;;  %v7114_v11 = vld [vmem:[%s9423_s20 + $0x28] sm:$0xff]  ;;  %v7128_v12 = vld [vmem:[%s9423_s20 + $0x20] sm:$0xff]  ;;  %s7150_s28 = scalar_lea.vmem %s9424_s3, %s6477_s24  ;;  %s9441_s1 = sld [smem:[#allocation12_spill]] }
  0x1b   : > { %791 = vperm.xlu0 %6704, %v7052_v0   ;;  %v7153_v15 = vld [vmem:[%s7150_s28] sm:$0xff]  ;;  %v7156_v16 = vld [vmem:[%s7150_s28 + $0x38] sm:$0xff]  ;;  %v7170_v21 = vld [vmem:[%s7150_s28 + $0x8] sm:$0xff]  ;;  %s9450_s14 = sld [smem:[#allocation16_spill]]  ;;  %s9454_s24 = smov 112  }
  0x1c   : > { %v878_v18 = vrot.slane %v7156_v16, 1  ;;  %v881_v19 = vrot.slane %v7153_v15, 1  ;;  %v696_v26 = vrot.slane %v7153_v15, 7  ;;  %v697_v27 = vrot.slane %v7170_v21, 7  ;;  %v7195_v34 = vld [vmem:[%s7150_s28 + $0x10] sm:$0xff]  ;;  %v7227_v46 = vld [vmem:[%s9423_s20 + $0x38] sm:$0xff] }
  0x1d   : > { %v882_v31 = vrot.slane %v7170_v21, 1  ;;  %v699_v38 = vrot.slane %v7195_v34, 7  ;;  %v686_v50 = vrot.slane %v7156_v16, 7  ;;  %v7259_v60 = vld [vmem:[%s9423_s20 + $0x30] sm:$0xff]  ;;  %v884_v62 = vrot.slane %v7195_v34, 1 }
  0x1e   : > { %v7167_v20 = vsel %vm880_vm0, %v878_v18, %v881_v19  ;;  %v7183_v28 = vsel %vm684_vm1, %v696_v26, %v697_v27 }
  0x1f   : > { %v7200_v35 = vsel %vm880_vm0, %v881_v19, %v882_v31  ;;  %v7214_v42 = vsel %vm684_vm1, %v697_v27, %v699_v38  ;;  %v7241_v52 = vsel %vm684_vm1, %v686_v50, %v696_v26 }
  0x22   : > { %1016 = vperm.xlu2 %6706, %v7063_v4   ;;  %919 = vperm.xlu1 %6705, %v7063_v4  }
  0x23   : > { %796 = vperm.xlu0 %6704, %v7063_v4  }
  0x2a   : > { %6708 = vset.pattern.permute.xlu2 %v6890_v5  ;;  %6707 = vset.pattern.permute.xlu1 %v6891_v6 }
  0x2b   : > { %1205 = vperm.xlu2 %6708, %v7052_v0   ;;  %1113 = vperm.xlu1 %6707, %v7063_v4  }
  0x2c   : > { %6711 = vset.pattern.permute.xlu0 %v6892_v7 }
  0x2d   : > { %1307 = vperm.xlu0 %6711, %v7063_v4  }
  0x33   : > { %6710 = vset.pattern.permute.xlu2 %v6892_v7  ;;  %6709 = vset.pattern.permute.xlu1 %v6890_v5 }
  0x34   : > { %1302 = vperm.xlu2 %6710, %v7052_v0   ;;  %1210 = vperm.xlu1 %6709, %v7063_v4  }
  0x35   : > { %6712 = vset.pattern.permute.xlu0 %v6891_v6 }
  0x36   : > { %1108 = vperm.xlu0 %6712, %v7052_v0  }
  0x3c   : > { %6714 = vset.pattern.permute.xlu2 %v6893_v8  ;;  %6713 = vset.pattern.permute.xlu1 %v6893_v8 }
  0x3d   : > { %1404 = vperm.xlu2 %6714, %v7063_v4   ;;  %1399 = vperm.xlu1 %6713, %v7052_v0  }
  0x3e   : > { %1123 = vperm.xlu0 %6712, %v7087_v9  }
  0x45   : > { %6716 = vset.pattern.permute.xlu2 %v6889_v3  ;;  %6715 = vset.pattern.permute.xlu1 %v6889_v3 }
  0x46   : > { %806 = vperm.xlu2 %6716, %v7087_v9   ;;  %801 = vperm.xlu1 %6715, %v7093_v10  }
  0x47   : > { %6725 = vset.pattern.permute.xlu0 %v6893_v8 }
  0x48   : > { %1409 = vperm.xlu0 %6725, %v7093_v10  }
  0x4e   : > { %6718 = vset.pattern.permute.xlu2 %v6887_v1  ;;  %6717 = vset.pattern.permute.xlu1 %v6888_v2 }
  0x4f   : > { %1021 = vperm.xlu2 %6718, %v7093_v10   ;;  %929 = vperm.xlu1 %6717, %v7087_v9  }
  0x50   : > { %6726 = vset.pattern.permute.xlu0 %v6888_v2 }
  0x51   : > { %924 = vperm.xlu0 %6726, %v7093_v10  }
  0x57   : > { %6720 = vset.pattern.permute.xlu2 %v6891_v6  ;;  %6719 = vset.pattern.permute.xlu1 %v6887_v1 }
  0x58   : > { %1118 = vperm.xlu2 %6720, %v7093_v10   ;;  %1026 = vperm.xlu1 %6719, %v7087_v9  }
  0x59   : > { %939 = vperm.xlu0 %6726, %v7114_v11  }
  0x60   : > { %6722 = vset.pattern.permute.xlu2 %v6890_v5  ;;  %6721 = vset.pattern.permute.xlu1 %v6890_v5 }
  0x61   : > { %1220 = vperm.xlu2 %6722, %v7087_v9   ;;  %1215 = vperm.xlu1 %6721, %v7093_v10  }
  0x69   : > { %6724 = vset.pattern.permute.xlu2 %v6892_v7  ;;  %6723 = vset.pattern.permute.xlu1 %v6892_v7 }
  0x6a   : > { %1317 = vperm.xlu2 %6724, %v7087_v9   ;;  %1312 = vperm.xlu1 %6723, %v7093_v10  }
  0x72   : > { %6728 = vset.pattern.permute.xlu2 %v6889_v3  ;;  %6727 = vset.pattern.permute.xlu1 %v6893_v8 }
  0x73   : > { %811 = vperm.xlu2 %6728, %v7128_v12   ;;  %1414 = vperm.xlu1 %6727, %v7087_v9  }
  0x74   : > { %v7134_v13 = vpop.permute.xlu2 %1011 }
  0x75   : > { %v1049_v56 = vmul.f32 %v7134_v13, %v7241_v52 }
  0x7b   : > { %6730 = vset.pattern.permute.xlu2 %v6888_v2  ;;  %6729 = vset.pattern.permute.xlu1 %v6889_v3 }
  0x7c   : > { %934 = vperm.xlu2 %6730, %v7128_v12   ;;  %816 = vperm.xlu1 %6729, %v7114_v11   ;;  %v1017_v14 = vpop.permute.xlu2 %1016 }
  0x7d   : > { %v1050_v30 = vmul.f32 %v1017_v14, %v7183_v28  ;;  %v7273_v14 = vsel %vm880_vm0, %v882_v31, %v884_v62 }
  0x84   : > { %6732 = vset.pattern.permute.xlu2 %v6887_v1  ;;  %6731 = vset.pattern.permute.xlu1 %v6887_v1 }
  0x85   : > { %1036 = vperm.xlu2 %6732, %v7114_v11   ;;  %1031 = vperm.xlu1 %6731, %v7128_v12   ;;  %v1206_v17 = vpop.permute.xlu2 %1205 }
  0x86   : > { %v1243_v36 = vmul.f32 %v1206_v17, %v7200_v35 }
  0x8c   : > { %v915_v22 = vpop.permute.xlu1 %914 }
  0x8d   : > { %v952_v23 = vmul.f32 %v915_v22, %v7167_v20  ;;  %6734 = vset.pattern.permute.xlu2 %v6891_v6  ;;  %6733 = vset.pattern.permute.xlu1 %v6891_v6  ;;  %v792_v24 = vpop.permute.xlu0 %791 }
  0x8e   : > { %1133 = vperm.xlu2 %6734, %v7114_v11   ;;  %1128 = vperm.xlu1 %6733, %v7128_v12   ;;  %v7177_v25 = vpop.permute.xlu2 %1302  ;;  %v829_v47 = vmul.f32 %v792_v24, %v7156_v16 }
  0x8f   : > { %968 = vrot.lane.b32.xlu0 %v952_v23, %s9410_s29  ;;  %v1340_v22 = vmul.f32 %v7177_v25, %v7183_v28 }
  0x94   : > { %v920_v29 = vpop.permute.xlu1 %919 }
  0x95   : > { %v797_v32 = vpop.permute.xlu0 %796  ;;  %v953_v54 = vmul.f32 %v920_v29, %v7200_v35 }
  0x96   : > { %6736 = vset.pattern.permute.xlu2 %v6892_v7  ;;  %6735 = vset.pattern.permute.xlu1 %v6890_v5  ;;  %v830_v49 = vmul.f32 %v797_v32, %v7153_v15 }
  0x97   : > { %1322 = vperm.xlu2 %6736, %v7128_v12   ;;  %1230 = vperm.xlu1 %6735, %v7114_v11   ;;  %v7191_v33 = vpop.permute.xlu2 %1404 }
  0x98   : > { %1067 = vrot.lane.b32.xlu0 %v1050_v30, %s6895_s0  ;;  %v1438_v29 = vmul.f32 %v7191_v33, %v7195_v34 }
  0x9d   : > { %v1114_v37 = vpop.permute.xlu1 %1113 }
  0x9e   : > { %v1147_v61 = vmul.f32 %v1114_v37, %v7170_v21 }
  0x9f   : > { %6737 = vset.pattern.permute.xlu1 %v6892_v7  ;;  %6738 = vset.pattern.permute.xlu2 %v6896_v39  ;;  %v1308_v41 = vpop.permute.xlu0 %1307 }
  0xa0   : > { %1259 = vrot.lane.b32.xlu0 %v1243_v36, %s9406_s4  ;;  %1327 = vperm.xlu1 %6737, %v7114_v11   ;;  %v7208_v40 = vpop.permute.xlu2 %806  ;;  %v1341_v43 = vmul.f32 %v1308_v41, %v7214_v42  ;;  %v7296_v36 = vld [vmem:[%s7150_s28 + $0x18] sm:$0xff] }
  0xa1   : > { %726 = vperm.xlu2 %6738, %v7052_v0   ;;  %v701_v37 = vrot.slane %v7296_v36, 7 }
  0xa3   : > { %v7307_v41 = vsel %vm684_vm1, %v699_v38, %v701_v37 }
  0xa6   : > { %v1211_v44 = vpop.permute.xlu1 %1210 }
  0xa7   : > { %v1244_v19 = vmul.f32 %v1211_v44, %v7273_v14 }
  0xa8   : > { %1358 = vrot.lane.b32.xlu0 %v1341_v43, %s9404_s30  ;;  %6739 = vset.pattern.permute.xlu1 %v6893_v8  ;;  %v1109_v55 = vpop.permute.xlu0 %1108 }
  0xa9   : > { %6740 = vset.pattern.permute.xlu2 %v6893_v8  ;;  %1419 = vperm.xlu1 %6739, %v7128_v12   ;;  %v7221_v45 = vpop.permute.xlu2 %1021  ;;  %v1146_v59 = vmul.f32 %v1109_v55, %v7153_v15  ;;  %v7339_v55 = vld [vmem:[%s7150_s28 + $0x28] sm:$0xff] }
  0xaa   : > { %1424 = vperm.xlu2 %6740, %v7114_v11  }
  0xaf   : > { %v1400_v48 = vpop.permute.xlu1 %1399 }
  0xb0   : > { %949 = vperm.xlu0 %6726, %v7227_v46   ;;  %v7263_v63 = vpop.permute.xlu0 %1123  ;;  %v1437_v27 = vmul.f32 %v1400_v48, %v7170_v21 }
  0xb1   : > { %845 = vrot.lane.b32.xlu1 %v829_v47, %s6899_s23 }
  0xb2   : > { %847 = vrot.lane.b32.xlu2 %v830_v49, %s6899_s23  ;;  %v7235_v51 = vpop.permute.xlu2 %1118  ;;  %6741 = vset.pattern.permute.xlu1 %v6900_v53 }
  0xb3   : > { %6742 = vset.pattern.permute.xlu2 %v6889_v3 }
  0xb8   : > { %6745 = vset.pattern.permute.xlu0 %v6890_v5  ;;  %v7248_v57 = vpop.permute.xlu1 %801 }
  0xb9   : > { %1225 = vperm.xlu0 %6745, %v7128_v12   ;;  %970 = vrot.lane.b32.xlu1 %v953_v54, %s9410_s29 }
  0xba   : > { %1065 = vrot.lane.b32.xlu2 %v1049_v56, %s6895_s0  ;;  %v7280_v23 = vpop.permute.xlu0 %1409  ;;  %v7342_v56 = vld [vmem:[%s7150_s28 + $0x30] sm:$0xff] }
  0xbb   : > { %v7253_v58 = vpop.permute.xlu2 %1220 }
  0xc1   : > { %1235 = vperm.xlu0 %6745, %v7259_v60   ;;  %v7266_v13 = vpop.permute.xlu1 %929  ;;  %1162 = vrot.lane.b32.xlu1 %v1146_v59, %s9408_s26 }
  0xc2   : > { %1164 = vrot.lane.b32.xlu2 %v1147_v61, %s9408_s26  ;;  %v685_v61 = vrot.slane %v7342_v56, 7 }
  0xc3   : > { %v925_v30 = vpop.permute.xlu0 %924 }
  0xc4   : > { %v1318_v17 = vpop.permute.xlu2 %1317  ;;  %v954_v31 = vmul.f32 %v925_v30, %v7273_v14 }
  0xc9   : > { %6750 = vset.pattern.permute.xlu0 %v6896_v39  ;;  %1261 = vrot.lane.b32.xlu1 %v1244_v19, %s9406_s4  ;;  %v705_v19 = vrot.slane %v7339_v55, 7 }
  0xca   : > { %1356 = vrot.lane.b32.xlu2 %v1340_v22, %s9404_s30  ;;  %731 = vperm.xlu0 %6750, %v7063_v4   ;;  %v1027_v24 = vpop.permute.xlu1 %1026 }
  0xcb   : > { %v1052_v44 = vmul.f32 %v1027_v24, %v7307_v41 }
  0xcd   : > { %v7284_v26 = vpop.permute.xlu2 %811 }
  0xd1   : > { %1453 = vrot.lane.b32.xlu1 %v1437_v27, %s9402_s27  ;;  %v7355_v27 = vpop.permute.xlu0 %939 }
  0xd2   : > { %1455 = vrot.lane.b32.xlu2 %v1438_v29, %s9402_s27  ;;  %741 = vperm.xlu0 %6750, %v7087_v9   ;;  %v7361_v29 = vsel %vm684_vm1, %v685_v61, %v686_v50 }
  0xd3   : > { %v1216_v25 = vpop.permute.xlu1 %1215 }
  0xd6   : > { %v7293_v32 = vpop.permute.xlu2 %934 }
  0xd9   : > { %1501 = vperm.xlu1 %6741, %v7063_v4   ;;  %v886_v4 = vrot.slane %v7296_v36, 1 }
  0xda   : > { %821 = vperm.xlu2 %6742, %v7259_v60   ;;  %972 = vrot.lane.b32.xlu0 %v954_v31, %s9410_s29 }
  0xdb   : > { %v7323_v47 = vsel %vm880_vm0, %v884_v62, %v886_v4 }
  0xdc   : > { %v7302_v33 = vpop.permute.xlu1 %1312 }
  0xdf   : > { %v7309_v43 = vpop.permute.xlu2 %1036 }
  0xe1   : > { %6743 = vset.pattern.permute.xlu1 %v6889_v3  ;;  %v7326_v3 = vld [vmem:[%s7150_s28 + $0x20] sm:$0xff]  ;;  %s9455_s28 = sld [smem:[#allocation13_spill]] }
  0xe2   : > { %6744 = vset.pattern.permute.xlu2 %v6888_v2  ;;  %1071 = vrot.lane.b32.xlu0 %v1052_v44, %s6895_s0  ;;  %v1245_v2 = vmul.f32 %v1216_v25, %v7323_v47  ;;  %v703_v49 = vrot.slane %v7326_v3, 7 }
  0xe3   : > { %826 = vperm.xlu1 %6743, %v7227_v46   ;;  %944 = vperm.xlu2 %6744, %v7259_v60  }
  0xe4   : > { %v7336_v54 = vsel %vm684_vm1, %v701_v37, %v703_v49 }
  0xe5   : > { %v7318_v38 = vpop.permute.xlu1 %1414  ;;  %v1343_v62 = vmul.f32 %v1318_v17, %v7336_v54 }
  0xe8   : > { %v1134_v48 = vpop.permute.xlu2 %1133 }
  0xea   : > { %1263 = vrot.lane.b32.xlu0 %v1245_v2, %s9406_s4 }
  0xeb   : > { %6746 = vset.pattern.permute.xlu1 %v6887_v1  ;;  %6747 = vset.pattern.permute.xlu2 %v6887_v1  ;;  %v7349_v1 = vsel %vm684_vm1, %v705_v19, %v685_v61  ;;  %v7387_v61 = vsel %vm684_vm1, %v703_v49, %v705_v19 }
  0xec   : > { %1041 = vperm.xlu1 %6746, %v7259_v60   ;;  %1046 = vperm.xlu2 %6747, %v7227_v46  }
  0xee   : > { %v817_v59 = vpop.permute.xlu1 %816 }
  0xef   : > { %v834_v17 = vmul.f32 %v817_v59, %v7326_v3 }
  0xf1   : > { %v1323_v22 = vpop.permute.xlu2 %1322 }
  0xf2   : > { %1362 = vrot.lane.b32.xlu0 %v1343_v62, %s9404_s30 }
  0xf4   : > { %6748 = vset.pattern.permute.xlu1 %v6891_v6  ;;  %6749 = vset.pattern.permute.xlu2 %v6891_v6 }
  0xf5   : > { %1138 = vperm.xlu1 %6748, %v7259_v60   ;;  %1143 = vperm.xlu2 %6749, %v7227_v46  }
  0xf7   : > { %v1032_v24 = vpop.permute.xlu1 %1031 }
  0xf8   : > { %v1053_v30 = vmul.f32 %v1032_v24, %v7336_v54  ;;  %v831_v24 = vmul.f32 %v7248_v57, %v7170_v21 }
  0xfa   : > { %855 = vrot.lane.b32.xlu0 %v834_v17, %s6899_s23 }
  0xfb   : > { %v727_v25 = vpop.permute.xlu2 %726 }
  0xfc   : > { %v764_v6 = vmul.f32 %v727_v25, %v7361_v29  ;;  %v6483_v25 = vld [vmem:[%s9425_s5 + $0x28] sm:$0xff] }
  0xfd   : > { %6751 = vset.pattern.permute.xlu1 %v6890_v5  ;;  %6752 = vset.pattern.permute.xlu2 %v6892_v7  ;;  %v1151_v5 = vmul.f32 %v1134_v48, %v7339_v55  ;;  %v1344_v48 = vmul.f32 %v1323_v22, %v7387_v61  ;;  %v832_v22 = vmul.f32 %v7208_v40, %v7195_v34  ;;  %v6482_v40 = vld [vmem:[%s9425_s5 + $0x20] sm:$0xff] }
  0xfe   : > { %773 = vst.msk [vmem:[#allocation2] sm:$0xff] %vm772_vm2, %v764_v6  ;;  %1240 = vperm.xlu1 %6751, %v7227_v46   ;;  %1332 = vperm.xlu2 %6752, %v7259_v60  }
 0x100   : > { %v7371_v50 = vpop.permute.xlu1 %1128 }
 0x101   : > { %v969_v31 = vpop.permute.xlu0 %968 }
 0x102   : > { %1073 = vrot.lane.b32.xlu0 %v1053_v30, %s6895_s0  ;;  %v1051_v30 = vmul.f32 %v7221_v45, %v7214_v42 }
 0x104   : > { %v1425_v37 = vpop.permute.xlu2 %1424 }
 0x105   : > { %v1442_v17 = vmul.f32 %v1425_v37, %v7342_v56  ;;  %v955_v37 = vmul.f32 %v7266_v13, %v7323_v47  ;;  %v6480_v13 = vld [vmem:[%s9425_s5 + $0x10] sm:$0xff] }
 0x106   : > { %6753 = vset.pattern.permute.xlu1 %v6892_v7  ;;  %6754 = vset.pattern.permute.xlu2 %v6896_v39  ;;  %v6485_v7 = vld [vmem:[%s9425_s5 + $0x38] sm:$0xff] }
 0x107   : > { %1337 = vperm.xlu1 %6753, %v7227_v46   ;;  %736 = vperm.xlu2 %6754, %v7093_v10  }
 0x108   : > { %1642 = vmatpush.bf16.msra.mxu0 %v6485_v7 }
 0x109   : > { %v7379_v44 = vpop.permute.xlu1 %1230 }
 0x10a   : > { %1172 = vrot.lane.b32.xlu0 %v1151_v5, %s9408_s26  ;;  %v7382_v2 = vpop.permute.xlu0 %1067  ;;  %v6481_v5 = vld [vmem:[%s9425_s5 + $0x18] sm:$0xff] }
 0x10c   : > { %v7384_v59 = vpop.permute.xlu2 %847 }
 0x10f   : > { %6755 = vset.pattern.permute.xlu1 %v6893_v8  ;;  %6756 = vset.pattern.permute.xlu2 %v6893_v8  ;;  %v6484_v8 = vld [vmem:[%s9425_s5 + $0x30] sm:$0xff] }
 0x110   : > { %1429 = vperm.xlu1 %6755, %v7259_v60   ;;  %1434 = vperm.xlu2 %6756, %v7227_v46  }
 0x111   : > { %1643 = vmatpush.bf16.msra.mxu0 %v6484_v8  ;;  %v1148_v8 = vmul.f32 %v7235_v51, %v7195_v34 }
 0x112   : > { %1364 = vrot.lane.b32.xlu0 %v1344_v48, %s9404_s30  ;;  %v7398_v62 = vpop.permute.xlu0 %1259  ;;  %v7400_v49 = vpop.permute.xlu1 %1327 }
 0x114   : > { %v1066_v19 = vpop.permute.xlu2 %1065 }
 0x115   : > { %1644 = vmatpush.bf16.msra.mxu0 %v6483_v25 }
 0x118   : > { %849 = vrot.lane.b32.xlu1 %v831_v24, %s6899_s23  ;;  %851 = vrot.lane.b32.xlu2 %v832_v22, %s6899_s23  ;;  %v1149_v22 = vmul.f32 %v7263_v63, %v7296_v36  ;;  %v888_v24 = vrot.slane %v7326_v3, 1 }
 0x119   : > { %6757 = vset.pattern.permute.xlu1 %v6900_v53  ;;  %6758 = vset.pattern.permute.xlu2 %v6896_v39 }
 0x11a   : > { %1463 = vrot.lane.b32.xlu0 %v1442_v17, %s9402_s27  ;;  %v7417_v6 = vpop.permute.xlu0 %1358  ;;  %1645 = vmatpush.bf16.msra.mxu0 %v6482_v40  ;;  %v7459_v34 = vsel %vm880_vm0, %v886_v4, %v888_v24  ;;  %v6478_v17 = vld [vmem:[%s9425_s5] sm:$0xff]  ;;  %v1342_v40 = vmul.f32 %v7302_v33, %v7307_v41  ;;  %v1439_v33 = vmul.f32 %v7280_v23, %v7296_v36 }
 0x11b   : > { %v7420_v21 = vpop.permute.xlu1 %1419  ;;  %v1246_v25 = vmul.f32 %v7253_v58, %v7459_v34 }
 0x11c   : > { %v7425_v57 = vpop.permute.xlu2 %1164 }
 0x11e   : > { %1646 = vmatpush.bf16.msra.mxu0 %v6481_v5 }
 0x120   : > { %974 = vrot.lane.b32.xlu1 %v955_v37, %s9410_s29  ;;  %1069 = vrot.lane.b32.xlu2 %v1051_v30, %s6895_s0  ;;  %v892_v30 = vrot.slane %v7342_v56, 1  ;;  %v1440_v37 = vmul.f32 %v7318_v38, %v7326_v3 }
 0x122   : > { %756 = vperm.xlu0 %6750, %v7259_v60   ;;  %v950_v7 = vpop.permute.xlu0 %949  ;;  %1647 = vmatpush.bf16.msra.mxu0 %v6480_v13 }
 0x123   : > { %v846_v48 = vpop.permute.xlu1 %845 }
 0x124   : > { %870 = vst.msk [vmem:[#allocation2] sm:$0xff] %vm869_vm3, %v846_v48  ;;  %v1357_v45 = vpop.permute.xlu2 %1356 }
 0x125   : > { %993 = vst.msk [vmem:[#allocation2] sm:$0xff] %vm992_vm4, %v969_v31  ;;  %v6479_v31 = vld [vmem:[%s9425_s5 + $0x8] sm:$0xff] }
 0x126   : > { %1090 = vst.msk [vmem:[#allocation2] sm:$0xff] %vm1089_vm5, %v1066_v19  ;;  %1648 = vmatpush.bf16.msra.mxu0 %v6479_v31 }
 0x128   : > { %1166 = vrot.lane.b32.xlu1 %v1148_v8, %s9408_s26  ;;  %1168 = vrot.lane.b32.xlu2 %v1149_v22, %s9408_s26  ;;  %v956_v22 = vmul.f32 %v7293_v32, %v7459_v34 }
 0x12a   : > { %6762 = vset.pattern.permute.xlu0 %v6900_v53  ;;  %1649 = vmatpush.bf16.msra.mxu0 %v6478_v17 }
 0x12b   : > { %1496 = vperm.xlu0 %6762, %v7052_v0   ;;  %v971_v51 = vpop.permute.xlu1 %970  ;;  %v7462_v63 = vpop.permute.xlu0 %1225 }
 0x12c   : > { %v1456_v19 = vpop.permute.xlu2 %1455 }
 0x130   : > { %1265 = vrot.lane.b32.xlu1 %v1246_v25, %s9406_s4  ;;  %1360 = vrot.lane.b32.xlu2 %v1342_v40, %s9404_s30 }
 0x133   : > { %1506 = vperm.xlu0 %6762, %v7093_v10   ;;  %v1163_v0 = vpop.permute.xlu1 %1162  ;;  %v7474_v4 = vpop.permute.xlu0 %1235  ;;  %v7489_v10 = vsel %vm880_vm0, %v892_v30, %v878_v18 }
 0x134   : > { %1187 = vst.msk [vmem:[#allocation2] sm:$0xff] %vm1186_vm6, %v1163_v0  ;;  %v7478_v58 = vpop.permute.xlu2 %821  ;;  %v959_v5 = vmul.f32 %v950_v7, %v7489_v10 }
 0x135   : > { %1284 = vst.msk [vmem:[#allocation2] sm:$0xff] %vm1283_vm7, %v7398_v62 }
 0x136   : > { %1381 = vst.msk [vmem:[#allocation2] sm:$0xff] %vm1380_vm8, %v1357_v45 }
 0x138   : > { %1457 = vrot.lane.b32.xlu1 %v1439_v33, %s9402_s27  ;;  %1459 = vrot.lane.b32.xlu2 %v1440_v37, %s9402_s27 }
 0x13b   : > { %982 = vrot.lane.b32.xlu0 %v959_v5, %s9410_s29  ;;  %v1262_v62 = vpop.permute.xlu1 %1261 }
 0x13c   : > { %v732_v23 = vpop.permute.xlu0 %731 }
 0x13d   : > { %v765_v48 = vmul.f32 %v732_v23, %v7241_v52  ;;  %v7497_v38 = vpop.permute.xlu2 %944  ;;  %v835_v23 = vmul.f32 %v7478_v58, %v7339_v55 }
 0x13f   : > { %774 = vst.msk [vmem:[#allocation2 + $0x18] sm:$0xff] %vm772_vm2, %v765_v48 }
 0x140   : > { %871 = vst.msk [vmem:[#allocation2 + $0x18] sm:$0xff] %vm869_vm3, %v7384_v59  ;;  %1511 = vperm.xlu1 %6757, %v7087_v9   ;;  %746 = vperm.xlu2 %6758, %v7128_v12   ;;  %v833_v59 = vmul.f32 %v7284_v26, %v7296_v36 }
 0x141   : > { %994 = vst.msk [vmem:[#allocation2 + $0x18] sm:$0xff] %vm992_vm4, %v971_v51 }
 0x142   : > { %1091 = vst.msk [vmem:[#allocation2 + $0x18] sm:$0xff] %vm1089_vm5, %v7382_v2  ;;  %v890_v2 = vrot.slane %v7339_v55, 1 }
 0x143   : > { %1188 = vst.msk [vmem:[#allocation2 + $0x18] sm:$0xff] %vm1186_vm6, %v7425_v57  ;;  %v1454_v18 = vpop.permute.xlu1 %1453 }
 0x144   : > { %1285 = vst.msk [vmem:[#allocation2 + $0x18] sm:$0xff] %vm1283_vm7, %v1262_v62  ;;  %v742_v7 = vpop.permute.xlu0 %741  ;;  %v7554_v17 = vsel %vm880_vm0, %v890_v2, %v892_v30  ;;  %v1441_v30 = vmul.f32 %v7420_v21, %v7339_v55 }
 0x145   : > { %1382 = vst.msk [vmem:[#allocation2 + $0x18] sm:$0xff] %vm1380_vm8, %v7417_v6  ;;  %v767_v9 = vmul.f32 %v742_v7, %v7214_v42  ;;  %v7528_v42 = vsel %vm880_vm0, %v888_v24, %v890_v2 }
 0x146   : > { %1479 = vst.msk [vmem:[#allocation2 + $0x18] sm:$0xff] %vm1477_vm9, %v1456_v19  ;;  %v7516_v45 = vpop.permute.xlu2 %1046  ;;  %v957_v13 = vmul.f32 %v7355_v27, %v7528_v42  ;;  %v1150_v27 = vmul.f32 %v7371_v50, %v7326_v3  ;;  %v1054_v19 = vmul.f32 %v7309_v43, %v7387_v61  ;;  %v1248_v3 = vmul.f32 %v7379_v44, %v7554_v17 }
 0x147   : > { %1478 = vst.msk [vmem:[#allocation2] sm:$0xff] %vm1477_vm9, %v1454_v18 }
 0x148   : > { %776 = vst.msk [vmem:[#allocation2 + $0x48] sm:$0xff] %vm772_vm2, %v767_v9  ;;  %6759 = vset.pattern.permute.xlu1 %v6896_v39  ;;  %853 = vrot.lane.b32.xlu2 %v833_v59, %s6899_s23 }
 0x149   : > { %751 = vperm.xlu1 %6759, %v7114_v11   ;;  %6761 = vset.pattern.permute.xlu2 %v6900_v53 }
 0x14b   : > { %v1502_v26 = vpop.permute.xlu1 %1501 }
 0x14c   : > { %v1535_v36 = vmul.f32 %v1502_v26, %v7323_v47  ;;  %v7531_v6 = vpop.permute.xlu0 %972  ;;  %v9400_v26 = vmov 10  }
 0x14d   : > { %v1552_v57 = vld [vmem:[#allocation2 + $0x18] sm:$0xff] }
 0x14e   : > { %1543 = vst.msk [vmem:[#allocation2 + $0x20] sm:$0xff] %vm772_vm2, %v1535_v36  ;;  %v1550_v8 = vld [vmem:[#allocation2] sm:$0xff] }
 0x14f   : > { %v1566_v31 = vpack.c.bf16 %v1552_v57, %v1550_v8  ;;  %v7538_v51 = vpop.permute.xlu2 %1143 }
 0x150   : > { %978 = vrot.lane.b32.xlu2 %v957_v13, %s9410_s29  ;;  %v1249_v13 = vmul.f32 %v7474_v4, %v7489_v10  ;;  %v1153_v8 = vmul.f32 %v7538_v51, %v7156_v16  ;;  %v9396_v4 = vmov 14  }
 0x151   : > { %1650 = vmatmul.bf16.vlgmr.msra.gmra.mxu0 %v1566_v31  ;;  %976 = vrot.lane.b32.xlu1 %v956_v22, %s9410_s29 }
 0x152   : > { %6760 = vset.pattern.permute.xlu1 %v6900_v53  ;;  %v1247_v53 = vmul.f32 %v7462_v63, %v7528_v42  ;;  %v1345_v63 = vmul.f32 %v7400_v49, %v7349_v1 }
 0x154   : > { %v7543_v47 = vpop.permute.xlu0 %1071 }
 0x155   : > { %v827_v24 = vpop.permute.xlu1 %826 }
 0x156   : > { %v836_v9 = vmul.f32 %v827_v24, %v7342_v56 }
 0x158   : > { %1170 = vrot.lane.b32.xlu2 %v1150_v27, %s9408_s26  ;;  %v7550_v32 = vpop.permute.xlu2 %1332 }
 0x159   : > { %1075 = vrot.lane.b32.xlu1 %v1054_v19, %s6895_s0  ;;  %v1346_v24 = vmul.f32 %v7550_v32, %v7361_v29 }
 0x15c   : > { %v7556_v25 = vpop.permute.xlu0 %1263 }
 0x15e   : > { %v1042_v50 = vpop.permute.xlu1 %1041 }
 0x160   : > { %1269 = vrot.lane.b32.xlu2 %v1248_v3, %s9406_s4  ;;  %v1553_v3 = vld [vmem:[#allocation2 + $0x20] sm:$0xff] }
 0x161   : > { %1267 = vrot.lane.b32.xlu1 %v1247_v53, %s9406_s4  ;;  %v737_v43 = vpop.permute.xlu2 %736 }
 0x162   : > { %v766_v40 = vmul.f32 %v737_v43, %v7183_v28 }
 0x164   : > { %775 = vst.msk [vmem:[#allocation2 + $0x30] sm:$0xff] %vm772_vm2, %v766_v40  ;;  %v7566_v0 = vpop.permute.xlu0 %1362 }
 0x167   : > { %v1139_v33 = vpop.permute.xlu1 %1138 }
 0x168   : > { %v1152_v44 = vmul.f32 %v1139_v33, %v7342_v56  ;;  %1461 = vrot.lane.b32.xlu2 %v1441_v30, %s9402_s27  ;;  %v1055_v56 = vmul.f32 %v1042_v50, %v7349_v1 }
 0x169   : > { %1366 = vrot.lane.b32.xlu1 %v1345_v63, %s9404_s30 }
 0x16a   : > { %v7575_v37 = vpop.permute.xlu2 %1434  ;;  %1174 = vrot.lane.b32.xlu0 %v1152_v44, %s9408_s26 }
 0x16c   : > { %v7578_v28 = vpop.permute.xlu0 %855 }
 0x170   : > { %v1241_v5 = vpop.permute.xlu1 %1240  ;;  %1521 = vperm.xlu2 %6761, %v7114_v11  }
 0x171   : > { %v1250_v21 = vmul.f32 %v1241_v5, %v7167_v20  ;;  %1516 = vperm.xlu1 %6760, %v7128_v12   ;;  %v958_v12 = vmul.f32 %v7497_v38, %v7554_v17  ;;  %v6486_v38 = vld [vmem:[%s9425_s5 + $0x40] sm:$0xff] }
 0x172   : > { %v852_v49 = vpop.permute.xlu2 %851  ;;  %1678 = vmatpush.bf16.msra.mxu1 %v6486_v38 }
 0x173   : > { %873 = vst.msk [vmem:[#allocation2 + $0x48] sm:$0xff] %vm869_vm3, %v852_v49  ;;  %1273 = vrot.lane.b32.xlu0 %v1250_v21, %s9406_s4  ;;  %v9389_v21 = vmov 15  }
 0x174   : > { %v7585_v62 = vpop.permute.xlu0 %1073 }
 0x178   : > { %857 = vrot.lane.b32.xlu2 %v835_v23, %s6899_s23 }
 0x179   : > { %v1338_v48 = vpop.permute.xlu1 %1337  ;;  %6763 = vset.pattern.permute.xlu1 %v6896_v39  ;;  %v1056_v39 = vmul.f32 %v7516_v45, %v7361_v29 }
 0x17a   : > { %v1070_v18 = vpop.permute.xlu2 %1069  ;;  %761 = vperm.xlu1 %6763, %v7227_v46   ;;  %v1347_v51 = vmul.f32 %v1338_v48, %v7241_v52  ;;  %v7650_v52 = vld [vmem:[%s9423_s20 + $0x10] sm:$0xff] }
 0x17c   : > { %v7592_v7 = vpop.permute.xlu0 %1172 }
 0x180   : > { %980 = vrot.lane.b32.xlu2 %v958_v12, %s9410_s29 }
 0x182   : > { %v1430_v59 = vpop.permute.xlu1 %1429  ;;  %v1169_v2 = vpop.permute.xlu2 %1168  ;;  %859 = vrot.lane.b32.xlu1 %v836_v9, %s6899_s23 }
 0x183   : > { %v1443_v55 = vmul.f32 %v1430_v59, %v7156_v16  ;;  %6764 = vset.pattern.permute.xlu1 %v9400_v26  ;;  %v7704_v59 = vld [vmem:[%s9423_s20 + $0x28] sm:$0xff] }
 0x184   : > { %v7600_v58 = vpop.permute.xlu0 %1364 }
 0x185   : > { %1465 = vrot.lane.b32.xlu0 %v1443_v55, %s9402_s27 }
 0x188   : > { %1079 = vrot.lane.b32.xlu2 %v1056_v39, %s6895_s0 }
 0x18a   : > { %v850_v36 = vpop.permute.xlu1 %849  ;;  %v1361_v57 = vpop.permute.xlu2 %1360  ;;  %1077 = vrot.lane.b32.xlu1 %v1055_v56, %s6895_s0 }
 0x18b   : > { %872 = vst.msk [vmem:[#allocation2 + $0x30] sm:$0xff] %vm869_vm3, %v850_v36 }
 0x18c   : > { %995 = vst.msk [vmem:[#allocation2 + $0x30] sm:$0xff] %vm992_vm4, %v7531_v6  ;;  %v7615_v45 = vpop.permute.xlu0 %1463  ;;  %v7629_v6 = vld [vmem:[%s9423_s20 + $0x8] sm:$0xff] }
 0x18d   : > { %1092 = vst.msk [vmem:[#allocation2 + $0x30] sm:$0xff] %vm1089_vm5, %v1070_v18  ;;  %1531 = vperm.xlu0 %6762, %v7227_v46   ;;  %v9395_v18 = vmov 12  }
 0x190   : > { %1271 = vrot.lane.b32.xlu2 %v1249_v13, %s9406_s4 }
 0x192   : > { %v975_v22 = vpop.permute.xlu1 %974  ;;  %v1460_v31 = vpop.permute.xlu2 %1459  ;;  %1176 = vrot.lane.b32.xlu1 %v1153_v8, %s9408_s26 }
 0x193   : > { %996 = vst.msk [vmem:[#allocation2 + $0x48] sm:$0xff] %vm992_vm4, %v975_v22 }
 0x194   : > { %1093 = vst.msk [vmem:[#allocation2 + $0x48] sm:$0xff] %vm1089_vm5, %v7543_v47  ;;  %v757_v46 = vpop.permute.xlu0 %756 }
 0x195   : > { %1190 = vst.msk [vmem:[#allocation2 + $0x48] sm:$0xff] %vm1186_vm6, %v1169_v2  ;;  %v770_v16 = vmul.f32 %v757_v46, %v7387_v61  ;;  %6772 = vset.pattern.permute.xlu0 %v9396_v4 }
 0x196   : > { %2247 = vperm.xlu0 %6772, %v7629_v6  }
 0x197   : > { %779 = vst.msk [vmem:[#allocation2 + $0x90] sm:$0xff] %vm772_vm2, %v770_v16 }
 0x198   : > { %1370 = vrot.lane.b32.xlu2 %v1347_v51, %s9404_s30 }
 0x19a   : > { %v1167_v47 = vpop.permute.xlu1 %1166  ;;  %v747_v27 = vpop.permute.xlu2 %746  ;;  %1368 = vrot.lane.b32.xlu1 %v1346_v24, %s9404_s30 }
 0x19b   : > { %1189 = vst.msk [vmem:[#allocation2 + $0x30] sm:$0xff] %vm1186_vm6, %v1167_v47  ;;  %v768_v61 = vmul.f32 %v747_v27, %v7307_v41  ;;  %v1444_v41 = vmul.f32 %v7575_v37, %v7153_v15 }
 0x19c   : > { %1286 = vst.msk [vmem:[#allocation2 + $0x30] sm:$0xff] %vm1283_vm7, %v7556_v25 }
 0x19d   : > { %1383 = vst.msk [vmem:[#allocation2 + $0x30] sm:$0xff] %vm1380_vm8, %v1361_v57  ;;  %v1497_v29 = vpop.permute.xlu0 %1496 }
 0x19e   : > { %777 = vst.msk [vmem:[#allocation2 + $0x60] sm:$0xff] %vm772_vm2, %v768_v61  ;;  %v1534_v19 = vmul.f32 %v1497_v29, %v7273_v14  ;;  %6777 = vset.pattern.permute.xlu0 %v9400_v26 }
 0x19f   : > { %1843 = vperm.xlu0 %6777, %v7650_v52  }
 0x1a0   : > { %1542 = vst.msk [vmem:[#allocation2 + $0x8] sm:$0xff] %vm772_vm2, %v1534_v19  ;;  %1526 = vperm.xlu2 %6761, %v7259_v60   ;;  %v7671_v60 = vld [vmem:[%s9423_s20] sm:$0xff] }
 0x1a2   : > { %v1266_v32 = vpop.permute.xlu1 %1265  ;;  %v854_v25 = vpop.permute.xlu2 %853  ;;  %1467 = vrot.lane.b32.xlu1 %v1444_v41, %s9402_s27 }
 0x1a3   : > { %1287 = vst.msk [vmem:[#allocation2 + $0x48] sm:$0xff] %vm1283_vm7, %v1266_v32 }
 0x1a4   : > { %1384 = vst.msk [vmem:[#allocation2 + $0x48] sm:$0xff] %vm1380_vm8, %v7566_v0  ;;  %v9398_v0 = vmov 11  }
 0x1a5   : > { %1481 = vst.msk [vmem:[#allocation2 + $0x48] sm:$0xff] %vm1477_vm9, %v1460_v31  ;;  %v1507_v14 = vpop.permute.xlu0 %1506 }
 0x1a6   : > { %874 = vst.msk [vmem:[#allocation2 + $0x60] sm:$0xff] %vm869_vm3, %v854_v25  ;;  %v1536_v15 = vmul.f32 %v1507_v14, %v7459_v34  ;;  %v7683_v34 = vld [vmem:[%s9423_s20 + $0x20] sm:$0xff] }
 0x1a7   : > { %v1551_v53 = vld [vmem:[#allocation2 + $0x8] sm:$0xff]  ;;  %1858 = vperm.xlu0 %6777, %v7114_v11   ;;  %v9391_v11 = vmov 13  }
 0x1a8   : > { %1544 = vst.msk [vmem:[#allocation2 + $0x38] sm:$0xff] %vm772_vm2, %v1536_v15  ;;  %6765 = vset.pattern.permute.xlu2 %v9400_v26  ;;  %v1567_v50 = vpack.c.bf16 %v1553_v3, %v1551_v53 }
 0x1a9   : > { %1838 = vperm.xlu2 %6765, %v7629_v6  }
 0x1aa   : > { %v1458_v43 = vpop.permute.xlu1 %1457  ;;  %v979_v40 = vpop.permute.xlu2 %978  ;;  %1833 = vperm.xlu1 %6764, %v7671_v60   ;;  %5686 = vmatmul.msk.bf16.vlgmr.msra.gmra.mxu1 %vm772_vm2, %v1567_v50 }
 0x1ab   : > { %1480 = vst.msk [vmem:[#allocation2 + $0x30] sm:$0xff] %vm1477_vm9, %v1458_v43 }
 0x1ac   : > { %v1556_v44 = vld [vmem:[#allocation2 + $0x48] sm:$0xff] }
 0x1ad   : > { %v983_v57 = vpop.permute.xlu0 %982 }
 0x1af   : > { %6794 = vset.pattern.permute.xlu0 %v9391_v11  ;;  %v1555_v23 = vld [vmem:[#allocation2 + $0x38] sm:$0xff] }
 0x1b0   : > { %2166 = vperm.xlu0 %6794, %v7683_v34  }
 0x1b1   : > { %6767 = vset.pattern.permute.xlu2 %v9398_v0 }
 0x1b2   : > { %v1512_v30 = vpop.permute.xlu1 %1511  ;;  %v1171_v63 = vpop.permute.xlu2 %1170  ;;  %6766 = vset.pattern.permute.xlu1 %v9398_v0  ;;  %1959 = vperm.xlu2 %6767, %v7629_v6   ;;  %v1554_v33 = vld [vmem:[#allocation2 + $0x30] sm:$0xff] }
 0x1b3   : > { %v1537_v37 = vmul.f32 %v1512_v30, %v7528_v42  ;;  %1954 = vperm.xlu1 %6766, %v7671_v60   ;;  %v1568_v5 = vpack.c.bf16 %v1556_v44, %v1554_v33 }
 0x1b5   : > { %1545 = vst.msk [vmem:[#allocation2 + $0x50] sm:$0xff] %vm772_vm2, %v1537_v37  ;;  %1655 = vmatmul.bf16.gmra.mxu0 %v1568_v5 }
 0x1b8   : > { %6795 = vset.pattern.permute.xlu0 %v9389_v21 }
 0x1b9   : > { %2348 = vperm.xlu0 %6795, %v7650_v52  }
 0x1ba   : > { %v1270_v49 = vpop.permute.xlu2 %1269  ;;  %6769 = vset.pattern.permute.xlu2 %v9391_v11 }
 0x1bb   : > { %v752_v48 = vpop.permute.xlu1 %751  ;;  %6768 = vset.pattern.permute.xlu1 %v9395_v18  ;;  %2146 = vperm.xlu2 %6769, %v7671_v60  }
 0x1bc   : > { %v769_v42 = vmul.f32 %v752_v48, %v7336_v54  ;;  %2055 = vperm.xlu1 %6768, %v7629_v6   ;;  %v1557_v12 = vld [vmem:[#allocation2 + $0x50] sm:$0xff] }
 0x1bd   : > { %v1569_v9 = vpack.c.bf16 %v1557_v12, %v1555_v23  ;;  %v9387_v12 = vmov 9  }
 0x1be   : > { %778 = vst.msk [vmem:[#allocation2 + $0x78] sm:$0xff] %vm772_vm2, %v769_v42 }
 0x1bf   : > { %875 = vst.msk [vmem:[#allocation2 + $0x78] sm:$0xff] %vm869_vm3, %v7578_v28  ;;  %5687 = vmatmul.msk.bf16.gmra.mxu1 %vm772_vm2, %v1569_v9  ;;  %v7833_v9 = vld [vmem:[%s9379_s19] ss:$0 sm:$0xff] }
 0x1c0   : > { %998 = vst.msk [vmem:[#allocation2 + $0x78] sm:$0xff] %vm992_vm4, %v979_v40 }
 0x1c1   : > { %2363 = vperm.xlu0 %6795, %v7704_v59  }
 0x1c2   : > { %v1462_v54 = vpop.permute.xlu2 %1461 }
 0x1c3   : > { %v977_v2 = vpop.permute.xlu1 %976  ;;  %6771 = vset.pattern.permute.xlu2 %v9396_v4 }
 0x1c4   : > { %997 = vst.msk [vmem:[#allocation2 + $0x60] sm:$0xff] %vm992_vm4, %v977_v2  ;;  %6770 = vset.pattern.permute.xlu1 %v9391_v11  ;;  %2242 = vperm.xlu2 %6771, %v7671_v60  }
 0x1c5   : > { %1094 = vst.msk [vmem:[#allocation2 + $0x60] sm:$0xff] %vm1089_vm5, %v7585_v62  ;;  %2151 = vperm.xlu1 %6770, %v7629_v6  }
 0x1c6   : > { %1191 = vst.msk [vmem:[#allocation2 + $0x60] sm:$0xff] %vm1186_vm6, %v1171_v63 }
 0x1c9   : > { %6800 = vset.pattern.permute.xlu0 %v9395_v18 }
 0x1ca   : > { %v1522_v28 = vpop.permute.xlu2 %1521  ;;  %2050 = vperm.xlu0 %6800, %v7671_v60  }
 0x1cb   : > { %v1539_v55 = vmul.f32 %v1522_v28, %v7489_v10  ;;  %v1076_v39 = vpop.permute.xlu1 %1075  ;;  %v7734_v10 = vld [vmem:[%s9423_s20 + $0x18] sm:$0xff] }
 0x1cc   : > { %1095 = vst.msk [vmem:[#allocation2 + $0x78] sm:$0xff] %vm1089_vm5, %v1076_v39  ;;  %6774 = vset.pattern.permute.xlu2 %v9389_v21 }
 0x1cd   : > { %1547 = vst.msk [vmem:[#allocation2 + $0x80] sm:$0xff] %vm772_vm2, %v1539_v55  ;;  %6773 = vset.pattern.permute.xlu1 %v9389_v21  ;;  %2343 = vperm.xlu2 %6774, %v7629_v6  }
 0x1ce   : > { %1192 = vst.msk [vmem:[#allocation2 + $0x78] sm:$0xff] %vm1186_vm6, %v7592_v7  ;;  %2338 = vperm.xlu1 %6773, %v7671_v60   ;;  %v9393_v7 = vmov 16   ;;  %v1651_v2 = vpop.f32.mrf.mxu0 }
 0x1cf   : > { %1289 = vst.msk [vmem:[#allocation2 + $0x78] sm:$0xff] %vm1283_vm7, %v1270_v49  ;;  %v1652_v55 = vadd.f32 %v7833_v9, %v1651_v2 }
 0x1d2   : > { %v858_v62 = vpop.permute.xlu2 %857  ;;  %2065 = vperm.xlu0 %6800, %v7734_v10  }
 0x1d3   : > { %876 = vst.msk [vmem:[#allocation2 + $0x90] sm:$0xff] %vm869_vm3, %v858_v62  ;;  %v1268_v56 = vpop.permute.xlu1 %1267 }
 0x1d4   : > { %1288 = vst.msk [vmem:[#allocation2 + $0x60] sm:$0xff] %vm1283_vm7, %v1268_v56  ;;  %v1561_v51 = vld [vmem:[#allocation2 + $0x80] sm:$0xff] }
 0x1d5   : > { %1385 = vst.msk [vmem:[#allocation2 + $0x60] sm:$0xff] %vm1380_vm8, %v7600_v58  ;;  %6776 = vset.pattern.permute.xlu2 %v9393_v7 }
 0x1d6   : > { %1482 = vst.msk [vmem:[#allocation2 + $0x60] sm:$0xff] %vm1477_vm9, %v1462_v54  ;;  %6775 = vset.pattern.permute.xlu1 %v9393_v7  ;;  %2439 = vperm.xlu2 %6776, %v7629_v6  }
 0x1d7   : > { %2434 = vperm.xlu1 %6775, %v7671_v60  }
 0x1da   : > { %v981_v38 = vpop.permute.xlu2 %980 }
 0x1db   : > { %999 = vst.msk [vmem:[#allocation2 + $0x90] sm:$0xff] %vm992_vm4, %v981_v38  ;;  %v1367_v36 = vpop.permute.xlu1 %1366 }
 0x1dc   : > { %1386 = vst.msk [vmem:[#allocation2 + $0x78] sm:$0xff] %vm1380_vm8, %v1367_v36  ;;  %v1175_v46 = vpop.permute.xlu0 %1174 }
 0x1dd   : > { %1483 = vst.msk [vmem:[#allocation2 + $0x78] sm:$0xff] %vm1477_vm9, %v7615_v45  ;;  %v1558_v22 = vld [vmem:[#allocation2 + $0x60] sm:$0xff] }
 0x1de   : > { %6779 = vset.pattern.permute.xlu2 %v9398_v0 }
 0x1df   : > { %6778 = vset.pattern.permute.xlu1 %v9400_v26  ;;  %1964 = vperm.xlu2 %6779, %v7650_v52  }
 0x1e0   : > { %1848 = vperm.xlu1 %6778, %v7734_v10  }
 0x1e2   : > { %v1080_v58 = vpop.permute.xlu2 %1079 }
 0x1e3   : > { %v1517_v13 = vpop.permute.xlu1 %1516 }
 0x1e4   : > { %v1538_v8 = vmul.f32 %v1517_v13, %v7554_v17  ;;  %v1560_v31 = vld [vmem:[#allocation2 + $0x78] sm:$0xff] }
 0x1e5   : > { %v1570_v16 = vpack.c.bf16 %v1560_v31, %v1558_v22  ;;  %v1274_v61 = vpop.permute.xlu0 %1273 }
 0x1e6   : > { %1546 = vst.msk [vmem:[#allocation2 + $0x68] sm:$0xff] %vm772_vm2, %v1538_v8 }
 0x1e7   : > { %6781 = vset.pattern.permute.xlu2 %v9395_v18  ;;  %1660 = vmatmul.bf16.gmra.mxu0 %v1570_v16 }
 0x1e8   : > { %6780 = vset.pattern.permute.xlu1 %v9398_v0  ;;  %2060 = vperm.xlu2 %6781, %v7650_v52  }
 0x1e9   : > { %1969 = vperm.xlu1 %6780, %v7734_v10  }
 0x1ea   : > { %v1272_v45 = vpop.permute.xlu2 %1271 }
 0x1ec   : > { %v762_v24 = vpop.permute.xlu1 %761 }
 0x1ed   : > { %v771_v17 = vmul.f32 %v762_v24, %v7349_v1  ;;  %v1559_v47 = vld [vmem:[#allocation2 + $0x68] sm:$0xff] }
 0x1ee   : > { %v1571_v27 = vpack.c.bf16 %v1561_v51, %v1559_v47 }
 0x1ef   : > { %780 = vst.msk [vmem:[#allocation2 + $0xa8] sm:$0xff] %vm772_vm2, %v771_v17 }
 0x1f0   : > { %6783 = vset.pattern.permute.xlu2 %v9391_v11  ;;  %5688 = vmatmul.msk.bf16.gmra.mxu1 %vm772_vm2, %v1571_v27 }
 0x1f1   : > { %6782 = vset.pattern.permute.xlu1 %v9391_v11  ;;  %2161 = vperm.xlu2 %6783, %v7734_v10  }
 0x1f2   : > { %2156 = vperm.xlu1 %6782, %v7650_v52   ;;  %v1371_v29 = vpop.permute.xlu2 %1370 }
 0x1f4   : > { %v860_v19 = vpop.permute.xlu1 %859 }
 0x1f5   : > { %877 = vst.msk [vmem:[#allocation2 + $0xa8] sm:$0xff] %vm869_vm3, %v860_v19 }
 0x1f6   : > { %1000 = vst.msk [vmem:[#allocation2 + $0xa8] sm:$0xff] %vm992_vm4, %v983_v57 }
 0x1f7   : > { %1097 = vst.msk [vmem:[#allocation2 + $0xa8] sm:$0xff] %vm1089_vm5, %v1080_v58  ;;  %v1466_v1 = vpop.permute.xlu0 %1465  ;;  %v1653_v58 = vpop.f32.mrf.mxu0 }
 0x1f9   : > { %6785 = vset.pattern.permute.xlu2 %v9396_v4 }
 0x1fa   : > { %6784 = vset.pattern.permute.xlu1 %v9396_v4  ;;  %2257 = vperm.xlu2 %6785, %v7734_v10   ;;  %v1527_v41 = vpop.permute.xlu2 %1526 }
 0x1fb   : > { %v1540_v32 = vmul.f32 %v1527_v41, %v7167_v20  ;;  %2252 = vperm.xlu1 %6784, %v7650_v52  }
 0x1fc   : > { %v1078_v25 = vpop.permute.xlu1 %1077 }
 0x1fd   : > { %1548 = vst.msk [vmem:[#allocation2 + $0x98] sm:$0xff] %vm772_vm2, %v1540_v32 }
 0x1fe   : > { %1096 = vst.msk [vmem:[#allocation2 + $0x90] sm:$0xff] %vm1089_vm5, %v1078_v25 }
 0x1ff   : > { %1193 = vst.msk [vmem:[#allocation2 + $0x90] sm:$0xff] %vm1186_vm6, %v1175_v46  ;;  %v1532_v14 = vpop.permute.xlu0 %1531 }
 0x200   : > { %1290 = vst.msk [vmem:[#allocation2 + $0x90] sm:$0xff] %vm1283_vm7, %v1272_v45  ;;  %v1541_v15 = vmul.f32 %v1532_v14, %v7200_v35 }
 0x202   : > { %1549 = vst.msk [vmem:[#allocation2 + $0xb0] sm:$0xff] %vm772_vm2, %v1541_v15  ;;  %6787 = vset.pattern.permute.xlu2 %v9393_v7 }
 0x203   : > { %6786 = vset.pattern.permute.xlu1 %v9389_v21  ;;  %2444 = vperm.xlu2 %6787, %v7650_v52   ;;  %v1839_v43 = vpop.permute.xlu2 %1838 }
 0x204   : > { %2353 = vperm.xlu1 %6786, %v7734_v10   ;;  %v1177_v20 = vpop.permute.xlu1 %1176  ;;  %v1563_v53 = vld [vmem:[#allocation2 + $0x98] sm:$0xff] }
 0x205   : > { %1194 = vst.msk [vmem:[#allocation2 + $0xa8] sm:$0xff] %vm1186_vm6, %v1177_v20 }
 0x206   : > { %1291 = vst.msk [vmem:[#allocation2 + $0xa8] sm:$0xff] %vm1283_vm7, %v1274_v61 }
 0x207   : > { %1388 = vst.msk [vmem:[#allocation2 + $0xa8] sm:$0xff] %vm1380_vm8, %v1371_v29 }
 0x208   : > { %v7880_v32 = vpop.permute.xlu0 %2247 }
 0x209   : > { %v1565_v3 = vld [vmem:[#allocation2 + $0xb0] sm:$0xff] }
 0x20a   : > { %v1573_v35 = vpack.c.bf16 %v1565_v3, %v1563_v53 }
 0x20b   : > { %6789 = vset.pattern.permute.xlu2 %v9400_v26 }
 0x20c   : > { %6788 = vset.pattern.permute.xlu1 %v9393_v7  ;;  %v1369_v50 = vpop.permute.xlu1 %1368  ;;  %1853 = vperm.xlu2 %6789, %v7683_v34   ;;  %v7802_v44 = vpop.permute.xlu2 %1959 }
 0x20d   : > { %1387 = vst.msk [vmem:[#allocation2 + $0x90] sm:$0xff] %vm1380_vm8, %v1369_v50  ;;  %5689 = vmatmul.msk.bf16.gmra.mxu1 %vm772_vm2, %v1573_v35  ;;  %2449 = vperm.xlu1 %6788, %v7734_v10  }
 0x20e   : > { %1484 = vst.msk [vmem:[#allocation2 + $0x90] sm:$0xff] %vm1477_vm9, %v1466_v1 }
 0x211   : > { %v7886_v15 = vpop.permute.xlu0 %1843 }
 0x214   : > { %v1468_v40 = vpop.permute.xlu1 %1467  ;;  %6791 = vset.pattern.permute.xlu2 %v9398_v0 }
 0x215   : > { %1485 = vst.msk [vmem:[#allocation2 + $0xa8] sm:$0xff] %vm1477_vm9, %v1468_v40  ;;  %6790 = vset.pattern.permute.xlu1 %v9398_v0  ;;  %1979 = vperm.xlu2 %6791, %v7704_v59   ;;  %v1562_v63 = vld [vmem:[#allocation2 + $0x90] sm:$0xff]  ;;  %v7811_v49 = vpop.permute.xlu2 %2146 }
 0x216   : > { %1974 = vperm.xlu1 %6790, %v7683_v34  }
 0x219   : > { %v7892_v3 = vpop.permute.xlu0 %1858 }
 0x21a   : > { %9426 = vst [vmem:[#allocation3_spill] sm:$0xff] %v7892_v3 }
 0x21c   : > { %v7800_v30 = vpop.permute.xlu1 %1833  ;;  %v1564_v33 = vld [vmem:[#allocation2 + $0xa8] sm:$0xff] }
 0x21d   : > { %6793 = vset.pattern.permute.xlu2 %v9395_v18  ;;  %v1572_v37 = vpack.c.bf16 %v1564_v33, %v1562_v63 }
 0x21e   : > { %6792 = vset.pattern.permute.xlu1 %v9395_v18  ;;  %2075 = vperm.xlu2 %6793, %v7704_v59   ;;  %v7821_v48 = vpop.permute.xlu2 %2242 }
 0x21f   : > { %2070 = vperm.xlu1 %6792, %v7683_v34   ;;  %1665 = vmatmul.bf16.gmra.mxu0 %v1572_v37 }
 0x225   : > { %v7808_v5 = vpop.permute.xlu1 %1954 }
 0x226   : > { %6797 = vset.pattern.permute.xlu2 %v9396_v4 }
 0x227   : > { %6796 = vset.pattern.permute.xlu1 %v9391_v11  ;;  %2262 = vperm.xlu2 %6797, %v7683_v34   ;;  %v7835_v54 = vpop.permute.xlu2 %2343  ;;  %v1680_v28 = vpop.f32.mrf.mxu1 }
 0x228   : > { %2171 = vperm.xlu1 %6796, %v7704_v59   ;;  %v1681_v62 = vadd.f32 %v1680_v28, %v1652_v55 }
 0x22a   : > { %v7844_v56 = vmax.f32 %v1681_v62, 0.0 }
 0x22c   : > { %v1872_v57 = vmul.f32 %v1839_v43, %v7844_v56  ;;  %v7898_v43 = vpop.permute.xlu0 %2166 }
 0x22d   : > { %9428 = vst [vmem:[#allocation5_spill] sm:$0xff] %v7898_v43 }
 0x22e   : > { %v7816_v23 = vpop.permute.xlu1 %2055 }
 0x22f   : > { %6799 = vset.pattern.permute.xlu2 %v9389_v21  ;;  %v1682_v22 = vpop.f32.mrf.mxu1 }
 0x230   : > { %6798 = vset.pattern.permute.xlu1 %v9396_v4  ;;  %2358 = vperm.xlu2 %6799, %v7683_v34   ;;  %v7846_v38 = vpop.permute.xlu2 %2439 }
 0x231   : > { %2267 = vperm.xlu1 %6798, %v7704_v59  }
 0x232   : > { %v7857_v31 = vpop.f32.mrf.mxu0 }
 0x234   : > { %v7908_v2 = vpop.permute.xlu0 %2348 }
 0x237   : > { %v7824_v42 = vpop.permute.xlu1 %2151 }
 0x238   : > { %6802 = vset.pattern.permute.xlu2 %v9387_v12 }
 0x239   : > { %6801 = vset.pattern.permute.xlu1 %v9387_v12  ;;  %1774 = vperm.xlu2 %6802, %v7629_v6   ;;  %v7853_v13 = vpop.permute.xlu2 %1964 }
 0x23a   : > { %1769 = vperm.xlu1 %6801, %v7671_v60   ;;  %v7865_v51 = vpop.f32.mrf.mxu0 }
 0x23c   : > { %v7861_v16 = vpop.f32.mrf.mxu1 }
 0x240   : > { %v7838_v39 = vpop.permute.xlu1 %2338 }
 0x241   : > { %6804 = vset.pattern.permute.xlu2 %v9393_v7 }
 0x242   : > { %6803 = vset.pattern.permute.xlu1 %v9393_v7  ;;  %2459 = vperm.xlu2 %6804, %v7704_v59   ;;  %v7859_v46 = vpop.permute.xlu2 %2060 }
 0x243   : > { %2454 = vperm.xlu1 %6803, %v7683_v34  }
 0x244   : > { %v7871_v47 = vpop.f32.mrf.mxu1 }
 0x249   : > { %v7848_v36 = vpop.permute.xlu1 %2434 }
 0x24b   : > { %1889 = vrot.lane.b32.xlu1 %v1872_v57, %s6899_s23  ;;  %v7867_v24 = vpop.permute.xlu2 %2161 }
 0x24c   : > { %6806 = vset.pattern.permute.xlu1 %v9400_v26 }
 0x252   : > { %v7855_v8 = vpop.permute.xlu1 %1848 }
 0x254   : > { %v7873_v61 = vpop.permute.xlu2 %2257 }
 0x25b   : > { %v7863_v45 = vpop.permute.xlu1 %1969 }
 0x25d   : > { %v7882_v25 = vpop.permute.xlu2 %2444 }
 0x264   : > { %v7869_v17 = vpop.permute.xlu1 %2156  ;;  %v1661_v27 = vpop.f32.mrf.mxu0 }
 0x265   : > { %v1662_v29 = vadd.f32 %v7833_v9, %v1661_v27 }
 0x266   : > { %v7888_v20 = vpop.permute.xlu2 %1853 }
 0x26c   : > { %v7904_v33 = vpop.f32.mrf.mxu0 }
 0x26d   : > { %v7876_v19 = vpop.permute.xlu1 %2252  ;;  %v1690_v1 = vpop.f32.mrf.mxu1 }
 0x26e   : > { %v7878_v41 = vadd.f32 %v1690_v1, %v1662_v29  ;;  %v1654_v29 = vadd.f32 %v7833_v9, %v1653_v58  ;;  %v7916_v1 = vpop.permute.xlu0 %2363  ;;  %v1921_v58 = vrot.slane %v7844_v56, 1 }
 0x26f   : > { %v7894_v35 = vpop.permute.xlu2 %1979 }
 0x270   : > { %9427 = vst [vmem:[#allocation4_spill] sm:$0xff] %v7894_v35  ;;  %v1683_v11 = vadd.f32 %v1682_v22, %v1654_v29  ;;  %v6911_v35 = vmov 17  }
 0x271   : > { %6805 = vset.pattern.permute.xlu2 %v6911_v35 }
 0x275   : > { %v7906_v37 = vpop.f32.mrf.mxu1 }
 0x276   : > { %v7884_v14 = vpop.permute.xlu1 %2353 }
 0x278   : > { %v7900_v40 = vpop.permute.xlu2 %2075 }
 0x27f   : > { %v7890_v53 = vpop.permute.xlu1 %2449 }
 0x281   : > { %v7910_v28 = vpop.permute.xlu2 %2262 }
 0x288   : > { %v7896_v50 = vpop.permute.xlu1 %1974 }
 0x28a   : > { %v1695_v62 = vpop.f32.mrf.mxu1  ;;  %v7920_v18 = vpop.permute.xlu2 %2358 }
 0x28b   : > { %9432 = vst [vmem:[#allocation9_spill] sm:$0xff] %v7920_v18 }
 0x291   : > { %v7902_v63 = vpop.permute.xlu1 %2070 }
 0x292   : > { %9429 = vst [vmem:[#allocation6_spill] sm:$0xff] %v7902_v63  ;;  %v1697_v0 = vpop.f32.mrf.mxu1  ;;  %v7925_v63 = vmax.f32 %v1683_v11, 0.0  ;;  %v2051_v11 = vpop.permute.xlu0 %2050 }
 0x29a   : > { %v7912_v55 = vpop.permute.xlu1 %2171 }
 0x29b   : > { %9430 = vst [vmem:[#allocation7_spill] sm:$0xff] %v7912_v55 }
 0x29c   : > { %v1666_v57 = vpop.f32.mrf.mxu0 }
 0x29d   : > { %v1667_v27 = vadd.f32 %v7833_v9, %v1666_v57 }
 0x29f   : > { %v1696_v12 = vadd.f32 %v1695_v62, %v1667_v27  ;;  %v1739_v62 = vrot.slane %v7844_v56, 7 }
 0x2a1   : > { %v7923_v26 = vmax.f32 %v1696_v12, 0.0 }
 0x2a3   : > { %v7918_v21 = vpop.permute.xlu1 %2267  ;;  %v9401_v27 = vrot.slane %v7923_v26, 7 }
 0x2a4   : > { %9431 = vst [vmem:[#allocation8_spill] sm:$0xff] %v7918_v21  ;;  %v1668_v7 = vpop.f32.mrf.mxu0 }
 0x2a5   : > { %v1669_v4 = vadd.f32 %v7833_v9, %v1668_v7 }
 0x2a7   : > { %v1698_v55 = vadd.f32 %v1697_v0, %v1669_v4  ;;  %v1922_v4 = vrot.slane %v7925_v63, 1  ;;  %v1775_v0 = vpop.permute.xlu2 %1774 }
 0x2a9   : > { %v7927_v57 = vmax.f32 %v1698_v55, 0.0 }
 0x2ab   : > { %v1729_v22 = vrot.slane %v7927_v57, 7  ;;  %v1871_v29 = vmul.f32 %v7800_v30, %v7927_v57  ;;  %v1919_v7 = vrot.slane %v7927_v57, 1 }
 0x2ac   : > { %v1770_v12 = vpop.permute.xlu1 %1769 }
 0x2ad   : > { %v7940_v55 = vsel %vm684_vm1, %v9401_v27, %v1729_v22  ;;  %1887 = vrot.lane.b32.xlu0 %v1871_v29, %s6899_s23  ;;  %v7946_v18 = vsel %vm880_vm0, %v1919_v7, %v1921_v58  ;;  %v7949_v30 = vsel %vm684_vm1, %v1729_v22, %v1739_v62  ;;  %v1740_v29 = vrot.slane %v7925_v63, 7 }
 0x2ae   : > { %v1807_v21 = vmul.f32 %v1770_v12, %v7940_v55  ;;  %v1992_v43 = vmul.f32 %v7808_v5, %v7946_v18  ;;  %v2088_v3 = vmul.f32 %v2051_v11, %v7949_v30  ;;  %v1808_v27 = vmul.f32 %v1775_v0, %v7949_v30 }
 0x2af   : > { %v7962_v22 = vsel %vm880_vm0, %v1921_v58, %v1922_v4  ;;  %v1657_v5 = vadd.f32 %v7833_v9, %v7857_v31  ;;  %v7968_v12 = vsel %vm684_vm1, %v1739_v62, %v1740_v29 }
 0x2b0   : > { %1815 = vst.msk [vmem:[#allocation2] sm:$0xff] %vm772_vm2, %v1807_v21  ;;  %2008 = vrot.lane.b32.xlu2 %v1992_v43, %s9410_s29  ;;  %2104 = vrot.lane.b32.xlu1 %v2088_v3, %s6895_s0  ;;  %v1993_v11 = vmul.f32 %v7802_v44, %v7962_v22  ;;  %v2185_v3 = vmul.f32 %v7824_v42, %v7925_v63 }
 0x2b1   : > { %1816 = vst.msk [vmem:[#allocation2 + $0x18] sm:$0xff] %vm772_vm2, %v1808_v27  ;;  %v1686_v21 = vadd.f32 %v7861_v16, %v1657_v5  ;;  %v2089_v43 = vmul.f32 %v7816_v23, %v7968_v12  ;;  %v2184_v44 = vmul.f32 %v7811_v49, %v7844_v56  ;;  %v2376_v42 = vmul.f32 %v7838_v39, %v7968_v12 }
 0x2b2   : > { %v2280_v23 = vmul.f32 %v7821_v48, %v7962_v22 }
 0x2b3   : > { %v7980_v58 = vmax.f32 %v1686_v21, 0.0  ;;  %v1659_v21 = vadd.f32 %v7833_v9, %v7865_v51 }
 0x2b5   : > { %v7973_v0 = vpop.permute.xlu1 %2454  ;;  %2010 = vrot.lane.b32.xlu0 %v1993_v11, %s9410_s29  ;;  %v1924_v31 = vrot.slane %v7980_v58, 1  ;;  %v1742_v62 = vrot.slane %v7980_v58, 7  ;;  %v2473_v5 = vmul.f32 %v7846_v38, %v7980_v58  ;;  %v9433_v38 = vmov 10  }
 0x2b6   : > { %v9437_v11 = vmov 16  }
 0x2b7   : > { %v7997_v49 = vsel %vm880_vm0, %v1922_v4, %v1924_v31  ;;  %v8002_v27 = vsel %vm684_vm1, %v1740_v29, %v1742_v62  ;;  %v2472_v4 = vmul.f32 %v7848_v36, %v7925_v63  ;;  %v9434_v36 = vmov 11  }
 0x2b8   : > { %2106 = vrot.lane.b32.xlu2 %v2089_v43, %s6895_s0  ;;  %2202 = vrot.lane.b32.xlu1 %v2185_v3, %s9408_s26  ;;  %v2281_v39 = vmul.f32 %v7880_v32, %v7997_v49  ;;  %v2377_v48 = vmul.f32 %v7835_v54, %v8002_v27  ;;  %v8019_v32 = vld [vmem:[%s9423_s20 + $0x30] sm:$0xff]  ;;  %v8027_v54 = vld [vmem:[%s9423_s20 + $0x38] sm:$0xff]  ;;  %v9435_v29 = vmov 14   ;;  %v1688_v3 = vadd.f32 %v7871_v47, %v1659_v21 }
 0x2b9   : > { %v9438_v43 = vmov 13  }
 0x2bd   : > { %v1890_v16 = vpop.permute.xlu1 %1889  ;;  %2200 = vrot.lane.b32.xlu0 %v2184_v44, %s9408_s26  ;;  %v8048_v44 = vmax.f32 %v1688_v3, 0.0 }
 0x2be   : > { %1912 = vst.msk [vmem:[#allocation2 + $0x18] sm:$0xff] %vm869_vm3, %v1890_v16  ;;  %v9439_v16 = vmov 15  }
 0x2bf   : > { %v1926_v51 = vrot.slane %v8048_v44, 1  ;;  %v2187_v21 = vmul.f32 %v7867_v24, %v8048_v44 }
 0x2c0   : > { %2296 = vrot.lane.b32.xlu2 %v2280_v23, %s9406_s4  ;;  %2392 = vrot.lane.b32.xlu1 %v2376_v42, %s9404_s30  ;;  %v9440_v23 = vmov 9  }
 0x2c1   : > { %v8058_v47 = vsel %vm880_vm0, %v1924_v31, %v1926_v51  ;;  %v2186_v31 = vmul.f32 %v7869_v17, %v7980_v58 }
 0x2c2   : > { %v1995_v42 = vmul.f32 %v7863_v45, %v8058_v47  ;;  %v8074_v45 = vpop.permute.xlu2 %2459 }
 0x2c5   : > { %2298 = vrot.lane.b32.xlu0 %v2281_v39, %s9406_s4 }
 0x2c8   : > { %2394 = vrot.lane.b32.xlu2 %v2377_v48, %s9404_s30  ;;  %2490 = vrot.lane.b32.xlu1 %v2473_v5, %s9402_s27  ;;  %v1874_v48 = vmul.f32 %v7855_v8, %v7980_v58  ;;  %v1873_v5 = vmul.f32 %v7886_v15, %v7925_v63  ;;  %v2090_v15 = vmul.f32 %v7859_v46, %v8002_v27  ;;  %v6491_v46 = vld [vmem:[%s9441_s1 + $0x20] sm:$0xff] }
 0x2c9   : > { %v1994_v63 = vmul.f32 %v7853_v13, %v7997_v49 }
 0x2cd   : > { %2488 = vrot.lane.b32.xlu0 %v2472_v4, %s9402_s27  ;;  %v6494_v4 = vld [vmem:[%s9441_s1 + $0x38] sm:$0xff] }
 0x2ce   : > { %2676 = vmatpush.bf16.msra.mxu2 %v6494_v4 }
 0x2d0   : > { %2530 = vperm.xlu2 %6805, %v7671_v60   ;;  %1863 = vperm.xlu1 %6806, %v8019_v32   ;;  %v9436_v60 = vmov 12  }
 0x2d5   : > { %2080 = vperm.xlu0 %6800, %v8019_v32  }
 0x2d8   : > { %6807 = vset.pattern.permute.xlu2 %v9433_v38  ;;  %6808 = vset.pattern.permute.xlu1 %v9434_v36  ;;  %v6493_v38 = vld [vmem:[%s9441_s1 + $0x30] sm:$0xff] }
 0x2d9   : > { %1868 = vperm.xlu2 %6807, %v8027_v54   ;;  %1984 = vperm.xlu1 %6808, %v8019_v32  }
 0x2da   : > { %2677 = vmatpush.bf16.msra.mxu2 %v6493_v38 }
 0x2dd   : > { %6814 = vset.pattern.permute.xlu0 %v9435_v29 }
 0x2de   : > { %2277 = vperm.xlu0 %6814, %v8027_v54  }
 0x2e1   : > { %6809 = vset.pattern.permute.xlu2 %v9434_v36  ;;  %6810 = vset.pattern.permute.xlu1 %v9436_v60  ;;  %v1744_v36 = vrot.slane %v8048_v44, 7  ;;  %v2066_v60 = vpop.permute.xlu0 %2065 }
 0x2e2   : > { %1989 = vperm.xlu2 %6809, %v8027_v54   ;;  %2085 = vperm.xlu1 %6810, %v8027_v54  }
 0x2e3   : > { %v8125_v13 = vsel %vm684_vm1, %v1742_v62, %v1744_v36 }
 0x2e4   : > { %v2091_v3 = vmul.f32 %v2066_v60, %v8125_v13 }
 0x2e6   : > { %6819 = vset.pattern.permute.xlu0 %v9437_v11 }
 0x2e7   : > { %2464 = vperm.xlu0 %6819, %v8019_v32  }
 0x2ea   : > { %6811 = vset.pattern.permute.xlu2 %v9438_v43  ;;  %6812 = vset.pattern.permute.xlu1 %v9438_v43  ;;  %v6489_v43 = vld [vmem:[%s9441_s1 + $0x10] sm:$0xff] }
 0x2eb   : > { %2176 = vperm.xlu2 %6811, %v8019_v32   ;;  %2181 = vperm.xlu1 %6812, %v8027_v54  }
 0x2ef   : > { %6820 = vset.pattern.permute.xlu0 %v6911_v35 }
 0x2f0   : > { %2535 = vperm.xlu0 %6820, %v7629_v6   ;;  %v8064_v6 = vmax.f32 %v7878_v41, 0.0 }
 0x2f2   : > { %v1928_v39 = vrot.slane %v8064_v6, 1  ;;  %v1746_v24 = vrot.slane %v8064_v6, 7 }
 0x2f3   : > { %6813 = vset.pattern.permute.xlu2 %v9435_v29  ;;  %6815 = vset.pattern.permute.xlu1 %v9439_v16  ;;  %v1664_v29 = vadd.f32 %v7833_v9, %v7904_v33 }
 0x2f4   : > { %2272 = vperm.xlu2 %6813, %v8019_v32   ;;  %2368 = vperm.xlu1 %6815, %v8019_v32   ;;  %v8079_v41 = vsel %vm880_vm0, %v1926_v51, %v1928_v39  ;;  %v8170_v4 = vsel %vm684_vm1, %v1744_v36, %v1746_v24 }
 0x2f5   : > { %v2379_v38 = vmul.f32 %v7884_v14, %v8170_v4 }
 0x2f8   : > { %2014 = vrot.lane.b32.xlu0 %v1995_v42, %s9410_s29  ;;  %v6488_v42 = vld [vmem:[%s9441_s1 + $0x8] sm:$0xff] }
 0x2fc   : > { %6816 = vset.pattern.permute.xlu2 %v9439_v16  ;;  %6817 = vset.pattern.permute.xlu1 %v9440_v23 }
 0x2fd   : > { %2373 = vperm.xlu2 %6816, %v8027_v54   ;;  %1779 = vperm.xlu1 %6817, %v7650_v52   ;;  %v2283_v52 = vmul.f32 %v7873_v61, %v8079_v41  ;;  %v2474_v61 = vmul.f32 %v7882_v25, %v8048_v44  ;;  %v6492_v25 = vld [vmem:[%s9441_s1 + $0x28] sm:$0xff] }
 0x2fe   : > { %2678 = vmatpush.bf16.msra.mxu2 %v6492_v25  ;;  %v2475_v25 = vmul.f32 %v7890_v53, %v8064_v6 }
 0x300   : > { %2204 = vrot.lane.b32.xlu0 %v2186_v31, %s9408_s26  ;;  %v2378_v31 = vmul.f32 %v7908_v2, %v8125_v13 }
 0x302   : > { %2679 = vmatpush.bf16.msra.mxu2 %v6491_v46 }
 0x305   : > { %6818 = vset.pattern.permute.xlu2 %v9440_v23  ;;  %6821 = vset.pattern.permute.xlu1 %v9437_v11  ;;  %v1693_v11 = vadd.f32 %v7906_v37, %v1664_v29  ;;  %v6490_v37 = vld [vmem:[%s9441_s1 + $0x18] sm:$0xff] }
 0x306   : > { %1784 = vperm.xlu2 %6818, %v7734_v10   ;;  %2469 = vperm.xlu1 %6821, %v8027_v54  }
 0x307   : > { %v8127_v33 = vmax.f32 %v1693_v11, 0.0  ;;  %2680 = vmatpush.bf16.msra.mxu2 %v6490_v37  ;;  %v1875_v11 = vmul.f32 %v7888_v20, %v8048_v44  ;;  %v9443_v20 = vld [vmem:[#allocation4_spill] sm:$0xff] }
 0x308   : > { %2302 = vrot.lane.b32.xlu0 %v2283_v52, %s9406_s4  ;;  %v2282_v52 = vmul.f32 %v7876_v19, %v8058_v47 }
 0x309   : > { %v1748_v58 = vrot.slane %v8127_v33, 7  ;;  %v1930_v2 = vrot.slane %v8127_v33, 1 }
 0x30a   : > { %v2009_v17 = vpop.permute.xlu2 %2008 }
 0x30b   : > { %v8148_v16 = vsel %vm684_vm1, %v1746_v24, %v1748_v58  ;;  %2681 = vmatpush.bf16.msra.mxu2 %v6489_v43  ;;  %v6495_v43 = vld [vmem:[%s9441_s1 + $0x40] sm:$0xff] }
 0x30c   : > { %2712 = vmatpush.bf16.msra.mxu3 %v6495_v43 }
 0x30e   : > { %1891 = vrot.lane.b32.xlu2 %v1873_v5, %s6899_s23  ;;  %1893 = vrot.lane.b32.xlu1 %v1874_v48, %s6899_s23  ;;  %v6487_v5 = vld [vmem:[%s9441_s1] sm:$0xff] }
 0x30f   : > { %6822 = vset.pattern.permute.xlu2 %v6911_v35  ;;  %6823 = vset.pattern.permute.xlu1 %v9440_v23 }
 0x310   : > { %2492 = vrot.lane.b32.xlu0 %v2474_v61, %s9402_s27  ;;  %2682 = vmatpush.bf16.msra.mxu2 %v6488_v42  ;;  %v9446_v42 = vld [vmem:[#allocation6_spill] sm:$0xff] }
 0x312   : > { %v2107_v8 = vpop.permute.xlu2 %2106 }
 0x314   : > { %2683 = vmatpush.bf16.msra.mxu2 %v6487_v5  ;;  %v9447_v5 = vld [vmem:[#allocation8_spill] sm:$0xff] }
 0x316   : > { %2012 = vrot.lane.b32.xlu2 %v1994_v63, %s9410_s29  ;;  %2108 = vrot.lane.b32.xlu1 %v2090_v15, %s6895_s0  ;;  %v9442_v15 = vrot.slane %v7923_v26, 7 }
 0x318   : > { %2545 = vperm.xlu0 %6820, %v7734_v10   ;;  %v1996_v10 = vmul.f32 %v7896_v50, %v8079_v41  ;;  %v8202_v63 = vsel %vm684_vm1, %v1748_v58, %v9442_v15 }
 0x319   : > { %v2381_v36 = vmul.f32 %v7916_v1, %v8202_v63 }
 0x31a   : > { %v2297_v9 = vpop.permute.xlu2 %2296 }
 0x31e   : > { %2206 = vrot.lane.b32.xlu1 %v2187_v21, %s9408_s26  ;;  %2110 = vrot.lane.b32.xlu2 %v2091_v3, %s6895_s0  ;;  %v9444_v21 = vld [vmem:[#allocation3_spill] sm:$0xff] }
 0x31f   : > { %v1888_v62 = vpop.permute.xlu0 %1887  ;;  %v1876_v3 = vmul.f32 %v9444_v21, %v8064_v6 }
 0x320   : > { %1911 = vst.msk [vmem:[#allocation2] sm:$0xff] %vm869_vm3, %v1888_v62  ;;  %2016 = vrot.lane.b32.xlu0 %v1996_v10, %s9410_s29 }
 0x321   : > { %2032 = vst.msk [vmem:[#allocation2] sm:$0xff] %vm992_vm4, %v2009_v17  ;;  %v2093_v17 = vmul.f32 %v7900_v40, %v8148_v16 }
 0x322   : > { %v2395_v50 = vpop.permute.xlu2 %2394  ;;  %v2105_v51 = vpop.permute.xlu1 %2104 }
 0x323   : > { %2128 = vst.msk [vmem:[#allocation2] sm:$0xff] %vm1089_vm5, %v2105_v51 }
 0x326   : > { %2396 = vrot.lane.b32.xlu1 %v2378_v31, %s9404_s30  ;;  %2300 = vrot.lane.b32.xlu2 %v2282_v52, %s9406_s4  ;;  %v2092_v31 = vmul.f32 %v9446_v42, %v8170_v4  ;;  %v1932_v52 = vrot.slane %v7923_v26, 1 }
 0x327   : > { %v2011_v48 = vpop.permute.xlu0 %2010 }
 0x328   : > { %2033 = vst.msk [vmem:[#allocation2 + $0x18] sm:$0xff] %vm992_vm4, %v2011_v48  ;;  %2114 = vrot.lane.b32.xlu0 %v2093_v17, %s6895_s0 }
 0x329   : > { %2129 = vst.msk [vmem:[#allocation2 + $0x18] sm:$0xff] %vm1089_vm5, %v2107_v8  ;;  %v8183_v8 = vsel %vm880_vm0, %v1928_v39, %v1930_v2 }
 0x32a   : > { %v2531_v19 = vpop.permute.xlu2 %2530  ;;  %v2203_v40 = vpop.permute.xlu1 %2202  ;;  %v1997_v44 = vmul.f32 %v9443_v20, %v8183_v8 }
 0x32b   : > { %v2568_v61 = vmul.f32 %v2531_v19, %v7997_v49  ;;  %2225 = vst.msk [vmem:[#allocation2 + $0x18] sm:$0xff] %vm1186_vm6, %v2203_v40  ;;  %v2284_v49 = vmul.f32 %v7910_v28, %v8183_v8  ;;  %v2522_v28 = vld [vmem:[%s9423_s20 + $0x10] sm:$0xff] }
 0x32d   : > { %2576 = vst.msk [vmem:[#allocation2 + $0x8] sm:$0xff] %vm772_vm2, %v2568_v61  ;;  %v9448_v61 = vld [vmem:[#allocation7_spill] sm:$0xff] }
 0x32e   : > { %2494 = vrot.lane.b32.xlu1 %v2475_v25, %s9402_s27  ;;  %2398 = vrot.lane.b32.xlu2 %v2379_v38, %s9404_s30  ;;  %v2189_v38 = vmul.f32 %v9448_v61, %v8127_v33 }
 0x32f   : > { %v2201_v14 = vpop.permute.xlu0 %2200 }
 0x330   : > { %2224 = vst.msk [vmem:[#allocation2] sm:$0xff] %vm1186_vm6, %v2201_v14  ;;  %2304 = vrot.lane.b32.xlu0 %v2284_v49, %s9406_s4  ;;  %v9449_v14 = vld [vmem:[#allocation9_spill] sm:$0xff] }
 0x331   : > { %2320 = vst.msk [vmem:[#allocation2] sm:$0xff] %vm1283_vm7, %v2297_v9 }
 0x332   : > { %v2393_v53 = vpop.permute.xlu1 %2392 }
 0x333   : > { %2416 = vst.msk [vmem:[#allocation2] sm:$0xff] %vm1380_vm8, %v2393_v53  ;;  %v8194_v39 = vpop.permute.xlu2 %1868  ;;  %v2380_v53 = vmul.f32 %v9449_v14, %v8148_v16 }
 0x334   : > { %v2585_v21 = vld [vmem:[#allocation2 + $0x8] sm:$0xff] }
 0x336   : > { %1789 = vperm.xlu1 %6823, %v7683_v34   ;;  %2540 = vperm.xlu2 %6822, %v2522_v28   ;;  %v2524_v34 = vld [vmem:[%s9423_s20 + $0x20] sm:$0xff] }
 0x337   : > { %v2299_v29 = vpop.permute.xlu0 %2298 }
 0x338   : > { %2321 = vst.msk [vmem:[#allocation2 + $0x18] sm:$0xff] %vm1283_vm7, %v2299_v29  ;;  %2402 = vrot.lane.b32.xlu0 %v2381_v36, %s9404_s30 }
 0x339   : > { %2417 = vst.msk [vmem:[#allocation2 + $0x18] sm:$0xff] %vm1380_vm8, %v2395_v50  ;;  %v9445_v50 = vld [vmem:[#allocation5_spill] sm:$0xff] }
 0x33a   : > { %v2491_v60 = vpop.permute.xlu1 %2490  ;;  %v2188_v51 = vmul.f32 %v9445_v50, %v8064_v6  ;;  %v8251_v6 = vsel %vm880_vm0, %v1930_v2, %v1932_v52  ;;  %v2476_v2 = vmul.f32 %v7973_v0, %v8127_v33 }
 0x33b   : > { %2513 = vst.msk [vmem:[#allocation2 + $0x18] sm:$0xff] %vm1477_vm9, %v2491_v60  ;;  %v2285_v19 = vmul.f32 %v9447_v5, %v8251_v6 }
 0x33c   : > { %v8213_v46 = vpop.permute.xlu2 %1989 }
 0x33e   : > { %1895 = vrot.lane.b32.xlu1 %v1875_v11, %s6899_s23  ;;  %6824 = vset.pattern.permute.xlu2 %v9440_v23  ;;  %v2525_v11 = vld [vmem:[%s9423_s20 + $0x28] sm:$0xff] }
 0x33f   : > { %1794 = vperm.xlu2 %6824, %v7704_v59   ;;  %v2489_v1 = vpop.permute.xlu0 %2488  ;;  %6825 = vset.pattern.permute.xlu1 %v6911_v35 }
 0x340   : > { %2512 = vst.msk [vmem:[#allocation2] sm:$0xff] %vm1477_vm9, %v2489_v1  ;;  %2550 = vperm.xlu0 %6820, %v2524_v34   ;;  %v2477_v34 = vmul.f32 %v8074_v45, %v7923_v26 }
 0x342   : > { %v1864_v9 = vpop.permute.xlu1 %1863  ;;  %v2586_v58 = vld [vmem:[#allocation2 + $0x18] sm:$0xff] }
 0x345   : > { %v8225_v37 = vpop.permute.xlu2 %2176 }
 0x346   : > { %2018 = vrot.lane.b32.xlu1 %v1997_v44, %s9410_s29 }
 0x347   : > { %1897 = vrot.lane.b32.xlu2 %v1876_v3, %s6899_s23  ;;  %v2081_v59 = vpop.permute.xlu0 %2080  ;;  %v2584_v10 = vld [vmem:[#allocation2] sm:$0xff] }
 0x348   : > { %6826 = vset.pattern.permute.xlu0 %v9440_v23  ;;  %v2600_v62 = vpack.c.bf16 %v2586_v58, %v2584_v10  ;;  %v2094_v23 = vmul.f32 %v2081_v59, %v8202_v63 }
 0x349   : > { %1804 = vperm.xlu0 %6826, %v8027_v54  }
 0x34a   : > { %2684 = vmatmul.bf16.vlgmr.msra.gmra.mxu2 %v2600_v62 }
 0x34b   : > { %v1985_v24 = vpop.permute.xlu1 %1984 }
 0x34e   : > { %v8241_v17 = vpop.permute.xlu2 %2272  ;;  %2208 = vrot.lane.b32.xlu1 %v2188_v51, %s9408_s26 }
 0x34f   : > { %2112 = vrot.lane.b32.xlu2 %v2092_v31, %s6895_s0 }
 0x350   : > { %v8246_v48 = vpop.permute.xlu0 %2277 }
 0x351   : > { %2116 = vrot.lane.b32.xlu0 %v2094_v23, %s6895_s0 }
 0x354   : > { %v2086_v40 = vpop.permute.xlu1 %2085 }
 0x356   : > { %2306 = vrot.lane.b32.xlu1 %v2285_v19, %s9406_s4 }
 0x357   : > { %v8259_v25 = vpop.permute.xlu2 %2373  ;;  %2210 = vrot.lane.b32.xlu2 %v2189_v38, %s9408_s26 }
 0x359   : > { %v8262_v49 = vpop.permute.xlu0 %2464 }
 0x35d   : > { %v2182_v28 = vpop.permute.xlu1 %2181 }
 0x35e   : > { %v2191_v15 = vmul.f32 %v2182_v28, %v7927_v57  ;;  %2496 = vrot.lane.b32.xlu1 %v2476_v2, %s9402_s27 }
 0x35f   : > { %2400 = vrot.lane.b32.xlu2 %v2380_v53, %s9404_s30 }
 0x360   : > { %v1785_v36 = vpop.permute.xlu2 %1784  ;;  %2214 = vrot.lane.b32.xlu0 %v2191_v15, %s9408_s26 }
 0x361   : > { %v1810_v29 = vmul.f32 %v1785_v36, %v8002_v27 }
 0x362   : > { %v2536_v60 = vpop.permute.xlu0 %2535 }
 0x363   : > { %1818 = vst.msk [vmem:[#allocation2 + $0x48] sm:$0xff] %vm772_vm2, %v1810_v29  ;;  %v2569_v0 = vmul.f32 %v2536_v60, %v8058_v47  ;;  %v1877_v47 = vmul.f32 %v1864_v9, %v8127_v33  ;;  %v1998_v33 = vmul.f32 %v1985_v24, %v8251_v6  ;;  %v1878_v9 = vmul.f32 %v8194_v39, %v7923_v26 }
 0x364   : > { %v8303_v24 = vsel %vm880_vm0, %v1932_v52, %v1919_v7  ;;  %v2095_v39 = vmul.f32 %v2086_v40, %v7940_v55 }
 0x365   : > { %2577 = vst.msk [vmem:[#allocation2 + $0x20] sm:$0xff] %vm772_vm2, %v2569_v0  ;;  %v1999_v42 = vmul.f32 %v8213_v46, %v8303_v24  ;;  %v2286_v7 = vmul.f32 %v8241_v17, %v8303_v24  ;;  %v2383_v17 = vmul.f32 %v8259_v25, %v7949_v30  ;;  %v2478_v30 = vmul.f32 %v8262_v49, %v7927_v57 }
 0x366   : > { %2555 = vperm.xlu1 %6825, %v2525_v11   ;;  %v2369_v1 = vpop.permute.xlu1 %2368 }
 0x367   : > { %v2382_v20 = vmul.f32 %v2369_v1, %v7940_v55  ;;  %2498 = vrot.lane.b32.xlu2 %v2477_v34, %s9402_s27  ;;  %v2190_v55 = vmul.f32 %v8225_v37, %v7923_v26  ;;  %v2287_v26 = vmul.f32 %v8246_v48, %v7946_v18 }
 0x368   : > { %v1892_v27 = vpop.permute.xlu2 %1891 }
 0x369   : > { %2404 = vrot.lane.b32.xlu0 %v2382_v20, %s9404_s30 }
 0x36a   : > { %v2015_v44 = vpop.permute.xlu0 %2014 }
 0x36c   : > { %v2587_v3 = vld [vmem:[#allocation2 + $0x20] sm:$0xff] }
 0x36d   : > { %v2601_v59 = vpack.c.bf16 %v2587_v3, %v2585_v21 }
 0x36e   : > { %1899 = vrot.lane.b32.xlu1 %v1877_v47, %s6899_s23 }
 0x36f   : > { %v1780_v45 = vpop.permute.xlu1 %1779  ;;  %1799 = vperm.xlu2 %6824, %v8019_v32   ;;  %5726 = vmatmul.msk.bf16.vlgmr.msra.gmra.mxu3 %vm772_vm2, %v2601_v59 }
 0x370   : > { %v1809_v10 = vmul.f32 %v1780_v45, %v7968_v12  ;;  %v2013_v58 = vpop.permute.xlu2 %2012 }
 0x372   : > { %1817 = vst.msk [vmem:[#allocation2 + $0x30] sm:$0xff] %vm772_vm2, %v1809_v10  ;;  %v2205_v62 = vpop.permute.xlu0 %2204 }
 0x373   : > { %1913 = vst.msk [vmem:[#allocation2 + $0x30] sm:$0xff] %vm869_vm3, %v1892_v27 }
 0x374   : > { %2034 = vst.msk [vmem:[#allocation2 + $0x30] sm:$0xff] %vm992_vm4, %v2013_v58 }
 0x376   : > { %2020 = vrot.lane.b32.xlu1 %v1998_v33, %s9410_s29 }
 0x377   : > { %1901 = vrot.lane.b32.xlu2 %v1878_v9, %s6899_s23 }
 0x378   : > { %v2470_v43 = vpop.permute.xlu1 %2469  ;;  %v2111_v50 = vpop.permute.xlu2 %2110  ;;  %6827 = vset.pattern.permute.xlu2 %v6911_v35 }
 0x379   : > { %v2479_v12 = vmul.f32 %v2470_v43, %v7844_v56 }
 0x37a   : > { %v2303_v51 = vpop.permute.xlu0 %2302 }
 0x37b   : > { %2502 = vrot.lane.b32.xlu0 %v2479_v12, %s9402_s27 }
 0x37e   : > { %2118 = vrot.lane.b32.xlu1 %v2095_v39, %s6895_s0 }
 0x37f   : > { %2022 = vrot.lane.b32.xlu2 %v1999_v42, %s9410_s29 }
 0x380   : > { %v1894_v35 = vpop.permute.xlu1 %1893  ;;  %v2301_v31 = vpop.permute.xlu2 %2300 }
 0x381   : > { %1914 = vst.msk [vmem:[#allocation2 + $0x48] sm:$0xff] %vm869_vm3, %v1894_v35  ;;  %v8380_v35 = vld [vmem:[%s9379_s19 + $0x1] ss:$0 sm:$0xff] }
 0x382   : > { %2035 = vst.msk [vmem:[#allocation2 + $0x48] sm:$0xff] %vm992_vm4, %v2015_v44  ;;  %v2493_v56 = vpop.permute.xlu0 %2492 }
 0x383   : > { %2131 = vst.msk [vmem:[#allocation2 + $0x48] sm:$0xff] %vm1089_vm5, %v2111_v50 }
 0x386   : > { %2308 = vrot.lane.b32.xlu1 %v2286_v7, %s9406_s4 }
 0x387   : > { %2212 = vrot.lane.b32.xlu2 %v2190_v55, %s9408_s26  ;;  %s9452_s26 = smov 80  }
 0x388   : > { %v2109_v46 = vpop.permute.xlu1 %2108  ;;  %v2399_v52 = vpop.permute.xlu2 %2398 }
 0x389   : > { %2130 = vst.msk [vmem:[#allocation2 + $0x30] sm:$0xff] %vm1089_vm5, %v2109_v46 }
 0x38a   : > { %2226 = vst.msk [vmem:[#allocation2 + $0x30] sm:$0xff] %vm1186_vm6, %v2205_v62  ;;  %v2546_v23 = vpop.permute.xlu0 %2545 }
 0x38b   : > { %2322 = vst.msk [vmem:[#allocation2 + $0x30] sm:$0xff] %vm1283_vm7, %v2301_v31  ;;  %v2571_v5 = vmul.f32 %v2546_v23, %v8183_v8 }
 0x38d   : > { %2579 = vst.msk [vmem:[#allocation2 + $0x50] sm:$0xff] %vm772_vm2, %v2571_v5 }
 0x38e   : > { %2406 = vrot.lane.b32.xlu1 %v2383_v17, %s9404_s30 }
 0x38f   : > { %2310 = vrot.lane.b32.xlu2 %v2287_v26, %s9406_s4  ;;  %s9457_s4 = sld [smem:[#allocation14_spill]] }
 0x390   : > { %v2207_v37 = vpop.permute.xlu1 %2206  ;;  %v2541_v19 = vpop.permute.xlu2 %2540 }
 0x391   : > { %2227 = vst.msk [vmem:[#allocation2 + $0x48] sm:$0xff] %vm1186_vm6, %v2207_v37  ;;  %v2570_v40 = vmul.f32 %v2541_v19, %v8079_v41 }
 0x392   : > { %2323 = vst.msk [vmem:[#allocation2 + $0x48] sm:$0xff] %vm1283_vm7, %v2303_v51  ;;  %v2017_v8 = vpop.permute.xlu0 %2016 }
 0x393   : > { %2419 = vst.msk [vmem:[#allocation2 + $0x48] sm:$0xff] %vm1380_vm8, %v2399_v52 }
 0x394   : > { %2578 = vst.msk [vmem:[#allocation2 + $0x38] sm:$0xff] %vm772_vm2, %v2570_v40  ;;  %v2591_v2 = vld [vmem:[#allocation2 + $0x50] sm:$0xff] }
 0x396   : > { %2560 = vperm.xlu1 %6825, %v8019_v32  }
 0x397   : > { %2500 = vrot.lane.b32.xlu2 %v2478_v30, %s9402_s27  ;;  %s9453_s27 = smov 96  }
 0x398   : > { %v2397_v48 = vpop.permute.xlu1 %2396 }
 0x399   : > { %2418 = vst.msk [vmem:[#allocation2 + $0x30] sm:$0xff] %vm1380_vm8, %v2397_v48  ;;  %v1795_v61 = vpop.permute.xlu2 %1794 }
 0x39a   : > { %2514 = vst.msk [vmem:[#allocation2 + $0x30] sm:$0xff] %vm1477_vm9, %v2493_v56  ;;  %v1812_v41 = vmul.f32 %v1795_v61, %v8170_v4  ;;  %v2115_v38 = vpop.permute.xlu0 %2114 }
 0x39b   : > { %v2589_v25 = vld [vmem:[#allocation2 + $0x38] sm:$0xff] }
 0x39c   : > { %1820 = vst.msk [vmem:[#allocation2 + $0x78] sm:$0xff] %vm772_vm2, %v1812_v41  ;;  %v2603_v14 = vpack.c.bf16 %v2591_v2, %v2589_v25 }
 0x39e   : > { %5727 = vmatmul.msk.bf16.gmra.mxu3 %vm772_vm2, %v2603_v14 }
 0x39f   : > { %2565 = vperm.xlu2 %6827, %v8027_v54  }
 0x3a0   : > { %v2495_v57 = vpop.permute.xlu1 %2494 }
 0x3a1   : > { %2515 = vst.msk [vmem:[#allocation2 + $0x48] sm:$0xff] %vm1477_vm9, %v2495_v57  ;;  %v1898_v32 = vpop.permute.xlu2 %1897  ;;  %v2588_v28 = vld [vmem:[#allocation2 + $0x30] sm:$0xff] }
 0x3a2   : > { %1916 = vst.msk [vmem:[#allocation2 + $0x78] sm:$0xff] %vm869_vm3, %v1898_v32  ;;  %v2305_v49 = vpop.permute.xlu0 %2304 }
 0x3a8   : > { %v1790_v53 = vpop.permute.xlu1 %1789  ;;  %v2590_v4 = vld [vmem:[#allocation2 + $0x48] sm:$0xff] }
 0x3a9   : > { %v1811_v15 = vmul.f32 %v1790_v53, %v8125_v13  ;;  %v2113_v36 = vpop.permute.xlu2 %2112  ;;  %v2602_v29 = vpack.c.bf16 %v2590_v4, %v2588_v28 }
 0x3aa   : > { %v2403_v60 = vpop.permute.xlu0 %2402 }
 0x3ab   : > { %1819 = vst.msk [vmem:[#allocation2 + $0x60] sm:$0xff] %vm772_vm2, %v1811_v15  ;;  %2689 = vmatmul.bf16.gmra.mxu2 %v2602_v29 }
 0x3b0   : > { %v1896_v0 = vpop.permute.xlu1 %1895 }
 0x3b1   : > { %1915 = vst.msk [vmem:[#allocation2 + $0x60] sm:$0xff] %vm869_vm3, %v1896_v0  ;;  %v2211_v54 = vpop.permute.xlu2 %2210 }
 0x3b2   : > { %2036 = vst.msk [vmem:[#allocation2 + $0x60] sm:$0xff] %vm992_vm4, %v2017_v8  ;;  %v2551_v11 = vpop.permute.xlu0 %2550 }
 0x3b3   : > { %2132 = vst.msk [vmem:[#allocation2 + $0x60] sm:$0xff] %vm1089_vm5, %v2113_v36  ;;  %v2572_v34 = vmul.f32 %v2551_v11, %v8251_v6 }
 0x3b5   : > { %2580 = vst.msk [vmem:[#allocation2 + $0x68] sm:$0xff] %vm772_vm2, %v2572_v34 }
 0x3b8   : > { %v2019_v13 = vpop.permute.xlu1 %2018 }
 0x3b9   : > { %2037 = vst.msk [vmem:[#allocation2 + $0x78] sm:$0xff] %vm992_vm4, %v2019_v13  ;;  %v2401_v1 = vpop.permute.xlu2 %2400 }
 0x3ba   : > { %2133 = vst.msk [vmem:[#allocation2 + $0x78] sm:$0xff] %vm1089_vm5, %v2115_v38 }
 0x3bb   : > { %2229 = vst.msk [vmem:[#allocation2 + $0x78] sm:$0xff] %vm1186_vm6, %v2211_v54  ;;  %v1805_v20 = vpop.permute.xlu0 %1804 }
 0x3bc   : > { %v1814_v27 = vmul.f32 %v1805_v20, %v8202_v63  ;;  %v2593_v50 = vld [vmem:[#allocation2 + $0x68] sm:$0xff] }
 0x3be   : > { %1822 = vst.msk [vmem:[#allocation2 + $0xa8] sm:$0xff] %vm772_vm2, %v1814_v27 }
 0x3c0   : > { %v2209_v44 = vpop.permute.xlu1 %2208 }
 0x3c1   : > { %2228 = vst.msk [vmem:[#allocation2 + $0x60] sm:$0xff] %vm1186_vm6, %v2209_v44  ;;  %v2499_v47 = vpop.permute.xlu2 %2498 }
 0x3c2   : > { %2324 = vst.msk [vmem:[#allocation2 + $0x60] sm:$0xff] %vm1283_vm7, %v2305_v49 }
 0x3c3   : > { %2420 = vst.msk [vmem:[#allocation2 + $0x60] sm:$0xff] %vm1380_vm8, %v2401_v1  ;;  %v2117_v39 = vpop.permute.xlu0 %2116 }
 0x3c8   : > { %v2307_v6 = vpop.permute.xlu1 %2306 }
 0x3c9   : > { %2325 = vst.msk [vmem:[#allocation2 + $0x78] sm:$0xff] %vm1283_vm7, %v2307_v6  ;;  %v1800_v21 = vpop.permute.xlu2 %1799 }
 0x3ca   : > { %2421 = vst.msk [vmem:[#allocation2 + $0x78] sm:$0xff] %vm1380_vm8, %v2403_v60  ;;  %v1813_v3 = vmul.f32 %v1800_v21, %v8148_v16 }
 0x3cb   : > { %2517 = vst.msk [vmem:[#allocation2 + $0x78] sm:$0xff] %vm1477_vm9, %v2499_v47 }
 0x3cc   : > { %1821 = vst.msk [vmem:[#allocation2 + $0x90] sm:$0xff] %vm772_vm2, %v1813_v3 }
 0x3cd   : > { %v2685_v31 = vpop.f32.mrf.mxu2 }
 0x3ce   : > { %v2686_v55 = vadd.f32 %v8380_v35, %v2685_v31  ;;  %v6508_v31 = vld [vmem:[%s9450_s14 + $0x18] sm:$0xff] }
 0x3d0   : > { %v2497_v63 = vpop.permute.xlu1 %2496 }
 0x3d1   : > { %2516 = vst.msk [vmem:[#allocation2 + $0x60] sm:$0xff] %vm1477_vm9, %v2497_v63  ;;  %v1902_v59 = vpop.permute.xlu2 %1901 }
 0x3d2   : > { %1918 = vst.msk [vmem:[#allocation2 + $0xa8] sm:$0xff] %vm869_vm3, %v1902_v59  ;;  %v2594_v58 = vld [vmem:[#allocation2 + $0x78] sm:$0xff]  ;;  %v2215_v56 = vpop.permute.xlu0 %2214 }
 0x3d5   : > { %v2687_v2 = vpop.f32.mrf.mxu2 }
 0x3d8   : > { %v2556_v45 = vpop.permute.xlu1 %2555  ;;  %v2592_v10 = vld [vmem:[#allocation2 + $0x60] sm:$0xff] }
 0x3d9   : > { %v2573_v62 = vmul.f32 %v2556_v45, %v8303_v24  ;;  %v2023_v33 = vpop.permute.xlu2 %2022  ;;  %v2604_v9 = vpack.c.bf16 %v2594_v58, %v2592_v10  ;;  %v2688_v10 = vadd.f32 %v8380_v35, %v2687_v2 }
 0x3da   : > { %2039 = vst.msk [vmem:[#allocation2 + $0xa8] sm:$0xff] %vm992_vm4, %v2023_v33 }
 0x3db   : > { %2581 = vst.msk [vmem:[#allocation2 + $0x80] sm:$0xff] %vm772_vm2, %v2573_v62  ;;  %2694 = vmatmul.bf16.gmra.mxu2 %v2604_v9  ;;  %v2405_v17 = vpop.permute.xlu0 %2404 }
 0x3e0   : > { %v1900_v16 = vpop.permute.xlu1 %1899 }
 0x3e1   : > { %1917 = vst.msk [vmem:[#allocation2 + $0x90] sm:$0xff] %vm869_vm3, %v1900_v16  ;;  %v2213_v43 = vpop.permute.xlu2 %2212 }
 0x3e2   : > { %v2595_v12 = vld [vmem:[#allocation2 + $0x80] sm:$0xff] }
 0x3e3   : > { %v2605_v51 = vpack.c.bf16 %v2595_v12, %v2593_v50 }
 0x3e5   : > { %5728 = vmatmul.msk.bf16.gmra.mxu3 %vm772_vm2, %v2605_v51 }
 0x3e8   : > { %v2021_v42 = vpop.permute.xlu1 %2020 }
 0x3e9   : > { %2038 = vst.msk [vmem:[#allocation2 + $0x90] sm:$0xff] %vm992_vm4, %v2021_v42  ;;  %v2311_v24 = vpop.permute.xlu2 %2310  ;;  %v6506_v42 = vld [vmem:[%s9450_s14 + $0x8] sm:$0xff] }
 0x3ea   : > { %2134 = vst.msk [vmem:[#allocation2 + $0x90] sm:$0xff] %vm1089_vm5, %v2117_v39 }
 0x3eb   : > { %2230 = vst.msk [vmem:[#allocation2 + $0x90] sm:$0xff] %vm1186_vm6, %v2213_v43 }
 0x3ed   : > { %v2503_v40 = vpop.permute.xlu0 %2502 }
 0x3f0   : > { %v2119_v7 = vpop.permute.xlu1 %2118 }
 0x3f1   : > { %2135 = vst.msk [vmem:[#allocation2 + $0xa8] sm:$0xff] %vm1089_vm5, %v2119_v7  ;;  %v2501_v46 = vpop.permute.xlu2 %2500  ;;  %v6509_v7 = vld [vmem:[%s9450_s14 + $0x20] sm:$0xff] }
 0x3f2   : > { %2231 = vst.msk [vmem:[#allocation2 + $0xa8] sm:$0xff] %vm1186_vm6, %v2215_v56  ;;  %v2714_v52 = vpop.f32.mrf.mxu3  ;;  %v6510_v56 = vld [vmem:[%s9450_s14 + $0x28] sm:$0xff] }
 0x3f3   : > { %2327 = vst.msk [vmem:[#allocation2 + $0xa8] sm:$0xff] %vm1283_vm7, %v2311_v24  ;;  %v8386_v23 = vadd.f32 %v2714_v52, %v2686_v55  ;;  %v6505_v24 = vld [vmem:[%s9450_s14] sm:$0xff]  ;;  %v6512_v55 = vld [vmem:[%s9450_s14 + $0x38] sm:$0xff] }
 0x3f5   : > { %v2734_v51 = vmax.f32 %v8386_v23, 0.0 }
 0x3f8   : > { %v2309_v5 = vpop.permute.xlu1 %2308 }
 0x3f9   : > { %2326 = vst.msk [vmem:[#allocation2 + $0x90] sm:$0xff] %vm1283_vm7, %v2309_v5  ;;  %v2566_v26 = vpop.permute.xlu2 %2565 }
 0x3fa   : > { %2422 = vst.msk [vmem:[#allocation2 + $0x90] sm:$0xff] %vm1380_vm8, %v2405_v17  ;;  %v2575_v37 = vmul.f32 %v2566_v26, %v7962_v22  ;;  %v2716_v14 = vpop.f32.mrf.mxu3 }
 0x3fb   : > { %2518 = vst.msk [vmem:[#allocation2 + $0x90] sm:$0xff] %vm1477_vm9, %v2501_v46  ;;  %v2717_v33 = vadd.f32 %v2716_v14, %v2688_v10  ;;  %v6511_v46 = vld [vmem:[%s9450_s14 + $0x30] sm:$0xff]  ;;  %v6503_v14 = vld [vmem:[%s9455_s28 + $0x38] sm:$0xff] }
 0x3fc   : > { %2583 = vst.msk [vmem:[#allocation2 + $0xb0] sm:$0xff] %vm772_vm2, %v2575_v37  ;;  %v6513_v37 = vld [vmem:[%s9450_s14 + $0x40] sm:$0xff]  ;;  %3128 = vmatpush.bf16.msrb.mxu2 %v6503_v14 }
 0x3fd   : > { %v2735_v50 = vmax.f32 %v2717_v33, 0.0 }
 0x3ff   : > { %v2760_v39 = vpack.c.bf16 %v2735_v50, %v2734_v51  ;;  %v6919_v51 = vmov 22  }
 0x400   : > { %v2407_v19 = vpop.permute.xlu1 %2406 }
 0x401   : > { %2423 = vst.msk [vmem:[#allocation2 + $0xa8] sm:$0xff] %vm1380_vm8, %v2407_v19 }
 0x402   : > { %2519 = vst.msk [vmem:[#allocation2 + $0xa8] sm:$0xff] %vm1477_vm9, %v2503_v40  ;;  %v2596_v48 = vld [vmem:[#allocation2 + $0x90] sm:$0xff] }
 0x403   : > { %v2599_v38 = vld [vmem:[#allocation2 + $0xb0] sm:$0xff] }
 0x408   : > { %v2561_v8 = vpop.permute.xlu1 %2560 }
 0x409   : > { %v2574_v30 = vmul.f32 %v2561_v8, %v7946_v18  ;;  %v2598_v61 = vld [vmem:[#allocation2 + $0xa8] sm:$0xff] }
 0x40a   : > { %v2606_v41 = vpack.c.bf16 %v2598_v61, %v2596_v48 }
 0x40b   : > { %2582 = vst.msk [vmem:[#allocation2 + $0x98] sm:$0xff] %vm772_vm2, %v2574_v30 }
 0x40c   : > { %2699 = vmatmul.bf16.gmra.mxu2 %v2606_v41 }
 0x412   : > { %v2597_v22 = vld [vmem:[#allocation2 + $0x98] sm:$0xff] }
 0x413   : > { %v2607_v25 = vpack.c.bf16 %v2599_v38, %v2597_v22 }
 0x415   : > { %5729 = vmatmul.msk.bf16.gmra.mxu3 %vm772_vm2, %v2607_v25 }
 0x421   : > { %v2719_v32 = vpop.f32.mrf.mxu3 }
 0x429   : > { %v2721_v53 = vpop.f32.mrf.mxu3 }
 0x42e   : > { %v2690_v57 = vpop.f32.mrf.mxu2 }
 0x42f   : > { %v2691_v47 = vadd.f32 %v8380_v35, %v2690_v57  ;;  %v6502_v57 = vld [vmem:[%s9455_s28 + $0x30] sm:$0xff] }
 0x430   : > { %3129 = vmatpush.bf16.msrb.mxu2 %v6502_v57 }
 0x431   : > { %v2720_v58 = vadd.f32 %v2719_v32, %v2691_v47  ;;  %v6504_v47 = vld [vmem:[%s9455_s28 + $0x40] sm:$0xff] }
 0x433   : > { %v2736_v43 = vmax.f32 %v2720_v58, 0.0  ;;  %v6915_v58 = vmov 19  }
 0x434   : > { %6828 = vset.pattern.permute.xlu2 %v6915_v58  ;;  %6829 = vset.pattern.permute.xlu0 %v6915_v58 }
 0x436   : > { %v2692_v49 = vpop.f32.mrf.mxu2 }
 0x437   : > { %v2693_v1 = vadd.f32 %v8380_v35, %v2692_v49 }
 0x439   : > { %v2722_v63 = vadd.f32 %v2721_v53, %v2693_v1  ;;  %v6501_v53 = vld [vmem:[%s9455_s28 + $0x28] sm:$0xff]  ;;  %v6912_v1 = vmov 20  }
 0x43a   : > { %3130 = vmatpush.bf16.msrb.mxu2 %v6501_v53  ;;  %6830 = vset.pattern.permute.xlu1 %v6912_v1 }
 0x43b   : > { %v2737_v9 = vmax.f32 %v2722_v63, 0.0 }
 0x43d   : > { %v2761_v12 = vpack.c.bf16 %v2737_v9, %v2736_v43  ;;  %v6917_v43 = vmov 18  }
 0x45e   : > { %v2695_v28 = vpop.f32.mrf.mxu2 }
 0x45f   : > { %v2696_v20 = vadd.f32 %v8380_v35, %v2695_v28  ;;  %v6500_v28 = vld [vmem:[%s9455_s28 + $0x20] sm:$0xff] }
 0x460   : > { %3131 = vmatpush.bf16.msrb.mxu2 %v6500_v28 }
 0x466   : > { %v2697_v18 = vpop.f32.mrf.mxu2 }
 0x467   : > { %v2698_v54 = vadd.f32 %v8380_v35, %v2697_v18  ;;  %v6499_v18 = vld [vmem:[%s9455_s28 + $0x18] sm:$0xff] }
 0x468   : > { %v2724_v4 = vpop.f32.mrf.mxu3  ;;  %3132 = vmatpush.bf16.msrb.mxu2 %v6499_v18 }
 0x469   : > { %v2725_v6 = vadd.f32 %v2724_v4, %v2696_v20  ;;  %v8493_v20 = vld [vmem:[%s9423_s20] sm:$0xff] }
 0x46b   : > { %v2738_v62 = vmax.f32 %v2725_v6, 0.0  ;;  %v6913_v6 = vmov 21  }
 0x470   : > { %v2726_v15 = vpop.f32.mrf.mxu3 }
 0x471   : > { %v2727_v27 = vadd.f32 %v2726_v15, %v2698_v54  ;;  %v6498_v15 = vld [vmem:[%s9455_s28 + $0x10] sm:$0xff] }
 0x472   : > { %3133 = vmatpush.bf16.msrb.mxu2 %v6498_v15 }
 0x473   : > { %v2739_v59 = vmax.f32 %v2727_v27, 0.0 }
 0x475   : > { %v2762_v16 = vpack.c.bf16 %v2739_v59, %v2738_v62  ;;  %v6914_v59 = vmov 23   ;;  %v6916_v62 = vmov 24  }
 0x48f   : > { %v2700_v36 = vpop.f32.mrf.mxu2 }
 0x490   : > { %v2701_v0 = vadd.f32 %v8380_v35, %v2700_v36 }
 0x497   : > { %v2702_v60 = vpop.f32.mrf.mxu2 }
 0x498   : > { %v2729_v29 = vpop.f32.mrf.mxu3  ;;  %v2703_v11 = vadd.f32 %v8380_v35, %v2702_v60  ;;  %v6507_v35 = vld [vmem:[%s9450_s14 + $0x10] sm:$0xff] }
 0x499   : > { %v2730_v34 = vadd.f32 %v2729_v29, %v2701_v0  ;;  %v6497_v0 = vld [vmem:[%s9455_s28 + $0x8] sm:$0xff] }
 0x49a   : > { %3134 = vmatpush.bf16.msrb.mxu2 %v6497_v0 }
 0x49b   : > { %v2740_v21 = vmax.f32 %v2730_v34, 0.0 }
 0x4a0   : > { %v2731_v13 = vpop.f32.mrf.mxu3 }
 0x4a1   : > { %v2732_v44 = vadd.f32 %v2731_v13, %v2703_v11  ;;  %v6496_v13 = vld [vmem:[%s9455_s28] sm:$0xff] }
 0x4a2   : > { %3135 = vmatpush.bf16.msrb.mxu2 %v6496_v13 }
 0x4a3   : > { %v2741_v3 = vmax.f32 %v2732_v44, 0.0 }
 0x4a5   : > { %v2763_v45 = vpack.c.bf16 %v2741_v3, %v2740_v21 }
 0x4a6   : > { %3149 = vmatpush.bf16.msra.mxu2 %v6504_v47 }
 0x4a7   : > { %2779 = vmatpush.bf16.msrb.mxu1 %v2763_v45  ;;  %2806 = vmatpush.bf16.msrb.mxu3 %v2763_v45 }
 0x4a8   : > { %3051 = vmatpush.bf16.msrb.mxu0 %v2763_v45 }
 0x4ab   : > { %2780 = vmatpush.bf16.msrb.mxu1 %v2762_v16  ;;  %2807 = vmatpush.bf16.msrb.mxu3 %v2762_v16 }
 0x4ac   : > { %3052 = vmatpush.bf16.msrb.mxu0 %v2762_v16 }
 0x4af   : > { %2781 = vmatpush.bf16.msrb.mxu1 %v2761_v12  ;;  %2808 = vmatpush.bf16.msrb.mxu3 %v2761_v12 }
 0x4b0   : > { %3053 = vmatpush.bf16.msrb.mxu0 %v2761_v12 }
 0x4b3   : > { %2782 = vmatpush.bf16.msrb.mxu1 %v2760_v39  ;;  %2809 = vmatpush.bf16.msrb.mxu3 %v2760_v39 }
 0x4b4   : > { %3054 = vmatpush.bf16.msrb.mxu0 %v2760_v39 }
 0x4b6   : > { %5741 = vmatmul.msk.bf16.vlgmr.msrb.gmra.mxu3 %vm2771_vm10, %v6506_v42  ;;  %5734 = vmatmul.msk.bf16.vlgmr.msrb.gmra.mxu1 %vm2771_vm10, %v6505_v24 }
 0x4b7   : > { %2841 = vmatpush.bf16.msra.mxu1 %v2763_v45  ;;  %2876 = vmatpush.bf16.msra.mxu3 %v2763_v45 }
 0x4b8   : > { %5790 = vmatmul.msk.bf16.vlgmr.msrb.gmra.mxu0 %vm2771_vm10, %v6513_v37 }
 0x4bb   : > { %2842 = vmatpush.bf16.msra.mxu1 %v2762_v16  ;;  %2877 = vmatpush.bf16.msra.mxu3 %v2762_v16 }
 0x4bf   : > { %2843 = vmatpush.bf16.msra.mxu1 %v2761_v12  ;;  %2878 = vmatpush.bf16.msra.mxu3 %v2761_v12 }
 0x4c3   : > { %2844 = vmatpush.bf16.msra.mxu1 %v2760_v39  ;;  %2879 = vmatpush.bf16.msra.mxu3 %v2760_v39 }
 0x4c6   : > { %5748 = vmatmul.msk.bf16.vlgmr.msra.gmra.mxu1 %vm2771_vm10, %v6507_v35  ;;  %5755 = vmatmul.msk.bf16.vlgmr.msra.gmra.mxu3 %vm2771_vm10, %v6508_v31 }
 0x4c7   : > { %2911 = vmatpush.bf16.msrb.mxu1 %v2763_v45  ;;  %2946 = vmatpush.bf16.msrb.mxu3 %v2763_v45 }
 0x4cb   : > { %2912 = vmatpush.bf16.msrb.mxu1 %v2762_v16  ;;  %2947 = vmatpush.bf16.msrb.mxu3 %v2762_v16 }
 0x4cf   : > { %2913 = vmatpush.bf16.msrb.mxu1 %v2761_v12  ;;  %2948 = vmatpush.bf16.msrb.mxu3 %v2761_v12 }
 0x4d3   : > { %2914 = vmatpush.bf16.msrb.mxu1 %v2760_v39  ;;  %2949 = vmatpush.bf16.msrb.mxu3 %v2760_v39 }
 0x4d6   : > { %5769 = vmatmul.msk.bf16.vlgmr.msrb.gmra.mxu3 %vm2771_vm10, %v6510_v56  ;;  %5762 = vmatmul.msk.bf16.vlgmr.msrb.gmra.mxu1 %vm2771_vm10, %v6509_v7 }
 0x4d7   : > { %2981 = vmatpush.bf16.msra.mxu1 %v2763_v45  ;;  %3016 = vmatpush.bf16.msra.mxu3 %v2763_v45  ;;  %v8509_v45 = vld [vmem:[%s9423_s20 + $0x8] sm:$0xff] }
 0x4db   : > { %2982 = vmatpush.bf16.msra.mxu1 %v2762_v16  ;;  %3017 = vmatpush.bf16.msra.mxu3 %v2762_v16 }
 0x4df   : > { %2983 = vmatpush.bf16.msra.mxu1 %v2761_v12  ;;  %3018 = vmatpush.bf16.msra.mxu3 %v2761_v12  ;;  %v6918_v12 = vmov 25  }
 0x4e3   : > { %2984 = vmatpush.bf16.msra.mxu1 %v2760_v39  ;;  %3019 = vmatpush.bf16.msra.mxu3 %v2760_v39 }
 0x4e6   : > { %5783 = vmatmul.msk.bf16.vlgmr.msra.gmra.mxu3 %vm2771_vm10, %v6512_v55  ;;  %5776 = vmatmul.msk.bf16.vlgmr.msra.gmra.mxu1 %vm2771_vm10, %v6511_v46 }
 0x533   : > { %v2784_v52 = vpop.f32.mrf.mxu1 }
 0x534   : > { %2789 = vst.msk [vmem:[#allocation2] sm:$0xff] %vm772_vm2, %v2784_v52 }
 0x535   : > { %v3056_v34 = vpop.f32.mrf.mxu0 }
 0x536   : > { %3061 = vst.msk [vmem:[#allocation2 + $0x8] sm:$0xff] %vm772_vm2, %v3056_v34 }
 0x539   : > { %v2811_v23 = vpop.f32.mrf.mxu3 }
 0x53a   : > { %2818 = vrot.lane.b32.xlu0 %v2811_v23, %s6899_s23 }
 0x53b   : > { %v2786_v5 = vpop.f32.mrf.mxu1 }
 0x53c   : > { %2790 = vst.msk [vmem:[#allocation2 + $0x18] sm:$0xff] %vm772_vm2, %v2786_v5 }
 0x53d   : > { %v3058_v44 = vpop.f32.mrf.mxu0  ;;  %v3064_v39 = vld [vmem:[#allocation2 + $0x8] sm:$0xff] }
 0x53e   : > { %3062 = vst.msk [vmem:[#allocation2 + $0x20] sm:$0xff] %vm772_vm2, %v3058_v44 }
 0x541   : > { %v2813_v17 = vpop.f32.mrf.mxu3 }
 0x542   : > { %2820 = vrot.lane.b32.xlu1 %v2813_v17, %s6899_s23  ;;  %s9451_s23 = smov 64  }
 0x543   : > { %v2846_v26 = vpop.f32.mrf.mxu1 }
 0x544   : > { %2853 = vrot.lane.b32.xlu2 %v2846_v26, %s9410_s29 }
 0x545   : > { %v3066_v42 = vld [vmem:[#allocation2 + $0x20] sm:$0xff] }
 0x546   : > { %v3068_v24 = vpack.c.bf16 %v3066_v42, %v3064_v39 }
 0x549   : > { %v2881_v19 = vpop.f32.mrf.mxu3 }
 0x54a   : > { %2888 = vrot.lane.b32.xlu1 %v2881_v19, %s6895_s0  ;;  %v6866_v19 = vld [vmem:[%s9379_s19 + $0x2] ss:$0 sm:$0xff] }
 0x54b   : > { %v2848_v40 = vpop.f32.mrf.mxu1 }
 0x54c   : > { %2855 = vrot.lane.b32.xlu0 %v2848_v40, %s9410_s29  ;;  %v3158_v40 = vlaneseq  ;;  %s9458_s29 = sld [smem:[#allocation15_spill]] }
 0x551   : > { %v2883_v8 = vpop.f32.mrf.mxu3 }
 0x552   : > { %2890 = vrot.lane.b32.xlu2 %v2883_v8, %s6895_s0  ;;  %s9456_s0 = smov 32  }
 0x553   : > { %v2916_v30 = vpop.f32.mrf.mxu1 }
 0x554   : > { %2923 = vrot.lane.b32.xlu0 %v2916_v30, %s9451_s23 }
 0x559   : > { %v2951_v48 = vpop.f32.mrf.mxu3 }
 0x55a   : > { %2958 = vrot.lane.b32.xlu2 %v2951_v48, %s9452_s26 }
 0x55b   : > { %v2918_v61 = vpop.f32.mrf.mxu1 }
 0x55c   : > { %2925 = vrot.lane.b32.xlu1 %v2918_v61, %s9451_s23 }
 0x561   : > { %v2953_v41 = vpop.f32.mrf.mxu3 }
 0x562   : > { %2960 = vrot.lane.b32.xlu0 %v2953_v41, %s9452_s26  ;;  %v8545_v41 = vshrl.u32 %v3158_v40, 7 }
 0x563   : > { %v2986_v22 = vpop.f32.mrf.mxu1 }
 0x564   : > { %2993 = vrot.lane.b32.xlu1 %v2986_v22, %s9453_s27 }
 0x569   : > { %v3021_v38 = vpop.f32.mrf.mxu3 }
 0x56a   : > { %3028 = vrot.lane.b32.xlu0 %v3021_v38, %s9454_s24 }
 0x56b   : > { %v2988_v25 = vpop.f32.mrf.mxu1 }
 0x56c   : > { %2995 = vrot.lane.b32.xlu2 %v2988_v25, %s9453_s27 }
 0x571   : > { %v3023_v2 = vpop.f32.mrf.mxu3 }
 0x572   : > { %3030 = vrot.lane.b32.xlu1 %v3023_v2, %s9454_s24  ;;  %3249 = vperm.xlu0 %6829, %v8509_v45   ;;  %v8551_v2 = vadd.s32 8, %v8545_v41 }
 0x574   : > { %3244 = vperm.xlu2 %6828, %v8493_v20   ;;  %vm3162_vm12 = vcmp.lt.s32.totalorder %v8551_v2, 9  ;;  %v5978_v2 = vld [vmem:[%s9375_s15 + $0x4] sm:$0xf] }
 0x57a   : > { %3277 = vperm.xlu1 %6830, %v8493_v20   ;;  %6834 = vset.pattern.permute.xlu0 %v6914_v59 }
 0x57b   : > { %3357 = vperm.xlu0 %6834, %v8493_v20  }
 0x57c   : > { %6831 = vset.pattern.permute.xlu2 %v6912_v1 }
 0x57d   : > { %3282 = vperm.xlu2 %6831, %v8509_v45  }
 0x582   : > { %6832 = vset.pattern.permute.xlu1 %v6913_v6 }
 0x583   : > { %3309 = vperm.xlu1 %6832, %v8493_v20   ;;  %6839 = vset.pattern.permute.xlu0 %v6918_v12 }
 0x584   : > { %3426 = vperm.xlu0 %6839, %v8509_v45  }
 0x585   : > { %6833 = vset.pattern.permute.xlu2 %v6913_v6 }
 0x586   : > { %3314 = vperm.xlu2 %6833, %v8509_v45  }
 0x58b   : > { %6835 = vset.pattern.permute.xlu1 %v6914_v59 }
 0x58c   : > { %3362 = vperm.xlu1 %6835, %v8509_v45  }
 0x58e   : > { %6836 = vset.pattern.permute.xlu2 %v6916_v62 }
 0x58f   : > { %3389 = vperm.xlu2 %6836, %v8493_v20  }
 0x594   : > { %6837 = vset.pattern.permute.xlu1 %v6916_v62 }
 0x595   : > { %3394 = vperm.xlu1 %6837, %v8509_v45  }
 0x597   : > { %6838 = vset.pattern.permute.xlu2 %v6918_v12 }
 0x598   : > { %3421 = vperm.xlu2 %6838, %v8493_v20  }
 0x59d   : > { %6840 = vset.pattern.permute.xlu1 %v6917_v43 }
 0x59e   : > { %v2854_v49 = vpop.permute.xlu2 %2853  ;;  %3219 = vperm.xlu1 %6840, %v8493_v20  }
 0x5a0   : > { %6841 = vset.pattern.permute.xlu2 %v6917_v43 }
 0x5a1   : > { %3224 = vperm.xlu2 %6841, %v8509_v45  }
 0x5a6   : > { %6842 = vset.pattern.permute.xlu1 %v6919_v51 }
 0x5a7   : > { %3334 = vperm.xlu1 %6842, %v8493_v20  }
 0x5a9   : > { %6843 = vset.pattern.permute.xlu2 %v6919_v51 }
 0x5aa   : > { %3339 = vperm.xlu2 %6843, %v8509_v45  }
 0x5ac   : > { %v2819_v32 = vpop.permute.xlu0 %2818  ;;  %v2891_v60 = vpop.permute.xlu2 %2890 }
 0x5ad   : > { %2824 = vst.msk [vmem:[#allocation2] sm:$0xff] %vm869_vm3, %v2819_v32 }
 0x5ae   : > { %2859 = vst.msk [vmem:[#allocation2] sm:$0xff] %vm992_vm4, %v2854_v49 }
 0x5b4   : > { %v2821_v4 = vpop.permute.xlu1 %2820  ;;  %v2959_v11 = vpop.permute.xlu2 %2958 }
 0x5b5   : > { %2825 = vst.msk [vmem:[#allocation2 + $0x18] sm:$0xff] %vm869_vm3, %v2821_v4  ;;  %vm3377_vm3 = vcmask 1045504  }
 0x5bc   : > { %v2889_v36 = vpop.permute.xlu1 %2888 }
 0x5bd   : > { %2894 = vst.msk [vmem:[#allocation2] sm:$0xff] %vm1089_vm5, %v2889_v36 }
 0x5be   : > { %v2856_v29 = vpop.permute.xlu0 %2855 }
 0x5bf   : > { %2860 = vst.msk [vmem:[#allocation2 + $0x18] sm:$0xff] %vm992_vm4, %v2856_v29  ;;  %vm3409_vm4 = vcmask 1044480  }
 0x5c0   : > { %2895 = vst.msk [vmem:[#allocation2 + $0x18] sm:$0xff] %vm1089_vm5, %v2891_v60  ;;  %v6920_v60 = vmov 26   ;;  %vm3262_vm5 = vcmask 523520  }
 0x5c1   : > { %6844 = vset.pattern.permute.xlu0 %v6920_v60  ;;  %6845 = vset.pattern.permute.xlu1 %v6920_v60 }
 0x5c6   : > { %v2924_v54 = vpop.permute.xlu0 %2923  ;;  %v2996_v3 = vpop.permute.xlu2 %2995 }
 0x5c7   : > { %2929 = vst.msk [vmem:[#allocation2] sm:$0xff] %vm1186_vm6, %v2924_v54 }
 0x5c8   : > { %2964 = vst.msk [vmem:[#allocation2] sm:$0xff] %vm1283_vm7, %v2959_v11 }
 0x5ce   : > { %v2926_v27 = vpop.permute.xlu1 %2925  ;;  %v3245_v35 = vpop.permute.xlu2 %3244 }
 0x5cf   : > { %2930 = vst.msk [vmem:[#allocation2 + $0x18] sm:$0xff] %vm1186_vm6, %v2926_v27  ;;  %vm3295_vm6 = vcmask 785920  }
 0x5d4   : > { %v2961_v21 = vpop.permute.xlu0 %2960 }
 0x5d5   : > { %2965 = vst.msk [vmem:[#allocation2 + $0x18] sm:$0xff] %vm1283_vm7, %v2961_v21  ;;  %vm3327_vm7 = vcmask 1048320  }
 0x5d6   : > { %v2994_v63 = vpop.permute.xlu1 %2993  ;;  %3000 = vst.msk [vmem:[#allocation2 + $0x18] sm:$0xff] %vm1380_vm8, %v2996_v3 }
 0x5d7   : > { %2999 = vst.msk [vmem:[#allocation2] sm:$0xff] %vm1380_vm8, %v2994_v63  ;;  %v8528_v56 = vpop.permute.xlu2 %3282  ;;  %vm4462_vm8 = vcmp.lt.s32.totalorder %v8545_v41, 1 }
 0x5dc   : > { %v3029_v10 = vpop.permute.xlu0 %3028 }
 0x5dd   : > { %3034 = vst.msk [vmem:[#allocation2] sm:$0xff] %vm1477_vm9, %v3029_v10 }
 0x5e0   : > { %v8532_v55 = vpop.permute.xlu2 %3314 }
 0x5e4   : > { %v3031_v33 = vpop.permute.xlu1 %3030  ;;  %v3063_v9 = vld [vmem:[#allocation2] sm:$0xff]  ;;  %v3250_v47 = vpop.permute.xlu0 %3249 }
 0x5e5   : > { %3035 = vst.msk [vmem:[#allocation2 + $0x18] sm:$0xff] %vm1477_vm9, %v3031_v33  ;;  %vm4500_vm9 = vcmask 64512  }
 0x5e9   : > { %v8536_v52 = vpop.permute.xlu2 %3389 }
 0x5ec   : > { %v3065_v16 = vld [vmem:[#allocation2 + $0x18] sm:$0xff]  ;;  %v3278_v31 = vpop.permute.xlu1 %3277 }
 0x5ed   : > { %v3067_v50 = vpack.c.bf16 %v3065_v16, %v3063_v9  ;;  %v3358_v39 = vpop.permute.xlu0 %3357 }
 0x5ef   : > { %3136 = vmatmul.bf16.vlgmr.msrb.gmra.mxu2 %v3067_v50 }
 0x5f2   : > { %v8540_v17 = vpop.permute.xlu2 %3421 }
 0x5f5   : > { %v8530_v7 = vpop.permute.xlu1 %3309 }
 0x5fb   : > { %v3225_v61 = vpop.permute.xlu2 %3224 }
 0x5fe   : > { %v8534_v46 = vpop.permute.xlu1 %3362 }
 0x5ff   : > { %5827 = vmatmul.msk.bf16.vlgmr.msra.gmra.mxu2 %vm772_vm2, %v3068_v24 }
 0x604   : > { %v3340_v53 = vpop.permute.xlu2 %3339 }
 0x607   : > { %v8538_v23 = vpop.permute.xlu1 %3394 }
 0x610   : > { %v3220_v37 = vpop.permute.xlu1 %3219 }
 0x619   : > { %v3335_v22 = vpop.permute.xlu1 %3334 }
 0x672   : > { %v3137_v5 = vpop.f32.mrf.mxu2 }
 0x673   : > { %v3138_v8 = vadd.f32 %v6866_v19, %v3137_v5 }
 0x67a   : > { %v3139_v26 = vpop.f32.mrf.mxu2 }
 0x67b   : > { %v3140_v14 = vadd.f32 %v6866_v19, %v3139_v26  ;;  %v3427_v19 = vpop.permute.xlu0 %3426 }
 0x682   : > { %v3151_v30 = vpop.f32.mrf.mxu2 }
 0x683   : > { %v3152_v48 = vadd.f32 %v3151_v30, %v3138_v8 }
 0x685   : > { %v8547_v38 = vmax.f32 %v3152_v48, 0.0  ;;  %v6521_v48 = vld [vmem:[%s9457_s4 + $0x38] sm:$0xff] }
 0x686   : > { %3579 = vmatpush.bf16.msrb.mxu3 %v6521_v48 }
 0x687   : > { %v3342_v25 = vmul.f32 %v3335_v22, %v8547_v38  ;;  %v3210_v4 = vrot.slane %v8547_v38, 4  ;;  %v3268_v29 = vrot.slane %v8547_v38, 6  ;;  %v3235_v13 = vrot.slane %v8547_v38, 5  ;;  %v6529_v22 = vld [vmem:[%s9457_s4 + $0x78] sm:$0xff] }
 0x688   : > { %v3300_v10 = vrot.slane %v8547_v38, 7  ;;  %v3346_v12 = vrot.slane %v8547_v38, 1  ;;  %v3378_v24 = vrot.slane %v8547_v38, 2  ;;  %v3410_v26 = vrot.slane %v8547_v38, 3  ;;  %v6517_v38 = vld [vmem:[%s9457_s4 + $0x18] sm:$0xff]  ;;  %3593 = vmatpush.bf16.msra.mxu0 %v6529_v22  ;;  %v6548_v22 = vld [vmem:[%s9458_s29 + $0x80] sm:$0xff] }
 0x689   : > { %3344 = vst.msk [vmem:[#allocation2 + $0x8] sm:$0xff] %vm3229_vm11, %v3342_v25 }
 0x68a   : > { %v3153_v57 = vpop.f32.mrf.mxu2 }
 0x68b   : > { %v3154_v32 = vadd.f32 %v3153_v57, %v3140_v14  ;;  %v6516_v14 = vld [vmem:[%s9457_s4 + $0x10] sm:$0xff] }
 0x68c   : > { %v6528_v57 = vld [vmem:[%s9457_s4 + $0x70] sm:$0xff] }
 0x68d   : > { %v3157_v49 = vmax.f32 %v3154_v32, 0.0  ;;  %v6921_v32 = vmov 28   ;;  %3594 = vmatpush.bf16.msra.mxu0 %v6528_v57 }
 0x68e   : > { %6846 = vset.pattern.permute.xlu2 %v6921_v32 }
 0x68f   : > { %v8557_v28 = vsel %vm3162_vm12, %v3157_v49, 0.0  ;;  %v6527_v49 = vld [vmem:[%s9457_s4 + $0x68] sm:$0xff] }
 0x690   : > { %v3206_v18 = vrot.slane %v8557_v28, 4  ;;  %v3343_v15 = vmul.f32 %v3340_v53, %v8557_v28  ;;  %v3265_v36 = vrot.slane %v8557_v28, 6  ;;  %v3232_v0 = vrot.slane %v8557_v28, 5  ;;  %v6515_v53 = vld [vmem:[%s9457_s4 + $0x8] sm:$0xff] }
 0x691   : > { %v3298_v3 = vrot.slane %v8557_v28, 7  ;;  %v3347_v16 = vrot.slane %v8557_v28, 1  ;;  %v3379_v51 = vrot.slane %v8557_v28, 2  ;;  %v3411_v5 = vrot.slane %v8557_v28, 3  ;;  %3595 = vmatpush.bf16.msra.mxu0 %v6527_v49  ;;  %v6514_v28 = vld [vmem:[%s9457_s4] sm:$0xff] }
 0x692   : > { %v8566_v54 = vsel %vm3209_vm13, %v3206_v18, %v3210_v4  ;;  %v8569_v11 = vsel %vm3209_vm13, %v3210_v4, %v3206_v18  ;;  %v3272_v34 = vsel %vm3267_vm14, %v3265_v36, %v3268_v29  ;;  %3345 = vst.msk [vmem:[#allocation2 + $0x20] sm:$0xff] %vm3229_vm11, %v3343_v15  ;;  %v3239_v6 = vsel %vm3234_vm15, %v3232_v0, %v3235_v13  ;;  %v6526_v4 = vld [vmem:[%s9457_s4 + $0x60] sm:$0xff]  ;;  %v6525_v18 = vld [vmem:[%s9457_s4 + $0x58] sm:$0xff] }
 0x693   : > { %v3227_v1 = vmul.f32 %v3220_v37, %v8566_v54  ;;  %v3228_v27 = vmul.f32 %v3225_v61, %v8569_v11  ;;  %v3285_v44 = vmul.f32 %v3278_v31, %v3272_v34  ;;  %v3236_v21 = vsel %vm3234_vm15, %v3235_v13, %v3232_v0  ;;  %v6518_v61 = vld [vmem:[%s9457_s4 + $0x20] sm:$0xff] }
 0x694   : > { %v3252_v63 = vmul.f32 %v3245_v35, %v3239_v6  ;;  %v3253_v59 = vmul.f32 %v3250_v47, %v3236_v21  ;;  %v3301_v58 = vsel %vm684_vm1, %v3300_v10, %v3298_v3  ;;  %v3269_v62 = vsel %vm3267_vm14, %v3268_v29, %v3265_v36  ;;  %v6524_v36 = vld [vmem:[%s9457_s4 + $0x50] sm:$0xff]  ;;  %v6523_v29 = vld [vmem:[%s9457_s4 + $0x48] sm:$0xff]  ;;  %v6530_v47 = vld [vmem:[%s9457_s4 + $0x80] sm:$0xff] }
 0x695   : > { %3289 = vrot.lane.b32.xlu0 %v3285_v44, %s9451_s23  ;;  %3231 = vst.msk [vmem:[#allocation2 + $0x18] sm:$0xff] %vm3229_vm11, %v3228_v27  ;;  %v3304_v33 = vsel %vm684_vm1, %v3298_v3, %v3300_v10  ;;  %v3318_v9 = vmul.f32 %v8532_v55, %v3301_v58  ;;  %v3286_v43 = vmul.f32 %v8528_v56, %v3269_v62  ;;  %v6922_v15 = vmov 30   ;;  %v6531_v27 = vld [vmem:[%s9457_s4 + $0x88] sm:$0xff] }
 0x696   : > { %3256 = vrot.lane.b32.xlu1 %v3252_v63, %s9456_s0  ;;  %3258 = vrot.lane.b32.xlu2 %v3253_v59, %s9456_s0  ;;  %3230 = vst.msk [vmem:[#allocation2] sm:$0xff] %vm3229_vm11, %v3227_v1  ;;  %v3317_v50 = vmul.f32 %v8530_v7, %v3304_v33  ;;  %v3348_v42 = vsel %vm880_vm0, %v3346_v12, %v3347_v16  ;;  %v6923_v13 = vmov 32   ;;  %v6522_v1 = vld [vmem:[%s9457_s4 + $0x40] sm:$0xff]  ;;  %v6924_v44 = vmov 29  }
 0x697   : > { %v3352_v35 = vsel %vm880_vm0, %v3347_v16, %v3346_v12  ;;  %v3380_v31 = vsel %vm3377_vm3, %v3378_v24, %v3379_v51  ;;  %v3365_v56 = vmul.f32 %v3358_v39, %v3348_v42  ;;  %v3384_v37 = vsel %vm3377_vm3, %v3379_v51, %v3378_v24  ;;  %3596 = vmatpush.bf16.msra.mxu0 %v6526_v4 }
 0x698   : > { %v3366_v7 = vmul.f32 %v8534_v46, %v3352_v35  ;;  %v3397_v55 = vmul.f32 %v8536_v52, %v3380_v31  ;;  %v3416_v40 = vsel %vm3409_vm4, %v3411_v5, %v3410_v26  ;;  %v3412_v8 = vsel %vm3409_vm4, %v3410_v26, %v3411_v5  ;;  %3613 = vmatpush.bf16.msrb.mxu1 %v6531_v27 }
 0x699   : > { %v3398_v46 = vmul.f32 %v8538_v23, %v3384_v37  ;;  %v3430_v30 = vmul.f32 %v3427_v19, %v3416_v40  ;;  %v3429_v52 = vmul.f32 %v8540_v17, %v3412_v8  ;;  %v6520_v23 = vld [vmem:[%s9457_s4 + $0x30] sm:$0xff]  ;;  %v6519_v17 = vld [vmem:[%s9457_s4 + $0x28] sm:$0xff]  ;;  %v6925_v3 = vmov 33  }
 0x69a   : > { %3580 = vmatpush.bf16.msrb.mxu3 %v6520_v23  ;;  %v6928_v51 = vmov 31  }
 0x69b   : > { %3597 = vmatpush.bf16.msra.mxu0 %v6525_v18 }
 0x69c   : > { %3614 = vmatpush.bf16.msrb.mxu1 %v6530_v47 }
 0x69d   : > { %3323 = vrot.lane.b32.xlu0 %v3318_v9, %s9453_s27  ;;  %v6926_v9 = vmov 34  }
 0x69e   : > { %3291 = vrot.lane.b32.xlu1 %v3286_v43, %s9451_s23  ;;  %3321 = vrot.lane.b32.xlu2 %v3317_v50, %s9453_s27  ;;  %v6927_v50 = vmov 27  }
 0x69f   : > { %3581 = vmatpush.bf16.msrb.mxu3 %v6519_v17  ;;  %3598 = vmatpush.bf16.msra.mxu0 %v6524_v36 }
 0x6a3   : > { %3582 = vmatpush.bf16.msrb.mxu3 %v6518_v61  ;;  %3599 = vmatpush.bf16.msra.mxu0 %v6523_v29 }
 0x6a5   : > { %3369 = vrot.lane.b32.xlu0 %v3365_v56, %s9456_s0  ;;  %v6929_v56 = vmov 35  }
 0x6a6   : > { %3371 = vrot.lane.b32.xlu1 %v3366_v7, %s9456_s0  ;;  %3401 = vrot.lane.b32.xlu2 %v3397_v55, %s9451_s23 }
 0x6a7   : > { %3583 = vmatpush.bf16.msrb.mxu3 %v6517_v38  ;;  %3600 = vmatpush.bf16.msra.mxu0 %v6522_v1  ;;  %v6867_v38 = vld [vmem:[%s9379_s19 + $0x3] ss:$0 sm:$0xff] }
 0x6ab   : > { %3584 = vmatpush.bf16.msrb.mxu3 %v6516_v14 }
 0x6ad   : > { %3403 = vrot.lane.b32.xlu0 %v3398_v46, %s9451_s23 }
 0x6ae   : > { %3433 = vrot.lane.b32.xlu1 %v3429_v52, %s9453_s27  ;;  %3435 = vrot.lane.b32.xlu2 %v3430_v30, %s9453_s27 }
 0x6af   : > { %3585 = vmatpush.bf16.msrb.mxu3 %v6515_v53 }
 0x6b3   : > { %3586 = vmatpush.bf16.msrb.mxu3 %v6514_v28 }
 0x6b5   : > { %3445 = vperm.xlu0 %6844, %v8493_v20  }
 0x6b6   : > { %3450 = vperm.xlu1 %6845, %v8509_v45   ;;  %3697 = vperm.xlu2 %6846, %v8493_v20  }
 0x6bd   : > { %6849 = vset.pattern.permute.xlu0 %v6924_v44 }
 0x6be   : > { %6847 = vset.pattern.permute.xlu1 %v6921_v32  ;;  %6848 = vset.pattern.permute.xlu2 %v6924_v44 }
 0x6bf   : > { %3702 = vperm.xlu1 %6847, %v8509_v45   ;;  %3728 = vperm.xlu2 %6848, %v8493_v20  }
 0x6c0   : > { %3733 = vperm.xlu0 %6849, %v8509_v45  }
 0x6c7   : > { %6850 = vset.pattern.permute.xlu1 %v6922_v15  ;;  %6851 = vset.pattern.permute.xlu2 %v6922_v15 }
 0x6c8   : > { %3759 = vperm.xlu1 %6850, %v8493_v20   ;;  %6854 = vset.pattern.permute.xlu0 %v6925_v3 }
 0x6c9   : > { %3764 = vperm.xlu2 %6851, %v8509_v45   ;;  %3837 = vperm.xlu0 %6854, %v8493_v20  }
 0x6d0   : > { %6852 = vset.pattern.permute.xlu1 %v6923_v13 }
 0x6d1   : > { %3806 = vperm.xlu1 %6852, %v8493_v20   ;;  %6853 = vset.pattern.permute.xlu2 %v6923_v13 }
 0x6d2   : > { %6859 = vset.pattern.permute.xlu0 %v6927_v50  ;;  %3811 = vperm.xlu2 %6853, %v8509_v45  }
 0x6d3   : > { %3679 = vperm.xlu0 %6859, %v8509_v45  }
 0x6d9   : > { %6855 = vset.pattern.permute.xlu1 %v6925_v3 }
 0x6da   : > { %3842 = vperm.xlu1 %6855, %v8509_v45   ;;  %6856 = vset.pattern.permute.xlu2 %v6926_v9 }
 0x6db   : > { %6861 = vset.pattern.permute.xlu0 %v6929_v56  ;;  %3868 = vperm.xlu2 %6856, %v8493_v20  }
 0x6dc   : > { %3897 = vperm.xlu0 %6861, %v8509_v45  }
 0x6e2   : > { %6857 = vset.pattern.permute.xlu1 %v6926_v9 }
 0x6e3   : > { %3873 = vperm.xlu1 %6857, %v8509_v45   ;;  %6858 = vset.pattern.permute.xlu2 %v6927_v50 }
 0x6e4   : > { %3674 = vperm.xlu2 %6858, %v8493_v20  }
 0x6eb   : > { %6862 = vset.pattern.permute.xlu1 %v6928_v51 }
 0x6ec   : > { %3783 = vperm.xlu1 %6862, %v8493_v20   ;;  %6860 = vset.pattern.permute.xlu2 %v6929_v56 }
 0x6ed   : > { %3892 = vperm.xlu2 %6860, %v8493_v20   ;;  %v6549_v20 = vld [vmem:[%s9458_s29 + $0x88] sm:$0xff] }
 0x6ee   : > { %4060 = vmatpush.bf16.msra.mxu3 %v6549_v20 }
 0x6f0   : > { %v3259_v25 = vpop.permute.xlu2 %3258 }
 0x6f1   : > { %3264 = vst.msk [vmem:[#allocation2 + $0x18] sm:$0xff] %vm3262_vm5, %v3259_v25 }
 0x6f2   : > { %4061 = vmatpush.bf16.msra.mxu3 %v6548_v22 }
 0x6f5   : > { %6863 = vset.pattern.permute.xlu2 %v6928_v51 }
 0x6f6   : > { %3788 = vperm.xlu2 %6863, %v8509_v45  }
 0x6f8   : > { %v3322_v34 = vpop.permute.xlu2 %3321 }
 0x700   : > { %v3402_v63 = vpop.permute.xlu2 %3401 }
 0x707   : > { %v3290_v60 = vpop.permute.xlu0 %3289 }
 0x708   : > { %v3257_v0 = vpop.permute.xlu1 %3256  ;;  %v3436_v43 = vpop.permute.xlu2 %3435 }
 0x709   : > { %3263 = vst.msk [vmem:[#allocation2] sm:$0xff] %vm3262_vm5, %v3257_v0 }
 0x70a   : > { %3296 = vst.msk [vmem:[#allocation2] sm:$0xff] %vm3295_vm6, %v3290_v60 }
 0x70b   : > { %3328 = vst.msk [vmem:[#allocation2] sm:$0xff] %vm3327_vm7, %v3322_v34 }
 0x70f   : > { %v3324_v6 = vpop.permute.xlu0 %3323 }
 0x710   : > { %v3292_v21 = vpop.permute.xlu1 %3291 }
 0x711   : > { %3297 = vst.msk [vmem:[#allocation2 + $0x18] sm:$0xff] %vm3295_vm6, %v3292_v21 }
 0x712   : > { %3329 = vst.msk [vmem:[#allocation2 + $0x18] sm:$0xff] %vm3327_vm7, %v3324_v6  ;;  %v3457_v58 = vld [vmem:[#allocation2] sm:$0xff] }
 0x717   : > { %v3370_v59 = vpop.permute.xlu0 %3369 }
 0x718   : > { %3375 = vst.msk [vmem:[#allocation2 + $0x8] sm:$0xff] %vm3262_vm5, %v3370_v59  ;;  %v3372_v10 = vpop.permute.xlu1 %3371 }
 0x719   : > { %3407 = vst.msk [vmem:[#allocation2 + $0x8] sm:$0xff] %vm3295_vm6, %v3402_v63  ;;  %v3460_v62 = vld [vmem:[#allocation2 + $0x18] sm:$0xff] }
 0x71a   : > { %3376 = vst.msk [vmem:[#allocation2 + $0x20] sm:$0xff] %vm3262_vm5, %v3372_v10  ;;  %v3463_v33 = vpack.c.bf16 %v3460_v62, %v3457_v58 }
 0x71c   : > { %3587 = vmatmul.bf16.vlgmr.msrb.gmra.mxu3 %v3463_v33 }
 0x71f   : > { %v3404_v16 = vpop.permute.xlu0 %3403 }
 0x720   : > { %3408 = vst.msk [vmem:[#allocation2 + $0x20] sm:$0xff] %vm3295_vm6, %v3404_v16  ;;  %v3434_v12 = vpop.permute.xlu1 %3433 }
 0x721   : > { %3440 = vst.msk [vmem:[#allocation2 + $0x20] sm:$0xff] %vm3327_vm7, %v3436_v43 }
 0x722   : > { %3439 = vst.msk [vmem:[#allocation2 + $0x8] sm:$0xff] %vm3327_vm7, %v3434_v12 }
 0x727   : > { %v3446_v39 = vpop.permute.xlu0 %3445 }
 0x728   : > { %v3453_v42 = vmul.f32 %v3446_v39, %v8569_v11  ;;  %v3461_v24 = vld [vmem:[#allocation2 + $0x20] sm:$0xff]  ;;  %v3451_v35 = vpop.permute.xlu1 %3450 }
 0x729   : > { %v3458_v31 = vld [vmem:[#allocation2 + $0x8] sm:$0xff]  ;;  %v3454_v7 = vmul.f32 %v3451_v35, %v8566_v54  ;;  %v3698_v54 = vpop.permute.xlu2 %3697 }
 0x72a   : > { %3455 = vst.msk [vmem:[#allocation2 + $0x10] sm:$0xff] %vm3229_vm11, %v3453_v42  ;;  %v3464_v55 = vpack.c.bf16 %v3461_v24, %v3458_v31 }
 0x72b   : > { %3456 = vst.msk [vmem:[#allocation2 + $0x28] sm:$0xff] %vm3229_vm11, %v3454_v7 }
 0x72c   : > { %3601 = vmatmul.bf16.vlgmr.msra.gmra.mxu0 %v3464_v55 }
 0x731   : > { %v3459_v5 = vld [vmem:[#allocation2 + $0x10] sm:$0xff]  ;;  %v8707_v37 = vpop.permute.xlu2 %3728  ;;  %v3703_v19 = vpop.permute.xlu1 %3702 }
 0x732   : > { %v3462_v11 = vld [vmem:[#allocation2 + $0x28] sm:$0xff]  ;;  %v8719_v23 = vpop.permute.xlu0 %3733 }
 0x733   : > { %v3465_v26 = vpack.c.bf16 %v3462_v11, %v3459_v5 }
 0x735   : > { %5900 = vmatmul.msk.bf16.vlgmr.msrb.gmra.mxu1 %vm3229_vm11, %v3465_v26 }
 0x739   : > { %v8709_v40 = vpop.permute.xlu2 %3764 }
 0x73a   : > { %v3760_v8 = vpop.permute.xlu1 %3759 }
 0x73b   : > { %v3838_v14 = vpop.permute.xlu0 %3837 }
 0x741   : > { %v8711_v46 = vpop.permute.xlu2 %3811 }
 0x743   : > { %v8713_v30 = vpop.permute.xlu1 %3806 }
 0x745   : > { %v3680_v29 = vpop.permute.xlu0 %3679 }
 0x749   : > { %v8715_v52 = vpop.permute.xlu2 %3868 }
 0x74c   : > { %v8717_v48 = vpop.permute.xlu1 %3842 }
 0x74e   : > { %v3898_v59 = vpop.permute.xlu0 %3897 }
 0x751   : > { %v3675_v45 = vpop.permute.xlu2 %3674 }
 0x755   : > { %v8724_v61 = vpop.permute.xlu1 %3873 }
 0x759   : > { %v3893_v28 = vpop.permute.xlu2 %3892 }
 0x75e   : > { %v3784_v18 = vpop.permute.xlu1 %3783 }
 0x761   : > { %v3789_v44 = vpop.permute.xlu2 %3788 }
 0x79f   : > { %v3588_v17 = vpop.f32.mrf.mxu3 }
 0x7a0   : > { %v3589_v57 = vadd.f32 %v6867_v38, %v3588_v17 }
 0x7a7   : > { %v3590_v4 = vpop.f32.mrf.mxu3 }
 0x7a8   : > { %v3591_v60 = vadd.f32 %v6867_v38, %v3590_v4 }
 0x7a9   : > { %v3602_v25 = vpop.f32.mrf.mxu0 }
 0x7aa   : > { %v3603_v32 = vadd.f32 %v3602_v25, %v3589_v57 }
 0x7b1   : > { %v3604_v36 = vpop.f32.mrf.mxu0 }
 0x7b2   : > { %v3616_v49 = vpop.f32.mrf.mxu1  ;;  %v3605_v34 = vadd.f32 %v3604_v36, %v3591_v60  ;;  %v6535_v60 = vld [vmem:[%s9458_s29 + $0x18] sm:$0xff] }
 0x7b3   : > { %v3617_v53 = vadd.f32 %v3616_v49, %v3603_v32 }
 0x7b5   : > { %v8732_v15 = vmax.f32 %v3617_v53, 0.0 }
 0x7b7   : > { %v3791_v0 = vmul.f32 %v3784_v18, %v8732_v15  ;;  %v3665_v6 = vrot.slane %v8732_v15, 4  ;;  %v3750_v21 = vrot.slane %v8732_v15, 7  ;;  %v3688_v3 = vrot.slane %v8732_v15, 5 }
 0x7b8   : > { %v3826_v55 = vrot.slane %v8732_v15, 2  ;;  %v3719_v5 = vrot.slane %v8732_v15, 6  ;;  %v3857_v57 = vrot.slane %v8732_v15, 3 }
 0x7b9   : > { %3793 = vst.msk [vmem:[#allocation2 + $0x8] sm:$0xff] %vm3229_vm11, %v3791_v0  ;;  %v6547_v0 = vld [vmem:[%s9458_s29 + $0x78] sm:$0xff] }
 0x7ba   : > { %v3618_v13 = vpop.f32.mrf.mxu1  ;;  %4040 = vmatpush.bf16.msra.mxu1 %v6547_v0 }
 0x7bb   : > { %v3619_v1 = vadd.f32 %v3618_v13, %v3605_v34  ;;  %v6534_v34 = vld [vmem:[%s9458_s29 + $0x10] sm:$0xff] }
 0x7bd   : > { %v3622_v27 = vmax.f32 %v3619_v1, 0.0  ;;  %v6546_v1 = vld [vmem:[%s9458_s29 + $0x70] sm:$0xff] }
 0x7be   : > { %4041 = vmatpush.bf16.msra.mxu1 %v6546_v1  ;;  %v6563_v1 = vld [vmem:[%s9366_s6 + $0x68] sm:$0xff] }
 0x7bf   : > { %v8738_v47 = vsel %vm3162_vm12, %v3622_v27, 0.0  ;;  %v6533_v27 = vld [vmem:[%s9458_s29 + $0x8] sm:$0xff] }
 0x7c0   : > { %v3792_v63 = vmul.f32 %v3789_v44, %v8738_v47  ;;  %v3662_v10 = vrot.slane %v8738_v47, 4  ;;  %v3748_v58 = vrot.slane %v8738_v47, 7  ;;  %v3686_v62 = vrot.slane %v8738_v47, 5  ;;  %v6545_v44 = vld [vmem:[%s9458_s29 + $0x68] sm:$0xff] }
 0x7c1   : > { %v3827_v56 = vrot.slane %v8738_v47, 2  ;;  %v3717_v7 = vrot.slane %v8738_v47, 6  ;;  %v3858_v22 = vrot.slane %v8738_v47, 3  ;;  %v3796_v25 = vrot.slane %v8738_v47, 1  ;;  %v6532_v47 = vld [vmem:[%s9458_s29] sm:$0xff] }
 0x7c2   : > { %3794 = vst.msk [vmem:[#allocation2 + $0x20] sm:$0xff] %vm3229_vm11, %v3792_v63  ;;  %v3666_v33 = vsel %vm3209_vm13, %v3665_v6, %v3662_v10  ;;  %v3669_v9 = vsel %vm3209_vm13, %v3662_v10, %v3665_v6  ;;  %v3754_v16 = vsel %vm684_vm1, %v3748_v58, %v3750_v21  ;;  %v3692_v43 = vsel %vm3234_vm15, %v3686_v62, %v3688_v3  ;;  %v6541_v10 = vld [vmem:[%s9458_s29 + $0x48] sm:$0xff] }
 0x7c3   : > { %v3682_v50 = vmul.f32 %v3675_v45, %v3669_v9  ;;  %v3900_v12 = vmul.f32 %v3893_v28, %v3666_v33  ;;  %v3901_v51 = vmul.f32 %v3898_v59, %v3669_v9  ;;  %v3683_v39 = vmul.f32 %v3680_v29, %v3666_v33  ;;  %4042 = vmatpush.bf16.msra.mxu1 %v6545_v44  ;;  %v6542_v59 = vld [vmem:[%s9458_s29 + $0x50] sm:$0xff]  ;;  %v6540_v33 = vld [vmem:[%s9458_s29 + $0x40] sm:$0xff] }
 0x7c4   : > { %v3767_v42 = vmul.f32 %v3760_v8, %v3754_v16  ;;  %v3705_v24 = vmul.f32 %v3698_v54, %v3692_v43  ;;  %v3689_v35 = vsel %vm3234_vm15, %v3688_v3, %v3686_v62  ;;  %v3828_v11 = vsel %vm3377_vm3, %v3826_v55, %v3827_v56  ;;  %v6543_v3 = vld [vmem:[%s9458_s29 + $0x58] sm:$0xff] }
 0x7c5   : > { %3902 = vst.msk [vmem:[#allocation2 + $0x10] sm:$0xff] %vm3229_vm11, %v3900_v12  ;;  %v3706_v31 = vmul.f32 %v3703_v19, %v3689_v35  ;;  %v3723_v26 = vsel %vm3267_vm14, %v3717_v7, %v3719_v5  ;;  %v3720_v54 = vsel %vm3267_vm14, %v3719_v5, %v3717_v7  ;;  %v3845_v19 = vmul.f32 %v3838_v14, %v3828_v11 }
 0x7c6   : > { %3903 = vst.msk [vmem:[#allocation2 + $0x28] sm:$0xff] %vm3229_vm11, %v3901_v51  ;;  %3771 = vrot.lane.b32.xlu0 %v3767_v42, %s9453_s27  ;;  %3709 = vrot.lane.b32.xlu1 %v3705_v24, %s9456_s0  ;;  %v3736_v8 = vmul.f32 %v8707_v37, %v3723_v26  ;;  %v3737_v45 = vmul.f32 %v8719_v23, %v3720_v54  ;;  %v3795_v37 = vrot.slane %v8732_v15, 1 }
 0x7c7   : > { %3684 = vst.msk [vmem:[#allocation2] sm:$0xff] %vm3229_vm11, %v3682_v50  ;;  %3711 = vrot.lane.b32.xlu2 %v3706_v31, %s9456_s0  ;;  %v3863_v23 = vsel %vm3409_vm4, %v3858_v22, %v3857_v57  ;;  %v3751_v14 = vsel %vm684_vm1, %v3750_v21, %v3748_v58  ;;  %v3859_v18 = vsel %vm3409_vm4, %v3857_v57, %v3858_v22  ;;  %v6544_v21 = vld [vmem:[%s9458_s29 + $0x60] sm:$0xff] }
 0x7c8   : > { %3685 = vst.msk [vmem:[#allocation2 + $0x18] sm:$0xff] %vm3229_vm11, %v3683_v39  ;;  %v3801_v32 = vsel %vm880_vm0, %v3796_v25, %v3795_v37  ;;  %v3877_v49 = vmul.f32 %v8724_v61, %v3863_v23  ;;  %v3768_v53 = vmul.f32 %v8709_v40, %v3751_v14  ;;  %v3797_v4 = vsel %vm880_vm0, %v3795_v37, %v3796_v25  ;;  %v6539_v61 = vld [vmem:[%s9458_s29 + $0x38] sm:$0xff]  ;;  %v4109_v14 = vld [vmem:[%s9375_s15] sm:$0xf] }
 0x7c9   : > { %v3815_v28 = vmul.f32 %v8711_v46, %v3801_v32  ;;  %v3814_v15 = vmul.f32 %v8713_v30, %v3797_v4  ;;  %v3876_v36 = vmul.f32 %v8715_v52, %v3859_v18  ;;  %v3832_v40 = vsel %vm3377_vm3, %v3827_v56, %v3826_v55  ;;  %4026 = vmatpush.bf16.msrb.mxu2 %v6539_v61  ;;  %v6538_v30 = vld [vmem:[%s9458_s29 + $0x30] sm:$0xff]  ;;  %v6537_v52 = vld [vmem:[%s9458_s29 + $0x28] sm:$0xff]  ;;  %v6868_v55 = vld [vmem:[%s9379_s19 + $0x4] ss:$0 sm:$0xff] }
 0x7ca   : > { %v3846_v46 = vmul.f32 %v8717_v48, %v3832_v40  ;;  %v6536_v48 = vld [vmem:[%s9458_s29 + $0x20] sm:$0xff]  ;;  %4043 = vmatpush.bf16.msra.mxu1 %v6544_v21  ;;  %vm6930_vm0 = vmmov 1   ;;  %v5988_v32 = vld [vmem:[%s9375_s15 + $0xc] sm:$0xf]  ;;  %v6008_v4 = vld [vmem:[%s9375_s15 + $0x1c] sm:$0xf] }
 0x7cb   : > { %vm8860_vm1 = vmpackc.low %vm3162_vm12, %vm6930_vm0  ;;  %v6003_v18 = vld [vmem:[%s9375_s15 + $0x18] sm:$0xf]  ;;  %vm4716_vm12 = vcmp.lt.s32.totalorder %v8545_v41, 4 }
 0x7cc   : > { %v3906_v20 = vld [vmem:[#allocation2 + $0x10] sm:$0xff]  ;;  %v6553_v21 = vld [vmem:[%s9366_s6 + $0x18] sm:$0xff] }
 0x7cd   : > { %v3909_v17 = vld [vmem:[#allocation2 + $0x28] sm:$0xff]  ;;  %4027 = vmatpush.bf16.msrb.mxu2 %v6538_v30  ;;  %v6557_v30 = vld [vmem:[%s9366_s6 + $0x38] sm:$0xff] }
 0x7ce   : > { %3849 = vrot.lane.b32.xlu0 %v3845_v19, %s9451_s23  ;;  %3740 = vrot.lane.b32.xlu1 %v3736_v8, %s9451_s23  ;;  %v3912_v38 = vpack.c.bf16 %v3909_v17, %v3906_v20  ;;  %v6619_v37 = vld [vmem:[%s9369_s9 + $0x78] sm:$0xff] }
 0x7cf   : > { %3742 = vrot.lane.b32.xlu2 %v3737_v45, %s9451_s23  ;;  %4044 = vmatpush.bf16.msra.mxu1 %v6543_v3  ;;  %v6643_v41 = vld [vmem:[%s9372_s12 + $0x38] sm:$0xff] }
 0x7d0   : > { %5973 = vmatmul.msk.bf16.vlgmr.msra.gmra.mxu3 %vm3229_vm11, %v3912_v38 }
 0x7d1   : > { %4028 = vmatpush.bf16.msrb.mxu2 %v6537_v52 }
 0x7d3   : > { %4045 = vmatpush.bf16.msra.mxu1 %v6542_v59 }
 0x7d5   : > { %4029 = vmatpush.bf16.msrb.mxu2 %v6536_v48  ;;  %v6565_v48 = vld [vmem:[%s9366_s6 + $0x78] sm:$0xff] }
 0x7d6   : > { %3882 = vrot.lane.b32.xlu0 %v3877_v49, %s9453_s27  ;;  %3773 = vrot.lane.b32.xlu1 %v3768_v53, %s9453_s27  ;;  %v5993_v49 = vld [vmem:[%s9375_s15 + $0x10] sm:$0xf]  ;;  %v5998_v53 = vld [vmem:[%s9375_s15 + $0x14] sm:$0xf] }
 0x7d7   : > { %3820 = vrot.lane.b32.xlu2 %v3815_v28, %s9456_s0  ;;  %4046 = vmatpush.bf16.msra.mxu1 %v6541_v10  ;;  %v5983_v28 = vld [vmem:[%s9375_s15 + $0x8] sm:$0xf] }
 0x7d9   : > { %4030 = vmatpush.bf16.msrb.mxu2 %v6535_v60  ;;  %v6564_v60 = vld [vmem:[%s9366_s6 + $0x70] sm:$0xff] }
 0x7db   : > { %4047 = vmatpush.bf16.msra.mxu1 %v6540_v33  ;;  %v6552_v33 = vld [vmem:[%s9366_s6 + $0x10] sm:$0xff] }
 0x7dd   : > { %4031 = vmatpush.bf16.msrb.mxu2 %v6534_v34  ;;  %v6555_v34 = vld [vmem:[%s9366_s6 + $0x28] sm:$0xff] }
 0x7de   : > { %3818 = vrot.lane.b32.xlu1 %v3814_v15, %s9456_s0  ;;  %v6013_v15 = vld [vmem:[%s9375_s15 + $0x20] sm:$0xf] }
 0x7df   : > { %3880 = vrot.lane.b32.xlu2 %v3876_v36, %s9453_s27 }
 0x7e1   : > { %4032 = vmatpush.bf16.msrb.mxu2 %v6533_v27 }
 0x7e5   : > { %4033 = vmatpush.bf16.msrb.mxu2 %v6532_v47  ;;  %v6554_v47 = vld [vmem:[%s9366_s6 + $0x20] sm:$0xff] }
 0x7e6   : > { %3851 = vrot.lane.b32.xlu1 %v3846_v46, %s9451_s23 }
 0x821   : > { %v3712_v29 = vpop.permute.xlu2 %3711 }
 0x822   : > { %3716 = vst.msk [vmem:[#allocation2 + $0x18] sm:$0xff] %vm3262_vm5, %v3712_v29  ;;  %v6556_v29 = vld [vmem:[%s9366_s6 + $0x30] sm:$0xff] }
 0x829   : > { %v3743_v13 = vpop.permute.xlu2 %3742 }
 0x82a   : > { %3747 = vst.msk [vmem:[#allocation2 + $0x18] sm:$0xff] %vm3295_vm6, %v3743_v13 }
 0x831   : > { %v3821_v6 = vpop.permute.xlu2 %3820 }
 0x832   : > { %3825 = vst.msk [vmem:[#allocation2 + $0x20] sm:$0xff] %vm3262_vm5, %v3821_v6 }
 0x838   : > { %v3710_v63 = vpop.permute.xlu1 %3709  ;;  %v3772_v62 = vpop.permute.xlu0 %3771 }
 0x839   : > { %3715 = vst.msk [vmem:[#allocation2] sm:$0xff] %vm3262_vm5, %v3710_v63  ;;  %v3881_v39 = vpop.permute.xlu2 %3880 }
 0x840   : > { %v3741_v58 = vpop.permute.xlu1 %3740  ;;  %v3850_v16 = vpop.permute.xlu0 %3849 }
 0x841   : > { %3746 = vst.msk [vmem:[#allocation2] sm:$0xff] %vm3295_vm6, %v3741_v58 }
 0x842   : > { %3777 = vst.msk [vmem:[#allocation2] sm:$0xff] %vm3327_vm7, %v3772_v62 }
 0x848   : > { %v3774_v9 = vpop.permute.xlu1 %3773  ;;  %v3883_v24 = vpop.permute.xlu0 %3882 }
 0x849   : > { %3778 = vst.msk [vmem:[#allocation2 + $0x18] sm:$0xff] %vm3327_vm7, %v3774_v9  ;;  %v3904_v50 = vld [vmem:[#allocation2] sm:$0xff] }
 0x84a   : > { %v6562_v9 = vld [vmem:[%s9366_s6 + $0x60] sm:$0xff] }
 0x850   : > { %v3819_v43 = vpop.permute.xlu1 %3818  ;;  %v3907_v12 = vld [vmem:[#allocation2 + $0x18] sm:$0xff] }
 0x851   : > { %3824 = vst.msk [vmem:[#allocation2 + $0x8] sm:$0xff] %vm3262_vm5, %v3819_v43  ;;  %v3910_v51 = vpack.c.bf16 %v3907_v12, %v3904_v50  ;;  %v6561_v43 = vld [vmem:[%s9366_s6 + $0x58] sm:$0xff]  ;;  %v6567_v12 = vld [vmem:[%s9366_s6 + $0x88] sm:$0xff] }
 0x852   : > { %3855 = vst.msk [vmem:[#allocation2 + $0x8] sm:$0xff] %vm3295_vm6, %v3850_v16  ;;  %v6551_v16 = vld [vmem:[%s9366_s6 + $0x8] sm:$0xff] }
 0x853   : > { %3886 = vst.msk [vmem:[#allocation2 + $0x8] sm:$0xff] %vm3327_vm7, %v3881_v39  ;;  %4034 = vmatmul.bf16.vlgmr.msrb.gmra.mxu2 %v3910_v51  ;;  %v4063_v5 = vpop.f32.mrf.mxu3  ;;  %v6550_v51 = vld [vmem:[%s9366_s6] sm:$0xff] }
 0x854   : > { %v6566_v39 = vld [vmem:[%s9366_s6 + $0x80] sm:$0xff] }
 0x858   : > { %v3852_v42 = vpop.permute.xlu1 %3851 }
 0x859   : > { %3856 = vst.msk [vmem:[#allocation2 + $0x20] sm:$0xff] %vm3295_vm6, %v3852_v42  ;;  %v6560_v42 = vld [vmem:[%s9366_s6 + $0x50] sm:$0xff] }
 0x85a   : > { %3887 = vst.msk [vmem:[#allocation2 + $0x20] sm:$0xff] %vm3327_vm7, %v3883_v24  ;;  %v3905_v35 = vld [vmem:[#allocation2 + $0x8] sm:$0xff] }
 0x85b   : > { %v4065_v22 = vpop.f32.mrf.mxu3 }
 0x861   : > { %v3908_v31 = vld [vmem:[#allocation2 + $0x20] sm:$0xff] }
 0x862   : > { %v3911_v56 = vpack.c.bf16 %v3908_v31, %v3905_v35 }
 0x864   : > { %4048 = vmatmul.bf16.vlgmr.msra.gmra.mxu1 %v3911_v56  ;;  %v6559_v56 = vld [vmem:[%s9366_s6 + $0x48] sm:$0xff] }
 0x8d6   : > { %v4035_v7 = vpop.f32.mrf.mxu2 }
 0x8d7   : > { %v4036_v26 = vadd.f32 %v6868_v55, %v4035_v7  ;;  %v6558_v7 = vld [vmem:[%s9366_s6 + $0x40] sm:$0xff] }
 0x8de   : > { %v4037_v54 = vpop.f32.mrf.mxu2 }
 0x8df   : > { %v4038_v8 = vadd.f32 %v6868_v55, %v4037_v54 }
 0x8e1   : > { %v4049_v11 = vpop.f32.mrf.mxu1 }
 0x8e2   : > { %v4050_v19 = vadd.f32 %v4049_v11, %v4036_v26 }
 0x8e4   : > { %v4064_v45 = vadd.f32 %v4063_v5, %v4050_v19 }
 0x8e6   : > { %v4068_v25 = vmax.f32 %v4064_v45, 0.0 }
 0x8e9   : > { %v4051_v20 = vpop.f32.mrf.mxu1 }
 0x8ea   : > { %v4052_v17 = vadd.f32 %v4051_v20, %v4038_v8 }
 0x8ec   : > { %v4066_v38 = vadd.f32 %v4065_v22, %v4052_v17 }
 0x8ee   : > { %v4069_v57 = vmax.f32 %v4066_v38, 0.0 }
 0x8f0   : > { %v5975_v23 = vpack.c.bf16 %v4069_v57, %v4068_v25  ;;  %v6869_v57 = vld [vmem:[%s9379_s19 + $0x5] ss:$0 sm:$0xff] }
 0x8f2   : > { %5976 = vmatpush.bf16.msk.msrb.mxu0 %vm8860_vm1, %v5975_v23  ;;  %5981 = vmatpush.bf16.msk.msrb.mxu3 %vm8860_vm1, %v5975_v23 }
 0x8f3   : > { %5991 = vmatpush.bf16.msk.msra.mxu2 %vm8860_vm1, %v5975_v23  ;;  %5996 = vmatpush.bf16.msk.msrb.mxu1 %vm8860_vm1, %v5975_v23 }
 0x8f5   : > { %5982 = vmatmul.msk.bf16.vlgmr.msrb.gmra.mxu3 %vm772_vm2, %v5978_v2  ;;  %5977 = vmatmul.msk.bf16.vlgmr.msrb.gmra.mxu0 %vm772_vm2, %v4109_v14 }
 0x8f6   : > { %5986 = vmatpush.bf16.msk.msra.mxu0 %vm8860_vm1, %v5975_v23  ;;  %6001 = vmatpush.bf16.msk.msra.mxu3 %vm8860_vm1, %v5975_v23 }
 0x8f7   : > { %6011 = vmatpush.bf16.msk.msrb.mxu2 %vm8860_vm1, %v5975_v23  ;;  %6016 = vmatpush.bf16.msk.msra.mxu1 %vm8860_vm1, %v5975_v23 }
 0x8f8   : > { %5992 = vmatmul.msk.bf16.vlgmr.msra.gmra.mxu2 %vm772_vm2, %v5988_v32  ;;  %5997 = vmatmul.msk.bf16.vlgmr.msrb.gmra.mxu1 %vm772_vm2, %v5993_v49 }
 0x8fa   : > { %6006 = vmatpush.bf16.msk.msrb.mxu0 %vm8860_vm1, %v5975_v23  ;;  %4422 = vmatpush.bf16.msrb.mxu3 %v6557_v30  ;;  %v6583_v30 = vld [vmem:[%s9367_s7 + $0x78] sm:$0xff] }
 0x8fb   : > { %4454 = vmatpush.bf16.msra.mxu2 %v6567_v12 }
 0x8fe   : > { %4423 = vmatpush.bf16.msrb.mxu3 %v6556_v29  ;;  %v6574_v29 = vld [vmem:[%s9367_s7 + $0x30] sm:$0xff] }
 0x8ff   : > { %4455 = vmatpush.bf16.msra.mxu2 %v6566_v39 }
 0x902   : > { %4424 = vmatpush.bf16.msrb.mxu3 %v6555_v34  ;;  %v6580_v34 = vld [vmem:[%s9367_s7 + $0x60] sm:$0xff] }
 0x905   : > { %6002 = vmatmul.msk.bf16.vlgmr.msra.gmra.mxu3 %vm772_vm2, %v5998_v53  ;;  %5987 = vmatmul.msk.bf16.vlgmr.msra.gmra.mxu0 %vm772_vm2, %v5983_v28 }
 0x906   : > { %4435 = vmatpush.bf16.msra.mxu0 %v6565_v48  ;;  %4425 = vmatpush.bf16.msrb.mxu3 %v6554_v47  ;;  %v6582_v48 = vld [vmem:[%s9367_s7 + $0x70] sm:$0xff] }
 0x908   : > { %6012 = vmatmul.msk.bf16.vlgmr.msrb.gmra.mxu2 %vm772_vm2, %v6008_v4  ;;  %6017 = vmatmul.msk.bf16.vlgmr.msra.gmra.mxu1 %vm772_vm2, %v6013_v15 }
 0x90a   : > { %4436 = vmatpush.bf16.msra.mxu0 %v6564_v60  ;;  %4426 = vmatpush.bf16.msrb.mxu3 %v6553_v21  ;;  %v6581_v60 = vld [vmem:[%s9367_s7 + $0x68] sm:$0xff] }
 0x90e   : > { %4437 = vmatpush.bf16.msra.mxu0 %v6563_v1  ;;  %4427 = vmatpush.bf16.msrb.mxu3 %v6552_v33  ;;  %v6579_v1 = vld [vmem:[%s9367_s7 + $0x58] sm:$0xff]  ;;  %v6569_v33 = vld [vmem:[%s9367_s7 + $0x8] sm:$0xff] }
 0x912   : > { %4438 = vmatpush.bf16.msra.mxu0 %v6562_v9  ;;  %4428 = vmatpush.bf16.msrb.mxu3 %v6551_v16  ;;  %v6577_v9 = vld [vmem:[%s9367_s7 + $0x48] sm:$0xff]  ;;  %v6576_v16 = vld [vmem:[%s9367_s7 + $0x40] sm:$0xff] }
 0x915   : > { %6007 = vmatmul.msk.bf16.vlgmr.msrb.gmra.mxu0 %vm772_vm2, %v6003_v18 }
 0x916   : > { %4439 = vmatpush.bf16.msra.mxu0 %v6561_v43  ;;  %4429 = vmatpush.bf16.msrb.mxu3 %v6550_v51  ;;  %v6568_v43 = vld [vmem:[%s9367_s7] sm:$0xff] }
 0x91a   : > { %4440 = vmatpush.bf16.msra.mxu0 %v6560_v42 }
 0x91e   : > { %4441 = vmatpush.bf16.msra.mxu0 %v6559_v56  ;;  %v6870_v56 = vld [vmem:[%s9379_s19 + $0x6] ss:$0 sm:$0xff] }
 0x922   : > { %4442 = vmatpush.bf16.msra.mxu0 %v6558_v7 }
 0x972   : > { %v4122_v36 = vpop.f32.mrf.mxu0 }
 0x973   : > { %4126 = vst.msk [vmem:[#allocation2] sm:$0xff] %vm3229_vm11, %v4122_v36  ;;  %v6096_v36 = vld [vmem:[%s9376_s16 + $0xc] sm:$0xf] }
 0x975   : > { %v4210_v52 = vpop.f32.mrf.mxu1 }
 0x976   : > { %4214 = vst.msk [vmem:[#allocation2 + $0x8] sm:$0xff] %vm3229_vm11, %v4210_v52  ;;  %v6575_v52 = vld [vmem:[%s9367_s7 + $0x38] sm:$0xff] }
 0x977   : > { %4689 = vmatpush.bf16.msrb.mxu0 %v6575_v52  ;;  %v6586_v52 = vld [vmem:[%s9368_s8 + $0x10] sm:$0xff] }
 0x978   : > { %v4141_v40 = vpop.f32.mrf.mxu3 }
 0x979   : > { %4146 = vrot.lane.b32.xlu1 %v4141_v40, %s9456_s0  ;;  %v4499_v40 = vld [vmem:[%s9376_s16] sm:$0xf] }
 0x97a   : > { %v4124_v61 = vpop.f32.mrf.mxu0 }
 0x97b   : > { %v4187_v46 = vpop.f32.mrf.mxu2  ;;  %v6094_v61 = vld [vmem:[%s9376_s16 + $0x8] sm:$0xf]  ;;  %4690 = vmatpush.bf16.msrb.mxu0 %v6574_v29 }
 0x97c   : > { %4192 = vrot.lane.b32.xlu0 %v4187_v46, %s9453_s27  ;;  %v6092_v46 = vld [vmem:[%s9376_s16 + $0x4] sm:$0xf] }
 0x97d   : > { %v4212_v44 = vpop.f32.mrf.mxu1 }
 0x980   : > { %v4143_v0 = vpop.f32.mrf.mxu3 }
 0x981   : > { %v6573_v0 = vld [vmem:[%s9367_s7 + $0x28] sm:$0xff] }
 0x982   : > { %v4164_v27 = vpop.f32.mrf.mxu0  ;;  %4691 = vmatpush.bf16.msrb.mxu0 %v6573_v0  ;;  %v6593_v0 = vld [vmem:[%s9368_s8 + $0x48] sm:$0xff] }
 0x983   : > { %v4189_v13 = vpop.f32.mrf.mxu2  ;;  %4169 = vrot.lane.b32.xlu2 %v4164_v27, %s9451_s23  ;;  %v6571_v27 = vld [vmem:[%s9367_s7 + $0x18] sm:$0xff] }
 0x984   : > { %v6572_v13 = vld [vmem:[%s9367_s7 + $0x20] sm:$0xff] }
 0x985   : > { %v4298_v50 = vpop.f32.mrf.mxu1 }
 0x986   : > { %4302 = vst.msk [vmem:[#allocation2 + $0x10] sm:$0xff] %vm3229_vm11, %v4298_v50  ;;  %4692 = vmatpush.bf16.msrb.mxu0 %v6572_v13  ;;  %v6592_v13 = vld [vmem:[%s9368_s8 + $0x40] sm:$0xff] }
 0x988   : > { %v4229_v6 = vpop.f32.mrf.mxu3 }
 0x989   : > { %4234 = vrot.lane.b32.xlu1 %v4229_v6, %s9456_s0 }
 0x98a   : > { %v4166_v63 = vpop.f32.mrf.mxu0  ;;  %4693 = vmatpush.bf16.msrb.mxu0 %v6571_v27 }
 0x98b   : > { %v4275_v3 = vpop.f32.mrf.mxu2 }
 0x98c   : > { %4280 = vrot.lane.b32.xlu0 %v4275_v3, %s9453_s27 }
 0x98d   : > { %v4305_v24 = vld [vmem:[#allocation2 + $0x10] sm:$0xff]  ;;  %v4300_v35 = vpop.f32.mrf.mxu1 }
 0x98e   : > { %v4308_v31 = vpack.c.bf16 %v4305_v24, %v4305_v24 }
 0x990   : > { %v4231_v59 = vpop.f32.mrf.mxu3  ;;  %6090 = vmatmul.msk.bf16.vlgmr.msra.gmra.mxu2 %vm3229_vm11, %v4308_v31  ;;  %vm4543_vm11 = vcmask 1048064  }
 0x992   : > { %v4252_v58 = vpop.f32.mrf.mxu0 }
 0x993   : > { %v4277_v10 = vpop.f32.mrf.mxu2  ;;  %4257 = vrot.lane.b32.xlu2 %v4252_v58, %s9451_s23  ;;  %v6570_v58 = vld [vmem:[%s9367_s7 + $0x10] sm:$0xff] }
 0x994   : > { %4694 = vmatpush.bf16.msrb.mxu0 %v6570_v58 }
 0x998   : > { %4695 = vmatpush.bf16.msrb.mxu0 %v6569_v33 }
 0x99a   : > { %v4254_v62 = vpop.f32.mrf.mxu0 }
 0x99b   : > { %v6578_v62 = vld [vmem:[%s9367_s7 + $0x50] sm:$0xff] }
 0x99c   : > { %4696 = vmatpush.bf16.msrb.mxu0 %v6568_v43 }
 0x9dd   : > { %v4170_v55 = vpop.permute.xlu2 %4169 }
 0x9eb   : > { %v4147_v5 = vpop.permute.xlu1 %4146 }
 0x9ec   : > { %4149 = vst.msk [vmem:[#allocation2] sm:$0xff] %vm3262_vm5, %v4147_v5 }
 0x9ed   : > { %4172 = vst.msk [vmem:[#allocation2] sm:$0xff] %vm3295_vm6, %v4170_v55  ;;  %v4258_v19 = vpop.permute.xlu2 %4257 }
 0x9ee   : > { %v4193_v11 = vpop.permute.xlu0 %4192 }
 0x9ef   : > { %4195 = vst.msk [vmem:[#allocation2] sm:$0xff] %vm3327_vm7, %v4193_v11 }
 0x9f6   : > { %v4303_v26 = vld [vmem:[#allocation2] sm:$0xff] }
 0x9f7   : > { %v4306_v54 = vpack.c.bf16 %v4303_v26, %v4303_v26 }
 0x9f9   : > { %4430 = vmatmul.bf16.vlgmr.msrb.gmra.mxu3 %v4306_v54 }
 0x9fb   : > { %v4235_v8 = vpop.permute.xlu1 %4234 }
 0x9fc   : > { %4237 = vst.msk [vmem:[#allocation2 + $0x8] sm:$0xff] %vm3262_vm5, %v4235_v8  ;;  %v6601_v8 = vld [vmem:[%s9377_s17 + $0x8] sm:$0xff] }
 0x9fd   : > { %4260 = vst.msk [vmem:[#allocation2 + $0x8] sm:$0xff] %vm3295_vm6, %v4258_v19 }
 0x9fe   : > { %v4281_v20 = vpop.permute.xlu0 %4280 }
 0x9ff   : > { %4283 = vst.msk [vmem:[#allocation2 + $0x8] sm:$0xff] %vm3327_vm7, %v4281_v20 }
 0xa06   : > { %v4304_v45 = vld [vmem:[#allocation2 + $0x8] sm:$0xff] }
 0xa07   : > { %v4307_v17 = vpack.c.bf16 %v4304_v45, %v4304_v45  ;;  %v6600_v45 = vld [vmem:[%s9377_s17] sm:$0xff] }
 0xa09   : > { %4443 = vmatmul.bf16.vlgmr.msra.gmra.mxu0 %v4307_v17  ;;  %v6603_v17 = vld [vmem:[%s9377_s17 + $0x18] sm:$0xff] }
 0xa13   : > { %v4457_v22 = vpop.f32.mrf.mxu2 }
 0xa1b   : > { %v4459_v38 = vpop.f32.mrf.mxu2 }
 0xa1c   : > { %v6591_v38 = vld [vmem:[%s9368_s8 + $0x38] sm:$0xff] }
 0xa1d   : > { %4983 = vmatpush.bf16.msra.mxu0 %v6591_v38 }
 0xa7c   : > { %v4431_v25 = vpop.f32.mrf.mxu3 }
 0xa7d   : > { %v4432_v2 = vadd.f32 %v6869_v57, %v4431_v25  ;;  %v6599_v25 = vld [vmem:[%s9368_s8 + $0x78] sm:$0xff] }
 0xa84   : > { %v4433_v23 = vpop.f32.mrf.mxu3 }
 0xa85   : > { %v6590_v23 = vld [vmem:[%s9368_s8 + $0x30] sm:$0xff] }
 0xa86   : > { %v4444_v14 = vpop.f32.mrf.mxu0  ;;  %4984 = vmatpush.bf16.msra.mxu0 %v6590_v23  ;;  %v6606_v23 = vld [vmem:[%s9369_s9 + $0x10] sm:$0xff] }
 0xa87   : > { %v4445_v32 = vadd.f32 %v4444_v14, %v4432_v2  ;;  %v6598_v2 = vld [vmem:[%s9368_s8 + $0x70] sm:$0xff]  ;;  %v6589_v14 = vld [vmem:[%s9368_s8 + $0x28] sm:$0xff] }
 0xa89   : > { %v4458_v49 = vadd.f32 %v4457_v22, %v4445_v32  ;;  %v6602_v22 = vld [vmem:[%s9377_s17 + $0x10] sm:$0xff]  ;;  %v6597_v32 = vld [vmem:[%s9368_s8 + $0x68] sm:$0xff] }
 0xa8a   : > { %4985 = vmatpush.bf16.msra.mxu0 %v6589_v14  ;;  %v6605_v14 = vld [vmem:[%s9369_s9 + $0x8] sm:$0xff] }
 0xa8b   : > { %v4461_v53 = vmax.f32 %v4458_v49, 0.0 }
 0xa8d   : > { %v4465_v28 = vsel %vm4462_vm8, %v4461_v53, 0.0 }
 0xa8e   : > { %v4498_v4 = vpack.c.bf16 %v4465_v28, %v4465_v28  ;;  %v4446_v18 = vpop.f32.mrf.mxu0 }
 0xa90   : > { %v4505_v15 = vsel %vm3209_vm13, %v4498_v4, 0 }
 0xa91   : > { %4576 = vmatpush.bf16.msra.mxu3 %v4505_v15  ;;  %4514 = vmatpush.bf16.msrb.mxu1 %v4505_v15 }
 0xa92   : > { %4533 = vmatpush.bf16.msrb.mxu2 %v4505_v15 }
 0xa94   : > { %6097 = vmatmul.msk.bf16.vlgmr.msra.gmra.mxu3 %vm4500_vm9, %v6096_v36  ;;  %6091 = vmatmul.msk.bf16.vlgmr.msrb.gmra.mxu1 %vm4500_vm9, %v4499_v40  ;;  %v6596_v36 = vld [vmem:[%s9368_s8 + $0x60] sm:$0xff] }
 0xa95   : > { %4557 = vmatpush.bf16.msra.mxu1 %v4505_v15  ;;  %6093 = vmatmul.msk.bf16.vlgmr.msrb.gmra.mxu2 %vm4500_vm9, %v6092_v46  ;;  %v6588_v15 = vld [vmem:[%s9368_s8 + $0x20] sm:$0xff] }
 0xa96   : > { %4702 = vmatpush.bf16.msra.mxu2 %v6583_v30  ;;  %4986 = vmatpush.bf16.msra.mxu0 %v6588_v15  ;;  %v6595_v30 = vld [vmem:[%s9368_s8 + $0x58] sm:$0xff]  ;;  %v6612_v15 = vld [vmem:[%s9369_s9 + $0x40] sm:$0xff] }
 0xa9a   : > { %4703 = vmatpush.bf16.msra.mxu2 %v6582_v48  ;;  %v6594_v48 = vld [vmem:[%s9368_s8 + $0x50] sm:$0xff] }
 0xa9e   : > { %4704 = vmatpush.bf16.msra.mxu2 %v6581_v60  ;;  %v6585_v60 = vld [vmem:[%s9368_s8 + $0x8] sm:$0xff] }
 0xaa2   : > { %4705 = vmatpush.bf16.msra.mxu2 %v6580_v34  ;;  %v6584_v34 = vld [vmem:[%s9368_s8] sm:$0xff] }
 0xaa4   : > { %6095 = vmatmul.msk.bf16.vlgmr.msra.gmra.mxu1 %vm4500_vm9, %v6094_v61  ;;  %v6587_v61 = vld [vmem:[%s9368_s8 + $0x18] sm:$0xff] }
 0xaa5   : > { %4987 = vmatpush.bf16.msra.mxu0 %v6587_v61  ;;  %v6625_v61 = vld [vmem:[%s9370_s10 + $0x28] sm:$0xff] }
 0xaa6   : > { %4706 = vmatpush.bf16.msra.mxu2 %v6579_v1 }
 0xaa9   : > { %4988 = vmatpush.bf16.msra.mxu0 %v6586_v52  ;;  %v6623_v52 = vld [vmem:[%s9370_s10 + $0x18] sm:$0xff] }
 0xaaa   : > { %4707 = vmatpush.bf16.msra.mxu2 %v6578_v62  ;;  %v6871_v62 = vld [vmem:[%s9379_s19 + $0x7] ss:$0 sm:$0xff] }
 0xaad   : > { %4989 = vmatpush.bf16.msra.mxu0 %v6585_v60 }
 0xaae   : > { %4708 = vmatpush.bf16.msra.mxu2 %v6577_v9 }
 0xab1   : > { %4990 = vmatpush.bf16.msra.mxu0 %v6584_v34 }
 0xab2   : > { %4709 = vmatpush.bf16.msra.mxu2 %v6576_v16 }
 0xab6   : > { %4997 = vmatpush.bf16.msrb.mxu2 %v6599_v25 }
 0xaba   : > { %4998 = vmatpush.bf16.msrb.mxu2 %v6598_v2  ;;  %v6614_v2 = vld [vmem:[%s9369_s9 + $0x50] sm:$0xff] }
 0xabe   : > { %4999 = vmatpush.bf16.msrb.mxu2 %v6597_v32  ;;  %v6604_v32 = vld [vmem:[%s9369_s9] sm:$0xff] }
 0xac2   : > { %5000 = vmatpush.bf16.msrb.mxu2 %v6596_v36 }
 0xac6   : > { %5001 = vmatpush.bf16.msrb.mxu2 %v6595_v30  ;;  %v6624_v30 = vld [vmem:[%s9370_s10 + $0x20] sm:$0xff] }
 0xaca   : > { %5002 = vmatpush.bf16.msrb.mxu2 %v6594_v48 }
 0xace   : > { %5003 = vmatpush.bf16.msrb.mxu2 %v6593_v0  ;;  %v6622_v0 = vld [vmem:[%s9370_s10 + $0x10] sm:$0xff] }
 0xad2   : > { %5004 = vmatpush.bf16.msrb.mxu2 %v6592_v13 }
 0xb11   : > { %v4516_v44 = vpop.f32.mrf.mxu1 }
 0xb12   : > { %4520 = vst.msk [vmem:[#allocation2] sm:$0xff] %vm2771_vm10, %v4516_v44 }
 0xb17   : > { %v4578_v47 = vpop.f32.mrf.mxu3 }
 0xb18   : > { %4583 = vrot.lane.b32.xlu1 %v4578_v47, %s9451_s23  ;;  %v4535_v6 = vpop.f32.mrf.mxu2 }
 0xb19   : > { %4540 = vrot.lane.b32.xlu2 %v4535_v6, %s9451_s23  ;;  %v4518_v21 = vpop.f32.mrf.mxu1 }
 0xb1f   : > { %v4580_v3 = vpop.f32.mrf.mxu3 }
 0xb20   : > { %v4537_v63 = vpop.f32.mrf.mxu2 }
 0xb21   : > { %v4559_v59 = vpop.f32.mrf.mxu1 }
 0xb22   : > { %4563 = vst.msk [vmem:[#allocation2 + $0x8] sm:$0xff] %vm2771_vm10, %v4559_v59 }
 0xb29   : > { %v4561_v10 = vpop.f32.mrf.mxu1 }
 0xb73   : > { %v4541_v50 = vpop.permute.xlu2 %4540 }
 0xb74   : > { %4544 = vst.msk [vmem:[#allocation2] sm:$0xff] %vm4543_vm11, %v4541_v50 }
 0xb7b   : > { %v4587_v12 = vld [vmem:[#allocation2] sm:$0xff] }
 0xb7c   : > { %v4589_v51 = vpack.c.bf16 %v4587_v12, %v4587_v12 }
 0xb7e   : > { %4697 = vmatmul.bf16.vlgmr.msrb.gmra.mxu0 %v4589_v51 }
 0xb8a   : > { %v4584_v39 = vpop.permute.xlu1 %4583 }
 0xb8b   : > { %4586 = vst.msk [vmem:[#allocation2 + $0x8] sm:$0xff] %vm4543_vm11, %v4584_v39 }
 0xb92   : > { %v4588_v42 = vld [vmem:[#allocation2 + $0x8] sm:$0xff] }
 0xb93   : > { %v4590_v24 = vpack.c.bf16 %v4588_v42, %v4588_v42 }
 0xb95   : > { %4710 = vmatmul.bf16.vlgmr.msra.gmra.mxu2 %v4590_v24  ;;  %v6256_v24 = vld [vmem:[%s9378_s18 + $0x4] sm:$0xf] }
 0xb96   : > { %5246 = vmatpush.bf16.msra.mxu2 %v6619_v37 }
 0xbfb   : > { %v4698_v35 = vpop.f32.mrf.mxu0 }
 0xbfc   : > { %v4699_v7 = vadd.f32 %v6870_v56, %v4698_v35  ;;  %v5048_v35 = vld [vmem:[%s9378_s18] sm:$0xf]  ;;  %v6261_v56 = vld [vmem:[%s9378_s18 + $0x8] sm:$0xf] }
 0xc03   : > { %v4700_v31 = vpop.f32.mrf.mxu0 }
 0xc04   : > { %v6266_v31 = vld [vmem:[%s9378_s18 + $0xc] sm:$0xf] }
 0xc18   : > { %v4711_v55 = vpop.f32.mrf.mxu2 }
 0xc19   : > { %v4712_v5 = vadd.f32 %v4711_v55, %v4699_v7  ;;  %v6611_v7 = vld [vmem:[%s9369_s9 + $0x38] sm:$0xff] }
 0xc1a   : > { %5233 = vmatpush.bf16.msrb.mxu0 %v6611_v7 }
 0xc1b   : > { %v4715_v11 = vmax.f32 %v4712_v5, 0.0  ;;  %v6618_v5 = vld [vmem:[%s9369_s9 + $0x70] sm:$0xff] }
 0xc1c   : > { %5247 = vmatpush.bf16.msra.mxu2 %v6618_v5 }
 0xc1d   : > { %v4719_v26 = vsel %vm4716_vm12, %v4715_v11, 0.0  ;;  %v6610_v11 = vld [vmem:[%s9369_s9 + $0x30] sm:$0xff] }
 0xc1e   : > { %v4752_v54 = vpack.c.bf16 %v4719_v26, %v4719_v26  ;;  %5234 = vmatpush.bf16.msrb.mxu0 %v6610_v11  ;;  %v6617_v26 = vld [vmem:[%s9369_s9 + $0x68] sm:$0xff] }
 0xc1f   : > { %v6637_v11 = vld [vmem:[%s9372_s12 + $0x8] sm:$0xff] }
 0xc20   : > { %v4764_v19 = vsel %vm3209_vm13, %v4752_v54, 0  ;;  %v4713_v20 = vpop.f32.mrf.mxu2  ;;  %v6609_v54 = vld [vmem:[%s9369_s9 + $0x28] sm:$0xff]  ;;  %5248 = vmatpush.bf16.msra.mxu2 %v6617_v26  ;;  %v6636_v26 = vld [vmem:[%s9372_s12] sm:$0xff] }
 0xc21   : > { %4800 = vmatpush.bf16.msrb.mxu3 %v4764_v19  ;;  %4773 = vmatpush.bf16.msrb.mxu1 %v4764_v19  ;;  %v6616_v20 = vld [vmem:[%s9369_s9 + $0x60] sm:$0xff] }
 0xc22   : > { %5235 = vmatpush.bf16.msrb.mxu0 %v6609_v54  ;;  %v6651_v54 = vld [vmem:[%s9373_s13 + $0x38] sm:$0xff] }
 0xc24   : > { %6173 = vmatmul.msk.bf16.vlgmr.msrb.gmra.mxu3 %vm4500_vm9, %v6601_v8  ;;  %6166 = vmatmul.msk.bf16.vlgmr.msrb.gmra.mxu1 %vm4500_vm9, %v6600_v45  ;;  %v6608_v45 = vld [vmem:[%s9369_s9 + $0x20] sm:$0xff] }
 0xc25   : > { %4862 = vmatpush.bf16.msra.mxu3 %v4764_v19  ;;  %4835 = vmatpush.bf16.msra.mxu1 %v4764_v19 }
 0xc26   : > { %5249 = vmatpush.bf16.msra.mxu2 %v6616_v20  ;;  %5236 = vmatpush.bf16.msrb.mxu0 %v6608_v45  ;;  %v6648_v20 = vld [vmem:[%s9373_s13 + $0x20] sm:$0xff]  ;;  %v6647_v45 = vld [vmem:[%s9373_s13 + $0x18] sm:$0xff] }
 0xc34   : > { %6187 = vmatmul.msk.bf16.vlgmr.msra.gmra.mxu3 %vm4500_vm9, %v6603_v17  ;;  %6180 = vmatmul.msk.bf16.vlgmr.msra.gmra.mxu1 %vm4500_vm9, %v6602_v22  ;;  %v6615_v17 = vld [vmem:[%s9369_s9 + $0x58] sm:$0xff] }
 0xc35   : > { %v6607_v22 = vld [vmem:[%s9369_s9 + $0x18] sm:$0xff]  ;;  %5250 = vmatpush.bf16.msra.mxu2 %v6615_v17  ;;  %v6646_v17 = vld [vmem:[%s9373_s13 + $0x10] sm:$0xff] }
 0xc36   : > { %5237 = vmatpush.bf16.msrb.mxu0 %v6607_v22  ;;  %v6874_v22 = vld [vmem:[%s9379_s19 + $0xa] ss:$0 sm:$0xff] }
 0xc39   : > { %5251 = vmatpush.bf16.msra.mxu2 %v6614_v2 }
 0xc3a   : > { %5238 = vmatpush.bf16.msrb.mxu0 %v6606_v23 }
 0xc3e   : > { %5239 = vmatpush.bf16.msrb.mxu0 %v6605_v14  ;;  %v6645_v14 = vld [vmem:[%s9373_s13 + $0x8] sm:$0xff] }
 0xc42   : > { %5240 = vmatpush.bf16.msrb.mxu0 %v6604_v32  ;;  %v6644_v32 = vld [vmem:[%s9373_s13] sm:$0xff] }
 0xca1   : > { %v4775_v57 = vpop.f32.mrf.mxu1 }
 0xca2   : > { %4780 = vst.msk [vmem:[#allocation2] sm:$0xff] %vm2771_vm10, %v4775_v57 }
 0xca7   : > { %v4802_v49 = vpop.f32.mrf.mxu3 }
 0xca8   : > { %4809 = vrot.lane.b32.xlu2 %v4802_v49, %s9451_s23 }
 0xca9   : > { %v4777_v53 = vpop.f32.mrf.mxu1 }
 0xcaa   : > { %4781 = vst.msk [vmem:[#allocation2 + $0x18] sm:$0xff] %vm2771_vm10, %v4777_v53 }
 0xcaf   : > { %v4804_v28 = vpop.f32.mrf.mxu3 }
 0xcb1   : > { %v4837_v46 = vpop.f32.mrf.mxu1 }
 0xcb2   : > { %4842 = vst.msk [vmem:[#allocation2 + $0x8] sm:$0xff] %vm2771_vm10, %v4837_v46  ;;  %v6626_v46 = vld [vmem:[%s9370_s10 + $0x30] sm:$0xff] }
 0xcb7   : > { %v4864_v4 = vpop.f32.mrf.mxu3 }
 0xcb8   : > { %4871 = vrot.lane.b32.xlu0 %v4864_v4, %s9451_s23  ;;  %v6613_v4 = vld [vmem:[%s9369_s9 + $0x48] sm:$0xff] }
 0xcb9   : > { %v4839_v29 = vpop.f32.mrf.mxu1  ;;  %5252 = vmatpush.bf16.msra.mxu2 %v6613_v4 }
 0xcba   : > { %4843 = vst.msk [vmem:[#allocation2 + $0x20] sm:$0xff] %vm2771_vm10, %v4839_v29 }
 0xcbd   : > { %5253 = vmatpush.bf16.msra.mxu2 %v6612_v15 }
 0xcbf   : > { %v4866_v18 = vpop.f32.mrf.mxu3 }
 0xcc0   : > { %4811 = vrot.lane.b32.xlu0 %v4804_v28, %s9451_s23  ;;  %4873 = vrot.lane.b32.xlu1 %v4866_v18, %s9451_s23 }
 0xd02   : > { %v4810_v40 = vpop.permute.xlu2 %4809 }
 0xd03   : > { %4815 = vst.msk [vmem:[#allocation2] sm:$0xff] %vm4543_vm11, %v4810_v40  ;;  %v6627_v40 = vld [vmem:[%s9370_s10 + $0x38] sm:$0xff] }
 0xd0a   : > { %v4879_v47 = vld [vmem:[#allocation2] sm:$0xff] }
 0xd2a   : > { %v4872_v1 = vpop.permute.xlu0 %4871 }
 0xd2b   : > { %4877 = vst.msk [vmem:[#allocation2 + $0x8] sm:$0xff] %vm4543_vm11, %v4872_v1  ;;  %v6621_v1 = vld [vmem:[%s9370_s10 + $0x8] sm:$0xff] }
 0xd32   : > { %v4812_v27 = vpop.permute.xlu0 %4811  ;;  %v4874_v44 = vpop.permute.xlu1 %4873  ;;  %v4880_v3 = vld [vmem:[#allocation2 + $0x8] sm:$0xff] }
 0xd33   : > { %4816 = vst.msk [vmem:[#allocation2 + $0x18] sm:$0xff] %vm4543_vm11, %v4812_v27  ;;  %v6620_v27 = vld [vmem:[%s9370_s10] sm:$0xff] }
 0xd34   : > { %4878 = vst.msk [vmem:[#allocation2 + $0x20] sm:$0xff] %vm4543_vm11, %v4874_v44  ;;  %v6635_v44 = vld [vmem:[%s9371_s11 + $0x38] sm:$0xff] }
 0xd3a   : > { %v4881_v6 = vld [vmem:[#allocation2 + $0x18] sm:$0xff] }
 0xd3b   : > { %v4883_v21 = vpack.c.bf16 %v4881_v6, %v4879_v47  ;;  %v4882_v63 = vld [vmem:[#allocation2 + $0x20] sm:$0xff]  ;;  %v6634_v47 = vld [vmem:[%s9371_s11 + $0x30] sm:$0xff]  ;;  %v6633_v6 = vld [vmem:[%s9371_s11 + $0x28] sm:$0xff] }
 0xd3c   : > { %v4884_v59 = vpack.c.bf16 %v4882_v63, %v4880_v3  ;;  %v6631_v3 = vld [vmem:[%s9371_s11 + $0x18] sm:$0xff]  ;;  %v6630_v63 = vld [vmem:[%s9371_s11 + $0x10] sm:$0xff] }
 0xd3d   : > { %4991 = vmatmul.bf16.vlgmr.msra.gmra.mxu0 %v4883_v21  ;;  %v6632_v21 = vld [vmem:[%s9371_s11 + $0x20] sm:$0xff] }
 0xd3e   : > { %5005 = vmatmul.bf16.vlgmr.msrb.gmra.mxu2 %v4884_v59  ;;  %v6872_v59 = vld [vmem:[%s9379_s19 + $0x8] ss:$0 sm:$0xff]  ;;  %5492 = vmatpush.bf16.msra.mxu0 %v6643_v41 }
 0xd3f   : > { %5574 = vmatpush.bf16.msrb.mxu2 %v6651_v54 }
 0xdba   : > { %v4992_v10 = vpop.f32.mrf.mxu0 }
 0xdbb   : > { %v4993_v9 = vadd.f32 %v6871_v62, %v4992_v10 }
 0xdc1   : > { %v5006_v58 = vpop.f32.mrf.mxu2 }
 0xdc2   : > { %v4994_v33 = vpop.f32.mrf.mxu0  ;;  %v5007_v16 = vadd.f32 %v5006_v58, %v4993_v9 }
 0xdc3   : > { %v4995_v43 = vadd.f32 %v6871_v62, %v4994_v33 }
 0xdc4   : > { %v5011_v51 = vmax.f32 %v5007_v16, 0.0 }
 0xdc9   : > { %v5008_v50 = vpop.f32.mrf.mxu2 }
 0xdca   : > { %v5009_v12 = vadd.f32 %v5008_v50, %v4995_v43  ;;  %v6629_v50 = vld [vmem:[%s9371_s11 + $0x8] sm:$0xff] }
 0xdcc   : > { %v5012_v39 = vmax.f32 %v5009_v12, 0.0  ;;  %v6628_v12 = vld [vmem:[%s9371_s11] sm:$0xff] }
 0xdce   : > { %v6253_v42 = vpack.c.bf16 %v5012_v39, %v5011_v51  ;;  %v6642_v51 = vld [vmem:[%s9372_s12 + $0x30] sm:$0xff]  ;;  %v6641_v39 = vld [vmem:[%s9372_s12 + $0x28] sm:$0xff] }
 0xdcf   : > { %5493 = vmatpush.bf16.msra.mxu0 %v6642_v51 }
 0xdd0   : > { %6254 = vmatpush.bf16.msk.msrb.mxu1 %vm8860_vm1, %v6253_v42  ;;  %6259 = vmatpush.bf16.msk.msrb.mxu3 %vm8860_vm1, %v6253_v42 }
 0xdd3   : > { %6260 = vmatmul.msk.bf16.vlgmr.msrb.gmra.mxu3 %vm772_vm2, %v6256_v24  ;;  %6255 = vmatmul.msk.bf16.vlgmr.msrb.gmra.mxu1 %vm772_vm2, %v5048_v35  ;;  %v6639_v24 = vld [vmem:[%s9372_s12 + $0x18] sm:$0xff]  ;;  %v6638_v35 = vld [vmem:[%s9372_s12 + $0x10] sm:$0xff] }
 0xdd4   : > { %6264 = vmatpush.bf16.msk.msra.mxu1 %vm8860_vm1, %v6253_v42  ;;  %6269 = vmatpush.bf16.msk.msra.mxu3 %vm8860_vm1, %v6253_v42  ;;  %v6640_v42 = vld [vmem:[%s9372_s12 + $0x20] sm:$0xff] }
 0xdd5   : > { %5494 = vmatpush.bf16.msra.mxu0 %v6641_v39 }
 0xdd8   : > { %5328 = vmatpush.bf16.msrb.mxu1 %v6627_v40  ;;  %5410 = vmatpush.bf16.msrb.mxu3 %v6635_v44 }
 0xdd9   : > { %5495 = vmatpush.bf16.msra.mxu0 %v6640_v42 }
 0xddc   : > { %5329 = vmatpush.bf16.msrb.mxu1 %v6626_v46  ;;  %5411 = vmatpush.bf16.msrb.mxu3 %v6634_v47 }
 0xddd   : > { %5496 = vmatpush.bf16.msra.mxu0 %v6639_v24 }
 0xde0   : > { %5330 = vmatpush.bf16.msrb.mxu1 %v6625_v61  ;;  %5412 = vmatpush.bf16.msrb.mxu3 %v6633_v6 }
 0xde1   : > { %5497 = vmatpush.bf16.msra.mxu0 %v6638_v35 }
 0xde3   : > { %6270 = vmatmul.msk.bf16.vlgmr.msra.gmra.mxu3 %vm772_vm2, %v6266_v31  ;;  %6265 = vmatmul.msk.bf16.vlgmr.msra.gmra.mxu1 %vm772_vm2, %v6261_v56  ;;  %vm9275_vm2 = vmpackc.low %vm4462_vm8, %vm4462_vm8  ;;  %v6873_v31 = vld [vmem:[%s9379_s19 + $0x9] ss:$0 sm:$0xff] }
 0xde4   : > { %5331 = vmatpush.bf16.msrb.mxu1 %v6624_v30  ;;  %5413 = vmatpush.bf16.msrb.mxu3 %v6632_v21 }
 0xde5   : > { %5498 = vmatpush.bf16.msra.mxu0 %v6637_v11 }
 0xde8   : > { %5332 = vmatpush.bf16.msrb.mxu1 %v6623_v52  ;;  %5414 = vmatpush.bf16.msrb.mxu3 %v6631_v3 }
 0xde9   : > { %5499 = vmatpush.bf16.msra.mxu0 %v6636_v26 }
 0xdec   : > { %5333 = vmatpush.bf16.msrb.mxu1 %v6622_v0  ;;  %5415 = vmatpush.bf16.msrb.mxu3 %v6630_v63 }
 0xdf0   : > { %5334 = vmatpush.bf16.msrb.mxu1 %v6621_v1  ;;  %5416 = vmatpush.bf16.msrb.mxu3 %v6629_v50 }
 0xdf4   : > { %5335 = vmatpush.bf16.msrb.mxu1 %v6620_v27  ;;  %5417 = vmatpush.bf16.msrb.mxu3 %v6628_v12 }
 0xe50   : > { %v5061_v55 = vpop.f32.mrf.mxu1 }
 0xe51   : > { %5065 = vst.msk [vmem:[#allocation2] sm:$0xff] %vm2771_vm10, %v5061_v55 }
 0xe56   : > { %v5080_v19 = vpop.f32.mrf.mxu3 }
 0xe57   : > { %5085 = vrot.lane.b32.xlu2 %v5080_v19, %s9451_s23  ;;  %v6650_v19 = vld [vmem:[%s9373_s13 + $0x30] sm:$0xff] }
 0xe58   : > { %v5063_v8 = vpop.f32.mrf.mxu1  ;;  %5575 = vmatpush.bf16.msrb.mxu2 %v6650_v19 }
 0xe59   : > { %v6649_v8 = vld [vmem:[%s9373_s13 + $0x28] sm:$0xff] }
 0xe5c   : > { %5576 = vmatpush.bf16.msrb.mxu2 %v6649_v8 }
 0xe5e   : > { %v5082_v38 = vpop.f32.mrf.mxu3 }
 0xe60   : > { %v5103_v53 = vpop.f32.mrf.mxu1  ;;  %5577 = vmatpush.bf16.msrb.mxu2 %v6648_v20 }
 0xe61   : > { %5107 = vst.msk [vmem:[#allocation2 + $0x8] sm:$0xff] %vm2771_vm10, %v5103_v53 }
 0xe64   : > { %5578 = vmatpush.bf16.msrb.mxu2 %v6647_v45 }
 0xe66   : > { %v5122_v25 = vpop.f32.mrf.mxu3 }
 0xe67   : > { %5127 = vrot.lane.b32.xlu1 %v5122_v25, %s9451_s23  ;;  %s5649_s23 = sshll.u32 %s9464_s25, 3 }
 0xe68   : > { %v5105_v36 = vpop.f32.mrf.mxu1  ;;  %5579 = vmatpush.bf16.msrb.mxu2 %v6646_v17  ;;  %s654_s30 = scalar_lea.vmem %s9381_s21, %s5649_s23 }
 0xe69   : > { %v6876_v36 = vld [vmem:[%s9379_s19 + $0xc] ss:$0 sm:$0xff] }
 0xe6c   : > { %5580 = vmatpush.bf16.msrb.mxu2 %v6645_v14 }
 0xe6e   : > { %v5124_v57 = vpop.f32.mrf.mxu3 }
 0xe70   : > { %5581 = vmatpush.bf16.msrb.mxu2 %v6644_v32 }
 0xeb1   : > { %v5086_v49 = vpop.permute.xlu2 %5085 }
 0xeb2   : > { %5088 = vst.msk [vmem:[#allocation2] sm:$0xff] %vm4543_vm11, %v5086_v49  ;;  %v6875_v49 = vld [vmem:[%s9379_s19 + $0xb] ss:$0 sm:$0xff] }
 0xeb9   : > { %v5131_v28 = vld [vmem:[#allocation2] sm:$0xff] }
 0xeba   : > { %v5133_v18 = vpack.c.bf16 %v5131_v28, %v5131_v28 }
 0xebc   : > { %5241 = vmatmul.bf16.vlgmr.msrb.gmra.mxu0 %v5133_v18 }
 0xed9   : > { %v5128_v48 = vpop.permute.xlu1 %5127 }
 0xeda   : > { %5130 = vst.msk [vmem:[#allocation2 + $0x8] sm:$0xff] %vm4543_vm11, %v5128_v48 }
 0xee1   : > { %v5132_v29 = vld [vmem:[#allocation2 + $0x8] sm:$0xff] }
 0xee2   : > { %v5134_v60 = vpack.c.bf16 %v5132_v29, %v5132_v29 }
 0xee4   : > { %5254 = vmatmul.bf16.vlgmr.msra.gmra.mxu2 %v5134_v60 }
 0xf39   : > { %v5242_v34 = vpop.f32.mrf.mxu0 }
 0xf3a   : > { %v5243_v10 = vadd.f32 %v6872_v59, %v5242_v34 }
 0xf41   : > { %v5244_v13 = vpop.f32.mrf.mxu0 }
 0xf67   : > { %v5255_v58 = vpop.f32.mrf.mxu2 }
 0xf68   : > { %v5256_v62 = vadd.f32 %v5255_v58, %v5243_v10 }
 0xf6a   : > { %v5259_v33 = vmax.f32 %v5256_v62, 0.0 }
 0xf6c   : > { %v6368_v16 = vpack.c.bf16 %v5259_v33, %v5259_v33 }
 0xf6e   : > { %6369 = vmatmul.msk.bf16.vlgmr.msrb.gmra.mxu1 %vm9275_vm2, %v6368_v16 }
 0xf6f   : > { %v5257_v43 = vpop.f32.mrf.mxu2 }
 0xfeb   : > { %v5337_v56 = vpop.f32.mrf.mxu1 }
 0xfec   : > { %v5338_v37 = vadd.f32 %v6873_v31, %v5337_v56 }
 0xfee   : > { %v5341_v7 = vmax.f32 %v5338_v37, 0.0 }
 0xff0   : > { %v6403_v55 = vpack.c.bf16 %v5341_v7, %v5341_v7 }
 0xff2   : > { %6404 = vmatmul.msk.bf16.vlgmr.msrb.gmra.mxu3 %vm9275_vm2, %v6403_v55 }
 0xff3   : > { %v5339_v5 = vpop.f32.mrf.mxu1 }
0x1075   : > { %v5419_v38 = vpop.f32.mrf.mxu3 }
0x1076   : > { %v5420_v25 = vadd.f32 %v6874_v22, %v5419_v38 }
0x1078   : > { %v5423_v57 = vmax.f32 %v5420_v25, 0.0 }
0x107a   : > { %v6438_v23 = vpack.c.bf16 %v5423_v57, %v5423_v57 }
0x107c   : > { %6439 = vmatmul.msk.bf16.vlgmr.msra.gmra.mxu0 %vm9275_vm2, %v6438_v23 }
0x107d   : > { %v5421_v2 = vpop.f32.mrf.mxu3 }
0x10f9   : > { %v5501_v53 = vpop.f32.mrf.mxu0 }
0x10fa   : > { %v5502_v28 = vadd.f32 %v6875_v49, %v5501_v53 }
0x10fc   : > { %v5505_v4 = vmax.f32 %v5502_v28, 0.0 }
0x10fe   : > { %v6473_v18 = vpack.c.bf16 %v5505_v4, %v5505_v4 }
0x1100   : > { %6474 = vmatmul.msk.bf16.vlgmr.msrb.gmra.mxu2 %vm9275_vm2, %v6473_v18 }
0x1101   : > { %v5503_v15 = vpop.f32.mrf.mxu0 }
0x1183   : > { %v5583_v40 = vpop.f32.mrf.mxu2 }
0x1184   : > { %v5584_v46 = vadd.f32 %v6876_v36, %v5583_v40 }
0x1186   : > { %6877 = vtanh.f32 %v5584_v46 }
0x118b   : > { %v5585_v61 = vpop.f32.mrf.mxu2 }
0x118c   : > { %v6878_v30 = vpop.eup %6877 }
0x118d   : > { %5588 = vst [vmem:[%s654_s30] sm:$0xff] %v6878_v30 }
0x118e PF: > { %s31_s2 = sadd.s32 1, %s6885_s2  }
0x118f   : > { %p28_p4 = scmp.ge.s32.totalorder %s31_s2, 4  }
0x1191   :  { %30 = sbr.rel (!%p28_p4) target bundleno = 9 (0x9), region = 159 }

</bundles_post_ra>
